<compile_context>
chip_gen: v7x
topology: tpu7x:2x2x1
jax: 0.10.0
libtpu: 0.0.40
codegen_flags: <defaults>
</compile_context>

<pallas_src>
import functools
import math

import jax
import jax.numpy as jnp
from jax.experimental import pallas as pl
from jax.experimental.pallas import tpu as pltpu


OUT_LANES = 128  # lane-dense width for the final output projection


# ----------------------------------------------------------------------------
# Config
# ----------------------------------------------------------------------------
class Args:
    seq_len_in = 8
    seq_len_out = 6
    dim_in = 16
    dim_out = 12
    d_model = 32
    d_ff = 64
    use_gt_inc = False
    use_expectation = True
    inc_threshold = 0.5


def _r8(n):
    return ((n + 7) // 8) * 8


LN_NAMES = ("enc_ln1", "enc_ln2", "dec_ln1", "dec_ln2", "dec_ln3")


def linear_specs(args):
    d, dff, din, dout = args.d_model, args.d_ff, args.dim_in, args.dim_out
    return [
        ("enc_emb", din, d),
        ("enc_q", d, d), ("enc_k", d, d), ("enc_v", d, d), ("enc_o", d, d),
        ("enc_ff1", d, dff), ("enc_ff2", dff, d),
        ("dec_emb", dout, d),
        ("dec_sq", d, d), ("dec_sk", d, d), ("dec_sv", d, d), ("dec_so", d, d),
        ("dec_cq", d, d), ("dec_ck", d, d), ("dec_cv", d, d), ("dec_co", d, d),
        ("dec_ff1", d, dff), ("dec_ff2", dff, d),
        ("dec_out", d, dout),
    ]


# ----------------------------------------------------------------------------
# Parameter slab layout (per-branch), grouped by output/column width.
#   lin_layout[name] = (slab_width, row_offset, padded_in_rows)
#     rows [off : off+rw)            -> weight (zero row-padded)
#     row  [off+rw]                  -> bias   (inside its own 8-row block)
#   ln_layout[name] = (gamma_row, beta_row)   (rows in the d_model-width slab)
# All offsets / row counts are multiples of 8 -> aligned sublane slices.
# ----------------------------------------------------------------------------
def build_layout(args):
    d = args.d_model
    rows = {}
    lin_layout, ln_layout = {}, {}
    for name, din_r, dout_r in linear_specs(args):
        width = OUT_LANES if name == "dec_out" else dout_r
        rw = _r8(din_r)
        off = rows.get(width, 0)
        lin_layout[name] = (width, off, rw)
        rows[width] = off + rw + 8          # +8-row block whose row 0 holds the bias
    for name in LN_NAMES:
        off = rows.get(d, 0)
        ln_layout[name] = (off, off + 8)
        rows[d] = off + 16
    widths = tuple(sorted(rows))
    return lin_layout, ln_layout, rows, widths


# ----------------------------------------------------------------------------
# Parameter init (deterministic, synthetic) + packing into the slabs.
# ----------------------------------------------------------------------------
def _init_linear(key, din, dout):
    kw, kb = jax.random.split(key)
    w = jax.random.normal(kw, (din, dout), jnp.float32) * (1.0 / math.sqrt(din))
    b = jax.random.normal(kb, (dout,), jnp.float32) * 0.01
    return w, b


def init_branch(key, args):
    specs = linear_specs(args)
    keys = jax.random.split(key, len(specs))
    p = {name: _init_linear(k, di, do) for (name, di, do), k in zip(specs, keys)}
    d = args.d_model
    for name in LN_NAMES:
        p[name] = (jnp.ones((d,), jnp.float32), jnp.zeros((d,), jnp.float32))
    return p


def pack_branch(p, layouts, args):
    lin_layout, ln_layout, rows, widths = layouts
    d = args.d_model
    slabs = {w: jnp.zeros((rows[w], w), jnp.float32) for w in widths}
    for name, (width, off, rw) in lin_layout.items():
        w, b = p[name]
        di, do = w.shape
        slabs[width] = slabs[width].at[off:off + di, :do].set(w)
        slabs[width] = slabs[width].at[off + rw, :do].set(b)
    for name, (goff, boff) in ln_layout.items():
        g, be = p[name]
        slabs[d] = slabs[d].at[goff, :d].set(g)
        slabs[d] = slabs[d].at[boff, :d].set(be)
    return slabs


def init_transfact(key, args, layouts):
    widths = layouts[3]
    bkeys = jax.random.split(key, 3)                 # LR / rec / nonrec branches
    packed = [pack_branch(init_branch(k, args), layouts, args) for k in bkeys]
    return {w: jnp.stack([pb[w] for pb in packed], axis=0) for w in widths}


# ----------------------------------------------------------------------------
# Constants (positional encodings + additive attention masks) — fold under jit.
# ----------------------------------------------------------------------------
def sinusoidal_pe(s, d):
    pos = jnp.arange(s, dtype=jnp.float32)[:, None]
    i = jnp.arange(d // 2, dtype=jnp.float32)[None, :]
    angle = pos / jnp.power(10000.0, 2.0 * i / d)
    pe = jnp.zeros((s, d), jnp.float32)
    pe = pe.at[:, 0::2].set(jnp.sin(angle))
    pe = pe.at[:, 1::2].set(jnp.cos(angle))
    return pe


def block_mask(sq, sk, b, causal):
    """Additive mask over flattened (b*sq, b*sk): 0 within-batch (+causal-ok), -1e30 else."""
    qi = jnp.arange(b * sq)
    kj = jnp.arange(b * sk)
    ok = (qi[:, None] // sq) == (kj[None, :] // sk)
    if causal:
        ok = ok & ((kj[None, :] % sk) <= (qi[:, None] % sq))
    return jnp.where(ok, 0.0, -1e30).astype(jnp.float32)


# ----------------------------------------------------------------------------
# The single fused kernel: 3x (encoder + decoder) + sigmoid-weighted combine.
# ----------------------------------------------------------------------------
def _transfact_kernel(x_ref, dlr_ref, dsp_ref, pe_e_ref, pe_d_ref,
                      me_ref, md_ref, mc_ref, *rest,
                      widths, lin_layout, ln_layout, d_model,
                      use_gt_inc, use_expectation, thr):
    nslab = len(widths)
    slab_refs = dict(zip(widths, rest[:nslab]))
    rest = rest[nslab:]
    if use_gt_inc:
        gt_ref, o_ref = rest
    else:
        (o_ref,) = rest

    def run_branch(b, dec_in):
        def linear(x, name, act=None):
            width, off, rw = lin_layout[name]
            ref = slab_refs[width]
            w = ref[b, off:off + rw, :]                    # aligned static slice
            bias = ref[b, off + rw:off + rw + 1, :]
            y = jnp.dot(x, w, preferred_element_type=jnp.float32) + bias
            if act == "relu":
                y = jnp.maximum(y, 0.0)
            return y

        def layernorm(x, name, eps=1e-5):
            goff, boff = ln_layout[name]
            ref = slab_refs[d_model]
            g = ref[b, goff:goff + 1, :]
            be = ref[b, boff:boff + 1, :]
            mu = jnp.mean(x, axis=-1, keepdims=True)
            var = jnp.mean(jnp.square(x - mu), axis=-1, keepdims=True)
            return (x - mu) * jax.lax.rsqrt(var + eps) * g + be

        def attention(q, k, v, mask):
            # K-transpose absorbed into the MXU feed via dot_general (no vxpose).
            scale = 1.0 / math.sqrt(q.shape[-1])
            s = jax.lax.dot_general(q, k, (((1,), (1,)), ((), ())),
                                    preferred_element_type=jnp.float32)
            s = s * scale + mask
            s = s - jnp.max(s, axis=-1, keepdims=True)
            e = jnp.exp(s)
            p = e / jnp.sum(e, axis=-1, keepdims=True)     # exact divide (correctness)
            return jnp.dot(p, v, preferred_element_type=jnp.float32)

        # ----------------------------- encoder -----------------------------
        h = linear(x_ref[...], "enc_emb") + pe_e_ref[...]
        a = attention(linear(h, "enc_q"), linear(h, "enc_k"), linear(h, "enc_v"),
                      me_ref[...])
        h = layernorm(h + linear(a, "enc_o"), "enc_ln1")
        f = linear(linear(h, "enc_ff1", act="relu"), "enc_ff2")
        enc_out = layernorm(h + f, "enc_ln2")

        # --------------------- decoder (teacher forcing) --------------------
        g = linear(dec_in, "dec_emb") + pe_d_ref[...]
        a = attention(linear(g, "dec_sq"), linear(g, "dec_sk"), linear(g, "dec_sv"),
                      md_ref[...])
        g = layernorm(g + linear(a, "dec_so"), "dec_ln1")
        c = attention(linear(g, "dec_cq"), linear(enc_out, "dec_ck"),
                      linear(enc_out, "dec_cv"), mc_ref[...])
        g = layernorm(g + linear(c, "dec_co"), "dec_ln2")
        f = linear(linear(g, "dec_ff1", act="relu"), "dec_ff2")
        g = layernorm(g + f, "dec_ln3")
        return linear(g, "dec_out")           # (B*So, OUT_LANES), lane-dense

    dec_lr_in = dlr_ref[...]
    dec_sp_in = dsp_ref[...]
    lr_out = run_branch(0, dec_lr_in)         # LR branch (incident logits)
    rec_out = run_branch(1, dec_sp_in)        # recurrent-speed branch
    nonrec_out = run_branch(2, dec_sp_in)     # non-recurrent-speed branch

    # ---------------- sigmoid-weighted rec/nonrec combine (fused) ----------------
    if use_gt_inc:
        rec_w = (gt_ref[...] < 0.5).astype(jnp.float32)
    elif use_expectation:
        inc_pred = 1.0 / (1.0 + jnp.exp(-lr_out))
        rec_w = 1.0 - inc_pred
    else:
        inc_pred = 1.0 / (1.0 + jnp.exp(-lr_out))
        rec_w = (inc_pred < thr).astype(jnp.float32)
    o_ref[...] = rec_out * rec_w + nonrec_out * (1.0 - rec_w)


# ----------------------------------------------------------------------------
# TransFactNaive forward
# ----------------------------------------------------------------------------
def transfact_forward(packed, layouts, args, x, target, mode):
    """
    x:      (B, seq_len_in, dim_in)
    target: (B, seq_len_out+1, dim_out, 5)
    returns speed_pred: (B, seq_len_out, dim_out)
    """
    # TODO(synk): only teacher-forced ("train") decoding is implemented; eval-mode
    # autoregressive decoding from the reference is not.
    del mode
    lin_layout, ln_layout, rows, widths = layouts
    B = x.shape[0]
    Si, So = args.seq_len_in, args.seq_len_out
    din, dout, d = args.dim_in, args.dim_out, args.d_model

    x2 = x.reshape(B * Si, din)
    pad_c = _r8(dout) - dout
    dec_lr = jnp.pad(target[:, :-1, :, 3].reshape(B * So, dout), ((0, 0), (0, pad_c)))
    dec_sp = jnp.pad(target[:, :-1, :, 0].reshape(B * So, dout), ((0, 0), (0, pad_c)))

    pe_enc = jnp.tile(sinusoidal_pe(Si, d), (B, 1))       # (B*Si, d)
    pe_dec = jnp.tile(sinusoidal_pe(So, d), (B, 1))       # (B*So, d)
    enc_mask = block_mask(Si, Si, B, causal=False)        # (B*Si, B*Si)
    dec_mask = block_mask(So, So, B, causal=True)         # (B*So, B*So)
    cross_mask = block_mask(So, Si, B, causal=False)      # (B*So, B*Si)

    operands = [x2, dec_lr, dec_sp, pe_enc, pe_dec, enc_mask, dec_mask, cross_mask]
    operands += [packed[w] for w in widths]
    if args.use_gt_inc:
        gt = target[:, 1:, :, 3].reshape(B * So, dout)
        operands.append(jnp.pad(gt, ((0, 0), (0, OUT_LANES - dout))))

    kernel = functools.partial(
        _transfact_kernel, widths=widths, lin_layout=lin_layout,
        ln_layout=ln_layout, d_model=d, use_gt_inc=args.use_gt_inc,
        use_expectation=args.use_expectation, thr=args.inc_threshold)

    vmem = lambda: pl.BlockSpec(memory_space=pltpu.MemorySpace.VMEM)
    speed = pl.pallas_call(
        kernel,
        out_shape=jax.ShapeDtypeStruct((B * So, OUT_LANES), jnp.float32),
        in_specs=[vmem() for _ in operands],
        out_specs=vmem(),
    )(*operands)
    return speed[:, :dout].reshape(B, So, dout)


if __name__ == "__main__":
    args = Args()
    key = jax.random.PRNGKey(0)
    kp, kx, kt = jax.random.split(key, 3)

    layouts = build_layout(args)
    packed = init_transfact(kp, args, layouts)

    x = jax.random.normal(kx, (2, args.seq_len_in, args.dim_in), jnp.float32)
    target = jax.random.uniform(kt, (2, args.seq_len_out + 1, args.dim_out, 5), jnp.float32)

    fwd = jax.jit(lambda xx, tt: transfact_forward(packed, layouts, args, xx, tt, mode="train"))
    speed_pred = jax.block_until_ready(fwd(x, target))

    assert speed_pred.shape == (2, args.seq_len_out, args.dim_out)
    assert bool(jnp.all(jnp.isfinite(speed_pred)))
    print("KERNEL_OK")
</pallas_src>

<mosaic_0001>
module attributes {stable_mosaic.version = 11 : i64} {
  func.func @_transfact_kernel(%arg0: memref<16x16xf32, #tpu.memory_space<vmem>>, %arg1: memref<12x16xf32, #tpu.memory_space<vmem>>, %arg2: memref<12x16xf32, #tpu.memory_space<vmem>>, %arg3: memref<16x32xf32, #tpu.memory_space<vmem>>, %arg4: memref<12x32xf32, #tpu.memory_space<vmem>>, %arg5: memref<16x16xf32, #tpu.memory_space<vmem>>, %arg6: memref<12x12xf32, #tpu.memory_space<vmem>>, %arg7: memref<12x16xf32, #tpu.memory_space<vmem>>, %arg8: memref<3x752x32xf32, #tpu.memory_space<vmem>>, %arg9: memref<3x80x64xf32, #tpu.memory_space<vmem>>, %arg10: memref<3x40x128xf32, #tpu.memory_space<vmem>>, %arg11: memref<12x128xf32, #tpu.memory_space<vmem>>) attributes {dimension_semantics = [], scalar_prefetch = 0 : i64, scratch_operands = 0 : i64, tpu.core_type = #tpu.core_type<tc>} {
    %c0 = arith.constant 0 : index
    %c0_0 = arith.constant 0 : index
    %0 = vector.load %arg1[%c0, %c0_0] : memref<12x16xf32, #tpu.memory_space<vmem>>, vector<12x16xf32>
    %c0_1 = arith.constant 0 : index
    %c0_2 = arith.constant 0 : index
    %1 = vector.load %arg2[%c0_1, %c0_2] : memref<12x16xf32, #tpu.memory_space<vmem>>, vector<12x16xf32>
    %c0_3 = arith.constant 0 : index
    %c0_4 = arith.constant 0 : index
    %2 = vector.load %arg0[%c0_3, %c0_4] : memref<16x16xf32, #tpu.memory_space<vmem>>, vector<16x16xf32>
    %c0_5 = arith.constant 0 : index
    %c0_6 = arith.constant 0 : index
    %c0_7 = arith.constant 0 : index
    %3 = vector.load %arg8[%c0_5, %c0_6, %c0_7] : memref<3x752x32xf32, #tpu.memory_space<vmem>>, vector<1x16x32xf32>
    %4 = vector.shape_cast %3 : vector<1x16x32xf32> to vector<16x32xf32>
    %c0_8 = arith.constant 0 : index
    %c16 = arith.constant 16 : index
    %c0_9 = arith.constant 0 : index
    %5 = vector.load %arg8[%c0_8, %c16, %c0_9] : memref<3x752x32xf32, #tpu.memory_space<vmem>>, vector<1x1x32xf32>
    %6 = vector.shape_cast %5 : vector<1x1x32xf32> to vector<1x32xf32>
    %cst = arith.constant dense<0.000000e+00> : vector<16x32xf32>
    %7 = tpu.matmul %2, %4, %cst {dimension_numbers = #tpu.dot_dimension_numbers<[1], [0], [0], [1], [0, 0, 1, 1], [], []>} : vector<16x16xf32>, vector<16x32xf32>, vector<16x32xf32> -> vector<16x32xf32>
    %8 = vector.broadcast %6 : vector<1x32xf32> to vector<16x32xf32>
    %9 = arith.addf %7, %8 : vector<16x32xf32>
    %c0_10 = arith.constant 0 : index
    %c0_11 = arith.constant 0 : index
    %10 = vector.load %arg3[%c0_10, %c0_11] : memref<16x32xf32, #tpu.memory_space<vmem>>, vector<16x32xf32>
    %11 = arith.addf %9, %10 : vector<16x32xf32>
    %c0_12 = arith.constant 0 : index
    %c24 = arith.constant 24 : index
    %c0_13 = arith.constant 0 : index
    %12 = vector.load %arg8[%c0_12, %c24, %c0_13] : memref<3x752x32xf32, #tpu.memory_space<vmem>>, vector<1x32x32xf32>
    %13 = vector.shape_cast %12 : vector<1x32x32xf32> to vector<32x32xf32>
    %c0_14 = arith.constant 0 : index
    %c56 = arith.constant 56 : index
    %c0_15 = arith.constant 0 : index
    %14 = vector.load %arg8[%c0_14, %c56, %c0_15] : memref<3x752x32xf32, #tpu.memory_space<vmem>>, vector<1x1x32xf32>
    %15 = vector.shape_cast %14 : vector<1x1x32xf32> to vector<1x32xf32>
    %cst_16 = arith.constant dense<0.000000e+00> : vector<16x32xf32>
    %16 = tpu.matmul %11, %13, %cst_16 {dimension_numbers = #tpu.dot_dimension_numbers<[1], [0], [0], [1], [0, 0, 1, 1], [], []>} : vector<16x32xf32>, vector<32x32xf32>, vector<16x32xf32> -> vector<16x32xf32>
    %17 = vector.broadcast %15 : vector<1x32xf32> to vector<16x32xf32>
    %18 = arith.addf %16, %17 : vector<16x32xf32>
    %c0_17 = arith.constant 0 : index
    %c64 = arith.constant 64 : index
    %c0_18 = arith.constant 0 : index
    %19 = vector.load %arg8[%c0_17, %c64, %c0_18] : memref<3x752x32xf32, #tpu.memory_space<vmem>>, vector<1x32x32xf32>
    %20 = vector.shape_cast %19 : vector<1x32x32xf32> to vector<32x32xf32>
    %c0_19 = arith.constant 0 : index
    %c96 = arith.constant 96 : index
    %c0_20 = arith.constant 0 : index
    %21 = vector.load %arg8[%c0_19, %c96, %c0_20] : memref<3x752x32xf32, #tpu.memory_space<vmem>>, vector<1x1x32xf32>
    %22 = vector.shape_cast %21 : vector<1x1x32xf32> to vector<1x32xf32>
    %cst_21 = arith.constant dense<0.000000e+00> : vector<16x32xf32>
    %23 = tpu.matmul %11, %20, %cst_21 {dimension_numbers = #tpu.dot_dimension_numbers<[1], [0], [0], [1], [0, 0, 1, 1], [], []>} : vector<16x32xf32>, vector<32x32xf32>, vector<16x32xf32> -> vector<16x32xf32>
    %24 = vector.broadcast %22 : vector<1x32xf32> to vector<16x32xf32>
    %25 = arith.addf %23, %24 : vector<16x32xf32>
    %c0_22 = arith.constant 0 : index
    %c104 = arith.constant 104 : index
    %c0_23 = arith.constant 0 : index
    %26 = vector.load %arg8[%c0_22, %c104, %c0_23] : memref<3x752x32xf32, #tpu.memory_space<vmem>>, vector<1x32x32xf32>
    %27 = vector.shape_cast %26 : vector<1x32x32xf32> to vector<32x32xf32>
    %c0_24 = arith.constant 0 : index
    %c136 = arith.constant 136 : index
    %c0_25 = arith.constant 0 : index
    %28 = vector.load %arg8[%c0_24, %c136, %c0_25] : memref<3x752x32xf32, #tpu.memory_space<vmem>>, vector<1x1x32xf32>
    %29 = vector.shape_cast %28 : vector<1x1x32xf32> to vector<1x32xf32>
    %cst_26 = arith.constant dense<0.000000e+00> : vector<16x32xf32>
    %30 = tpu.matmul %11, %27, %cst_26 {dimension_numbers = #tpu.dot_dimension_numbers<[1], [0], [0], [1], [0, 0, 1, 1], [], []>} : vector<16x32xf32>, vector<32x32xf32>, vector<16x32xf32> -> vector<16x32xf32>
    %31 = vector.broadcast %29 : vector<1x32xf32> to vector<16x32xf32>
    %32 = arith.addf %30, %31 : vector<16x32xf32>
    %c0_27 = arith.constant 0 : index
    %c0_28 = arith.constant 0 : index
    %33 = vector.load %arg5[%c0_27, %c0_28] : memref<16x16xf32, #tpu.memory_space<vmem>>, vector<16x16xf32>
    %cst_29 = arith.constant dense<0.000000e+00> : vector<16x16xf32>
    %34 = tpu.matmul %18, %25, %cst_29 {dimension_numbers = #tpu.dot_dimension_numbers<[1], [1], [0], [0], [0, 0, 1, 0], [], []>} : vector<16x32xf32>, vector<16x32xf32>, vector<16x16xf32> -> vector<16x16xf32>
    %cst_30 = arith.constant 0.176776692 : f32
    %35 = vector.broadcast %cst_30 : f32 to vector<16x16xf32>
    %36 = arith.mulf %34, %35 : vector<16x16xf32>
    %37 = arith.addf %36, %33 : vector<16x16xf32>
    %cst_31 = arith.constant dense<0xFF800000> : vector<16xf32>
    %38 = vector.multi_reduction <maximumf>, %37, %cst_31 [1] : vector<16x16xf32> to vector<16xf32>
    %39 = vector.shape_cast %38 : vector<16xf32> to vector<16x1xf32>
    %40 = vector.broadcast %39 : vector<16x1xf32> to vector<16x16xf32>
    %41 = arith.subf %37, %40 : vector<16x16xf32>
    %42 = math.exp %41 : vector<16x16xf32>
    %cst_32 = arith.constant dense<0.000000e+00> : vector<16xf32>
    %43 = vector.multi_reduction <add>, %42, %cst_32 [1] : vector<16x16xf32> to vector<16xf32>
    %44 = vector.shape_cast %43 : vector<16xf32> to vector<16x1xf32>
    %45 = vector.broadcast %44 : vector<16x1xf32> to vector<16x16xf32>
    %46 = arith.divf %42, %45 : vector<16x16xf32>
    %cst_33 = arith.constant dense<0.000000e+00> : vector<16x32xf32>
    %47 = tpu.matmul %46, %32, %cst_33 {dimension_numbers = #tpu.dot_dimension_numbers<[1], [0], [0], [1], [0, 0, 1, 1], [], []>} : vector<16x16xf32>, vector<16x32xf32>, vector<16x32xf32> -> vector<16x32xf32>
    %c0_34 = arith.constant 0 : index
    %c144 = arith.constant 144 : index
    %c0_35 = arith.constant 0 : index
    %48 = vector.load %arg8[%c0_34, %c144, %c0_35] : memref<3x752x32xf32, #tpu.memory_space<vmem>>, vector<1x32x32xf32>
    %49 = vector.shape_cast %48 : vector<1x32x32xf32> to vector<32x32xf32>
    %c0_36 = arith.constant 0 : index
    %c176 = arith.constant 176 : index
    %c0_37 = arith.constant 0 : index
    %50 = vector.load %arg8[%c0_36, %c176, %c0_37] : memref<3x752x32xf32, #tpu.memory_space<vmem>>, vector<1x1x32xf32>
    %51 = vector.shape_cast %50 : vector<1x1x32xf32> to vector<1x32xf32>
    %cst_38 = arith.constant dense<0.000000e+00> : vector<16x32xf32>
    %52 = tpu.matmul %47, %49, %cst_38 {dimension_numbers = #tpu.dot_dimension_numbers<[1], [0], [0], [1], [0, 0, 1, 1], [], []>} : vector<16x32xf32>, vector<32x32xf32>, vector<16x32xf32> -> vector<16x32xf32>
    %53 = vector.broadcast %51 : vector<1x32xf32> to vector<16x32xf32>
    %54 = arith.addf %52, %53 : vector<16x32xf32>
    %55 = arith.addf %11, %54 : vector<16x32xf32>
    %c0_39 = arith.constant 0 : index
    %c672 = arith.constant 672 : index
    %c0_40 = arith.constant 0 : index
    %56 = vector.load %arg8[%c0_39, %c672, %c0_40] : memref<3x752x32xf32, #tpu.memory_space<vmem>>, vector<1x1x32xf32>
    %57 = vector.shape_cast %56 : vector<1x1x32xf32> to vector<1x32xf32>
    %c0_41 = arith.constant 0 : index
    %c680 = arith.constant 680 : index
    %c0_42 = arith.constant 0 : index
    %58 = vector.load %arg8[%c0_41, %c680, %c0_42] : memref<3x752x32xf32, #tpu.memory_space<vmem>>, vector<1x1x32xf32>
    %59 = vector.shape_cast %58 : vector<1x1x32xf32> to vector<1x32xf32>
    %cst_43 = arith.constant dense<0.000000e+00> : vector<16xf32>
    %60 = vector.multi_reduction <add>, %55, %cst_43 [1] : vector<16x32xf32> to vector<16xf32>
    %61 = vector.shape_cast %60 : vector<16xf32> to vector<16x1xf32>
    %cst_44 = arith.constant 3.200000e+01 : f32
    %62 = vector.broadcast %cst_44 : f32 to vector<16x1xf32>
    %63 = arith.divf %61, %62 : vector<16x1xf32>
    %64 = vector.broadcast %63 : vector<16x1xf32> to vector<16x32xf32>
    %65 = arith.subf %55, %64 : vector<16x32xf32>
    %66 = arith.mulf %65, %65 : vector<16x32xf32>
    %cst_45 = arith.constant dense<0.000000e+00> : vector<16xf32>
    %67 = vector.multi_reduction <add>, %66, %cst_45 [1] : vector<16x32xf32> to vector<16xf32>
    %68 = vector.shape_cast %67 : vector<16xf32> to vector<16x1xf32>
    %cst_46 = arith.constant 3.200000e+01 : f32
    %69 = vector.broadcast %cst_46 : f32 to vector<16x1xf32>
    %70 = arith.divf %68, %69 : vector<16x1xf32>
    %71 = vector.broadcast %63 : vector<16x1xf32> to vector<16x32xf32>
    %72 = arith.subf %55, %71 : vector<16x32xf32>
    %cst_47 = arith.constant 9.99999974E-6 : f32
    %73 = vector.broadcast %cst_47 : f32 to vector<16x1xf32>
    %74 = arith.addf %70, %73 : vector<16x1xf32>
    %75 = math.rsqrt %74 : vector<16x1xf32>
    %76 = vector.broadcast %75 : vector<16x1xf32> to vector<16x32xf32>
    %77 = arith.mulf %72, %76 : vector<16x32xf32>
    %78 = vector.broadcast %57 : vector<1x32xf32> to vector<16x32xf32>
    %79 = arith.mulf %77, %78 : vector<16x32xf32>
    %80 = vector.broadcast %59 : vector<1x32xf32> to vector<16x32xf32>
    %81 = arith.addf %79, %80 : vector<16x32xf32>
    %c0_48 = arith.constant 0 : index
    %c0_49 = arith.constant 0 : index
    %c0_50 = arith.constant 0 : index
    %82 = vector.load %arg9[%c0_48, %c0_49, %c0_50] : memref<3x80x64xf32, #tpu.memory_space<vmem>>, vector<1x32x64xf32>
    %83 = vector.shape_cast %82 : vector<1x32x64xf32> to vector<32x64xf32>
    %c0_51 = arith.constant 0 : index
    %c32 = arith.constant 32 : index
    %c0_52 = arith.constant 0 : index
    %84 = vector.load %arg9[%c0_51, %c32, %c0_52] : memref<3x80x64xf32, #tpu.memory_space<vmem>>, vector<1x1x64xf32>
    %85 = vector.shape_cast %84 : vector<1x1x64xf32> to vector<1x64xf32>
    %cst_53 = arith.constant dense<0.000000e+00> : vector<16x64xf32>
    %86 = tpu.matmul %81, %83, %cst_53 {dimension_numbers = #tpu.dot_dimension_numbers<[1], [0], [0], [1], [0, 0, 1, 1], [], []>} : vector<16x32xf32>, vector<32x64xf32>, vector<16x64xf32> -> vector<16x64xf32>
    %87 = vector.broadcast %85 : vector<1x64xf32> to vector<16x64xf32>
    %88 = arith.addf %86, %87 : vector<16x64xf32>
    %cst_54 = arith.constant 0.000000e+00 : f32
    %89 = vector.broadcast %cst_54 : f32 to vector<16x64xf32>
    %90 = arith.maximumf %88, %89 : vector<16x64xf32>
    %c0_55 = arith.constant 0 : index
    %c184 = arith.constant 184 : index
    %c0_56 = arith.constant 0 : index
    %91 = vector.load %arg8[%c0_55, %c184, %c0_56] : memref<3x752x32xf32, #tpu.memory_space<vmem>>, vector<1x64x32xf32>
    %92 = vector.shape_cast %91 : vector<1x64x32xf32> to vector<64x32xf32>
    %c0_57 = arith.constant 0 : index
    %c248 = arith.constant 248 : index
    %c0_58 = arith.constant 0 : index
    %93 = vector.load %arg8[%c0_57, %c248, %c0_58] : memref<3x752x32xf32, #tpu.memory_space<vmem>>, vector<1x1x32xf32>
    %94 = vector.shape_cast %93 : vector<1x1x32xf32> to vector<1x32xf32>
    %cst_59 = arith.constant dense<0.000000e+00> : vector<16x32xf32>
    %95 = tpu.matmul %90, %92, %cst_59 {dimension_numbers = #tpu.dot_dimension_numbers<[1], [0], [0], [1], [0, 0, 1, 1], [], []>} : vector<16x64xf32>, vector<64x32xf32>, vector<16x32xf32> -> vector<16x32xf32>
    %96 = vector.broadcast %94 : vector<1x32xf32> to vector<16x32xf32>
    %97 = arith.addf %95, %96 : vector<16x32xf32>
    %98 = arith.addf %81, %97 : vector<16x32xf32>
    %c0_60 = arith.constant 0 : index
    %c688 = arith.constant 688 : index
    %c0_61 = arith.constant 0 : index
    %99 = vector.load %arg8[%c0_60, %c688, %c0_61] : memref<3x752x32xf32, #tpu.memory_space<vmem>>, vector<1x1x32xf32>
    %100 = vector.shape_cast %99 : vector<1x1x32xf32> to vector<1x32xf32>
    %c0_62 = arith.constant 0 : index
    %c696 = arith.constant 696 : index
    %c0_63 = arith.constant 0 : index
    %101 = vector.load %arg8[%c0_62, %c696, %c0_63] : memref<3x752x32xf32, #tpu.memory_space<vmem>>, vector<1x1x32xf32>
    %102 = vector.shape_cast %101 : vector<1x1x32xf32> to vector<1x32xf32>
    %cst_64 = arith.constant dense<0.000000e+00> : vector<16xf32>
    %103 = vector.multi_reduction <add>, %98, %cst_64 [1] : vector<16x32xf32> to vector<16xf32>
    %104 = vector.shape_cast %103 : vector<16xf32> to vector<16x1xf32>
    %cst_65 = arith.constant 3.200000e+01 : f32
    %105 = vector.broadcast %cst_65 : f32 to vector<16x1xf32>
    %106 = arith.divf %104, %105 : vector<16x1xf32>
    %107 = vector.broadcast %106 : vector<16x1xf32> to vector<16x32xf32>
    %108 = arith.subf %98, %107 : vector<16x32xf32>
    %109 = arith.mulf %108, %108 : vector<16x32xf32>
    %cst_66 = arith.constant dense<0.000000e+00> : vector<16xf32>
    %110 = vector.multi_reduction <add>, %109, %cst_66 [1] : vector<16x32xf32> to vector<16xf32>
    %111 = vector.shape_cast %110 : vector<16xf32> to vector<16x1xf32>
    %cst_67 = arith.constant 3.200000e+01 : f32
    %112 = vector.broadcast %cst_67 : f32 to vector<16x1xf32>
    %113 = arith.divf %111, %112 : vector<16x1xf32>
    %114 = vector.broadcast %106 : vector<16x1xf32> to vector<16x32xf32>
    %115 = arith.subf %98, %114 : vector<16x32xf32>
    %cst_68 = arith.constant 9.99999974E-6 : f32
    %116 = vector.broadcast %cst_68 : f32 to vector<16x1xf32>
    %117 = arith.addf %113, %116 : vector<16x1xf32>
    %118 = math.rsqrt %117 : vector<16x1xf32>
    %119 = vector.broadcast %118 : vector<16x1xf32> to vector<16x32xf32>
    %120 = arith.mulf %115, %119 : vector<16x32xf32>
    %121 = vector.broadcast %100 : vector<1x32xf32> to vector<16x32xf32>
    %122 = arith.mulf %120, %121 : vector<16x32xf32>
    %123 = vector.broadcast %102 : vector<1x32xf32> to vector<16x32xf32>
    %124 = arith.addf %122, %123 : vector<16x32xf32>
    %c0_69 = arith.constant 0 : index
    %c256 = arith.constant 256 : index
    %c0_70 = arith.constant 0 : index
    %125 = vector.load %arg8[%c0_69, %c256, %c0_70] : memref<3x752x32xf32, #tpu.memory_space<vmem>>, vector<1x16x32xf32>
    %126 = vector.shape_cast %125 : vector<1x16x32xf32> to vector<16x32xf32>
    %c0_71 = arith.constant 0 : index
    %c272 = arith.constant 272 : index
    %c0_72 = arith.constant 0 : index
    %127 = vector.load %arg8[%c0_71, %c272, %c0_72] : memref<3x752x32xf32, #tpu.memory_space<vmem>>, vector<1x1x32xf32>
    %128 = vector.shape_cast %127 : vector<1x1x32xf32> to vector<1x32xf32>
    %cst_73 = arith.constant dense<0.000000e+00> : vector<12x32xf32>
    %129 = tpu.matmul %0, %126, %cst_73 {dimension_numbers = #tpu.dot_dimension_numbers<[1], [0], [0], [1], [0, 0, 1, 1], [], []>} : vector<12x16xf32>, vector<16x32xf32>, vector<12x32xf32> -> vector<12x32xf32>
    %130 = vector.broadcast %128 : vector<1x32xf32> to vector<12x32xf32>
    %131 = arith.addf %129, %130 : vector<12x32xf32>
    %c0_74 = arith.constant 0 : index
    %c0_75 = arith.constant 0 : index
    %132 = vector.load %arg4[%c0_74, %c0_75] : memref<12x32xf32, #tpu.memory_space<vmem>>, vector<12x32xf32>
    %133 = arith.addf %131, %132 : vector<12x32xf32>
    %c0_76 = arith.constant 0 : index
    %c280 = arith.constant 280 : index
    %c0_77 = arith.constant 0 : index
    %134 = vector.load %arg8[%c0_76, %c280, %c0_77] : memref<3x752x32xf32, #tpu.memory_space<vmem>>, vector<1x32x32xf32>
    %135 = vector.shape_cast %134 : vector<1x32x32xf32> to vector<32x32xf32>
    %c0_78 = arith.constant 0 : index
    %c312 = arith.constant 312 : index
    %c0_79 = arith.constant 0 : index
    %136 = vector.load %arg8[%c0_78, %c312, %c0_79] : memref<3x752x32xf32, #tpu.memory_space<vmem>>, vector<1x1x32xf32>
    %137 = vector.shape_cast %136 : vector<1x1x32xf32> to vector<1x32xf32>
    %cst_80 = arith.constant dense<0.000000e+00> : vector<12x32xf32>
    %138 = tpu.matmul %133, %135, %cst_80 {dimension_numbers = #tpu.dot_dimension_numbers<[1], [0], [0], [1], [0, 0, 1, 1], [], []>} : vector<12x32xf32>, vector<32x32xf32>, vector<12x32xf32> -> vector<12x32xf32>
    %139 = vector.broadcast %137 : vector<1x32xf32> to vector<12x32xf32>
    %140 = arith.addf %138, %139 : vector<12x32xf32>
    %c0_81 = arith.constant 0 : index
    %c320 = arith.constant 320 : index
    %c0_82 = arith.constant 0 : index
    %141 = vector.load %arg8[%c0_81, %c320, %c0_82] : memref<3x752x32xf32, #tpu.memory_space<vmem>>, vector<1x32x32xf32>
    %142 = vector.shape_cast %141 : vector<1x32x32xf32> to vector<32x32xf32>
    %c0_83 = arith.constant 0 : index
    %c352 = arith.constant 352 : index
    %c0_84 = arith.constant 0 : index
    %143 = vector.load %arg8[%c0_83, %c352, %c0_84] : memref<3x752x32xf32, #tpu.memory_space<vmem>>, vector<1x1x32xf32>
    %144 = vector.shape_cast %143 : vector<1x1x32xf32> to vector<1x32xf32>
    %cst_85 = arith.constant dense<0.000000e+00> : vector<12x32xf32>
    %145 = tpu.matmul %133, %142, %cst_85 {dimension_numbers = #tpu.dot_dimension_numbers<[1], [0], [0], [1], [0, 0, 1, 1], [], []>} : vector<12x32xf32>, vector<32x32xf32>, vector<12x32xf32> -> vector<12x32xf32>
    %146 = vector.broadcast %144 : vector<1x32xf32> to vector<12x32xf32>
    %147 = arith.addf %145, %146 : vector<12x32xf32>
    %c0_86 = arith.constant 0 : index
    %c360 = arith.constant 360 : index
    %c0_87 = arith.constant 0 : index
    %148 = vector.load %arg8[%c0_86, %c360, %c0_87] : memref<3x752x32xf32, #tpu.memory_space<vmem>>, vector<1x32x32xf32>
    %149 = vector.shape_cast %148 : vector<1x32x32xf32> to vector<32x32xf32>
    %c0_88 = arith.constant 0 : index
    %c392 = arith.constant 392 : index
    %c0_89 = arith.constant 0 : index
    %150 = vector.load %arg8[%c0_88, %c392, %c0_89] : memref<3x752x32xf32, #tpu.memory_space<vmem>>, vector<1x1x32xf32>
    %151 = vector.shape_cast %150 : vector<1x1x32xf32> to vector<1x32xf32>
    %cst_90 = arith.constant dense<0.000000e+00> : vector<12x32xf32>
    %152 = tpu.matmul %133, %149, %cst_90 {dimension_numbers = #tpu.dot_dimension_numbers<[1], [0], [0], [1], [0, 0, 1, 1], [], []>} : vector<12x32xf32>, vector<32x32xf32>, vector<12x32xf32> -> vector<12x32xf32>
    %153 = vector.broadcast %151 : vector<1x32xf32> to vector<12x32xf32>
    %154 = arith.addf %152, %153 : vector<12x32xf32>
    %c0_91 = arith.constant 0 : index
    %c0_92 = arith.constant 0 : index
    %155 = vector.load %arg6[%c0_91, %c0_92] : memref<12x12xf32, #tpu.memory_space<vmem>>, vector<12x12xf32>
    %cst_93 = arith.constant dense<0.000000e+00> : vector<12x12xf32>
    %156 = tpu.matmul %140, %147, %cst_93 {dimension_numbers = #tpu.dot_dimension_numbers<[1], [1], [0], [0], [0, 0, 1, 0], [], []>} : vector<12x32xf32>, vector<12x32xf32>, vector<12x12xf32> -> vector<12x12xf32>
    %cst_94 = arith.constant 0.176776692 : f32
    %157 = vector.broadcast %cst_94 : f32 to vector<12x12xf32>
    %158 = arith.mulf %156, %157 : vector<12x12xf32>
    %159 = arith.addf %158, %155 : vector<12x12xf32>
    %cst_95 = arith.constant dense<0xFF800000> : vector<12xf32>
    %160 = vector.multi_reduction <maximumf>, %159, %cst_95 [1] : vector<12x12xf32> to vector<12xf32>
    %161 = vector.shape_cast %160 : vector<12xf32> to vector<12x1xf32>
    %162 = vector.broadcast %161 : vector<12x1xf32> to vector<12x12xf32>
    %163 = arith.subf %159, %162 : vector<12x12xf32>
    %164 = math.exp %163 : vector<12x12xf32>
    %cst_96 = arith.constant dense<0.000000e+00> : vector<12xf32>
    %165 = vector.multi_reduction <add>, %164, %cst_96 [1] : vector<12x12xf32> to vector<12xf32>
    %166 = vector.shape_cast %165 : vector<12xf32> to vector<12x1xf32>
    %167 = vector.broadcast %166 : vector<12x1xf32> to vector<12x12xf32>
    %168 = arith.divf %164, %167 : vector<12x12xf32>
    %cst_97 = arith.constant dense<0.000000e+00> : vector<12x32xf32>
    %169 = tpu.matmul %168, %154, %cst_97 {dimension_numbers = #tpu.dot_dimension_numbers<[1], [0], [0], [1], [0, 0, 1, 1], [], []>} : vector<12x12xf32>, vector<12x32xf32>, vector<12x32xf32> -> vector<12x32xf32>
    %c0_98 = arith.constant 0 : index
    %c400 = arith.constant 400 : index
    %c0_99 = arith.constant 0 : index
    %170 = vector.load %arg8[%c0_98, %c400, %c0_99] : memref<3x752x32xf32, #tpu.memory_space<vmem>>, vector<1x32x32xf32>
    %171 = vector.shape_cast %170 : vector<1x32x32xf32> to vector<32x32xf32>
    %c0_100 = arith.constant 0 : index
    %c432 = arith.constant 432 : index
    %c0_101 = arith.constant 0 : index
    %172 = vector.load %arg8[%c0_100, %c432, %c0_101] : memref<3x752x32xf32, #tpu.memory_space<vmem>>, vector<1x1x32xf32>
    %173 = vector.shape_cast %172 : vector<1x1x32xf32> to vector<1x32xf32>
    %cst_102 = arith.constant dense<0.000000e+00> : vector<12x32xf32>
    %174 = tpu.matmul %169, %171, %cst_102 {dimension_numbers = #tpu.dot_dimension_numbers<[1], [0], [0], [1], [0, 0, 1, 1], [], []>} : vector<12x32xf32>, vector<32x32xf32>, vector<12x32xf32> -> vector<12x32xf32>
    %175 = vector.broadcast %173 : vector<1x32xf32> to vector<12x32xf32>
    %176 = arith.addf %174, %175 : vector<12x32xf32>
    %177 = arith.addf %133, %176 : vector<12x32xf32>
    %c0_103 = arith.constant 0 : index
    %c704 = arith.constant 704 : index
    %c0_104 = arith.constant 0 : index
    %178 = vector.load %arg8[%c0_103, %c704, %c0_104] : memref<3x752x32xf32, #tpu.memory_space<vmem>>, vector<1x1x32xf32>
    %179 = vector.shape_cast %178 : vector<1x1x32xf32> to vector<1x32xf32>
    %c0_105 = arith.constant 0 : index
    %c712 = arith.constant 712 : index
    %c0_106 = arith.constant 0 : index
    %180 = vector.load %arg8[%c0_105, %c712, %c0_106] : memref<3x752x32xf32, #tpu.memory_space<vmem>>, vector<1x1x32xf32>
    %181 = vector.shape_cast %180 : vector<1x1x32xf32> to vector<1x32xf32>
    %cst_107 = arith.constant dense<0.000000e+00> : vector<12xf32>
    %182 = vector.multi_reduction <add>, %177, %cst_107 [1] : vector<12x32xf32> to vector<12xf32>
    %183 = vector.shape_cast %182 : vector<12xf32> to vector<12x1xf32>
    %cst_108 = arith.constant 3.200000e+01 : f32
    %184 = vector.broadcast %cst_108 : f32 to vector<12x1xf32>
    %185 = arith.divf %183, %184 : vector<12x1xf32>
    %186 = vector.broadcast %185 : vector<12x1xf32> to vector<12x32xf32>
    %187 = arith.subf %177, %186 : vector<12x32xf32>
    %188 = arith.mulf %187, %187 : vector<12x32xf32>
    %cst_109 = arith.constant dense<0.000000e+00> : vector<12xf32>
    %189 = vector.multi_reduction <add>, %188, %cst_109 [1] : vector<12x32xf32> to vector<12xf32>
    %190 = vector.shape_cast %189 : vector<12xf32> to vector<12x1xf32>
    %cst_110 = arith.constant 3.200000e+01 : f32
    %191 = vector.broadcast %cst_110 : f32 to vector<12x1xf32>
    %192 = arith.divf %190, %191 : vector<12x1xf32>
    %193 = vector.broadcast %185 : vector<12x1xf32> to vector<12x32xf32>
    %194 = arith.subf %177, %193 : vector<12x32xf32>
    %cst_111 = arith.constant 9.99999974E-6 : f32
    %195 = vector.broadcast %cst_111 : f32 to vector<12x1xf32>
    %196 = arith.addf %192, %195 : vector<12x1xf32>
    %197 = math.rsqrt %196 : vector<12x1xf32>
    %198 = vector.broadcast %197 : vector<12x1xf32> to vector<12x32xf32>
    %199 = arith.mulf %194, %198 : vector<12x32xf32>
    %200 = vector.broadcast %179 : vector<1x32xf32> to vector<12x32xf32>
    %201 = arith.mulf %199, %200 : vector<12x32xf32>
    %202 = vector.broadcast %181 : vector<1x32xf32> to vector<12x32xf32>
    %203 = arith.addf %201, %202 : vector<12x32xf32>
    %c0_112 = arith.constant 0 : index
    %c440 = arith.constant 440 : index
    %c0_113 = arith.constant 0 : index
    %204 = vector.load %arg8[%c0_112, %c440, %c0_113] : memref<3x752x32xf32, #tpu.memory_space<vmem>>, vector<1x32x32xf32>
    %205 = vector.shape_cast %204 : vector<1x32x32xf32> to vector<32x32xf32>
    %c0_114 = arith.constant 0 : index
    %c472 = arith.constant 472 : index
    %c0_115 = arith.constant 0 : index
    %206 = vector.load %arg8[%c0_114, %c472, %c0_115] : memref<3x752x32xf32, #tpu.memory_space<vmem>>, vector<1x1x32xf32>
    %207 = vector.shape_cast %206 : vector<1x1x32xf32> to vector<1x32xf32>
    %cst_116 = arith.constant dense<0.000000e+00> : vector<12x32xf32>
    %208 = tpu.matmul %203, %205, %cst_116 {dimension_numbers = #tpu.dot_dimension_numbers<[1], [0], [0], [1], [0, 0, 1, 1], [], []>} : vector<12x32xf32>, vector<32x32xf32>, vector<12x32xf32> -> vector<12x32xf32>
    %209 = vector.broadcast %207 : vector<1x32xf32> to vector<12x32xf32>
    %210 = arith.addf %208, %209 : vector<12x32xf32>
    %c0_117 = arith.constant 0 : index
    %c480 = arith.constant 480 : index
    %c0_118 = arith.constant 0 : index
    %211 = vector.load %arg8[%c0_117, %c480, %c0_118] : memref<3x752x32xf32, #tpu.memory_space<vmem>>, vector<1x32x32xf32>
    %212 = vector.shape_cast %211 : vector<1x32x32xf32> to vector<32x32xf32>
    %c0_119 = arith.constant 0 : index
    %c512 = arith.constant 512 : index
    %c0_120 = arith.constant 0 : index
    %213 = vector.load %arg8[%c0_119, %c512, %c0_120] : memref<3x752x32xf32, #tpu.memory_space<vmem>>, vector<1x1x32xf32>
    %214 = vector.shape_cast %213 : vector<1x1x32xf32> to vector<1x32xf32>
    %cst_121 = arith.constant dense<0.000000e+00> : vector<16x32xf32>
    %215 = tpu.matmul %124, %212, %cst_121 {dimension_numbers = #tpu.dot_dimension_numbers<[1], [0], [0], [1], [0, 0, 1, 1], [], []>} : vector<16x32xf32>, vector<32x32xf32>, vector<16x32xf32> -> vector<16x32xf32>
    %216 = vector.broadcast %214 : vector<1x32xf32> to vector<16x32xf32>
    %217 = arith.addf %215, %216 : vector<16x32xf32>
    %c0_122 = arith.constant 0 : index
    %c520 = arith.constant 520 : index
    %c0_123 = arith.constant 0 : index
    %218 = vector.load %arg8[%c0_122, %c520, %c0_123] : memref<3x752x32xf32, #tpu.memory_space<vmem>>, vector<1x32x32xf32>
    %219 = vector.shape_cast %218 : vector<1x32x32xf32> to vector<32x32xf32>
    %c0_124 = arith.constant 0 : index
    %c552 = arith.constant 552 : index
    %c0_125 = arith.constant 0 : index
    %220 = vector.load %arg8[%c0_124, %c552, %c0_125] : memref<3x752x32xf32, #tpu.memory_space<vmem>>, vector<1x1x32xf32>
    %221 = vector.shape_cast %220 : vector<1x1x32xf32> to vector<1x32xf32>
    %cst_126 = arith.constant dense<0.000000e+00> : vector<16x32xf32>
    %222 = tpu.matmul %124, %219, %cst_126 {dimension_numbers = #tpu.dot_dimension_numbers<[1], [0], [0], [1], [0, 0, 1, 1], [], []>} : vector<16x32xf32>, vector<32x32xf32>, vector<16x32xf32> -> vector<16x32xf32>
    %223 = vector.broadcast %221 : vector<1x32xf32> to vector<16x32xf32>
    %224 = arith.addf %222, %223 : vector<16x32xf32>
    %c0_127 = arith.constant 0 : index
    %c0_128 = arith.constant 0 : index
    %225 = vector.load %arg7[%c0_127, %c0_128] : memref<12x16xf32, #tpu.memory_space<vmem>>, vector<12x16xf32>
    %cst_129 = arith.constant dense<0.000000e+00> : vector<12x16xf32>
    %226 = tpu.matmul %210, %217, %cst_129 {dimension_numbers = #tpu.dot_dimension_numbers<[1], [1], [0], [0], [0, 0, 1, 0], [], []>} : vector<12x32xf32>, vector<16x32xf32>, vector<12x16xf32> -> vector<12x16xf32>
    %cst_130 = arith.constant 0.176776692 : f32
    %227 = vector.broadcast %cst_130 : f32 to vector<12x16xf32>
    %228 = arith.mulf %226, %227 : vector<12x16xf32>
    %229 = arith.addf %228, %225 : vector<12x16xf32>
    %cst_131 = arith.constant dense<0xFF800000> : vector<12xf32>
    %230 = vector.multi_reduction <maximumf>, %229, %cst_131 [1] : vector<12x16xf32> to vector<12xf32>
    %231 = vector.shape_cast %230 : vector<12xf32> to vector<12x1xf32>
    %232 = vector.broadcast %231 : vector<12x1xf32> to vector<12x16xf32>
    %233 = arith.subf %229, %232 : vector<12x16xf32>
    %234 = math.exp %233 : vector<12x16xf32>
    %cst_132 = arith.constant dense<0.000000e+00> : vector<12xf32>
    %235 = vector.multi_reduction <add>, %234, %cst_132 [1] : vector<12x16xf32> to vector<12xf32>
    %236 = vector.shape_cast %235 : vector<12xf32> to vector<12x1xf32>
    %237 = vector.broadcast %236 : vector<12x1xf32> to vector<12x16xf32>
    %238 = arith.divf %234, %237 : vector<12x16xf32>
    %cst_133 = arith.constant dense<0.000000e+00> : vector<12x32xf32>
    %239 = tpu.matmul %238, %224, %cst_133 {dimension_numbers = #tpu.dot_dimension_numbers<[1], [0], [0], [1], [0, 0, 1, 1], [], []>} : vector<12x16xf32>, vector<16x32xf32>, vector<12x32xf32> -> vector<12x32xf32>
    %c0_134 = arith.constant 0 : index
    %c560 = arith.constant 560 : index
    %c0_135 = arith.constant 0 : index
    %240 = vector.load %arg8[%c0_134, %c560, %c0_135] : memref<3x752x32xf32, #tpu.memory_space<vmem>>, vector<1x32x32xf32>
    %241 = vector.shape_cast %240 : vector<1x32x32xf32> to vector<32x32xf32>
    %c0_136 = arith.constant 0 : index
    %c592 = arith.constant 592 : index
    %c0_137 = arith.constant 0 : index
    %242 = vector.load %arg8[%c0_136, %c592, %c0_137] : memref<3x752x32xf32, #tpu.memory_space<vmem>>, vector<1x1x32xf32>
    %243 = vector.shape_cast %242 : vector<1x1x32xf32> to vector<1x32xf32>
    %cst_138 = arith.constant dense<0.000000e+00> : vector<12x32xf32>
    %244 = tpu.matmul %239, %241, %cst_138 {dimension_numbers = #tpu.dot_dimension_numbers<[1], [0], [0], [1], [0, 0, 1, 1], [], []>} : vector<12x32xf32>, vector<32x32xf32>, vector<12x32xf32> -> vector<12x32xf32>
    %245 = vector.broadcast %243 : vector<1x32xf32> to vector<12x32xf32>
    %246 = arith.addf %244, %245 : vector<12x32xf32>
    %247 = arith.addf %203, %246 : vector<12x32xf32>
    %c0_139 = arith.constant 0 : index
    %c720 = arith.constant 720 : index
    %c0_140 = arith.constant 0 : index
    %248 = vector.load %arg8[%c0_139, %c720, %c0_140] : memref<3x752x32xf32, #tpu.memory_space<vmem>>, vector<1x1x32xf32>
    %249 = vector.shape_cast %248 : vector<1x1x32xf32> to vector<1x32xf32>
    %c0_141 = arith.constant 0 : index
    %c728 = arith.constant 728 : index
    %c0_142 = arith.constant 0 : index
    %250 = vector.load %arg8[%c0_141, %c728, %c0_142] : memref<3x752x32xf32, #tpu.memory_space<vmem>>, vector<1x1x32xf32>
    %251 = vector.shape_cast %250 : vector<1x1x32xf32> to vector<1x32xf32>
    %cst_143 = arith.constant dense<0.000000e+00> : vector<12xf32>
    %252 = vector.multi_reduction <add>, %247, %cst_143 [1] : vector<12x32xf32> to vector<12xf32>
    %253 = vector.shape_cast %252 : vector<12xf32> to vector<12x1xf32>
    %cst_144 = arith.constant 3.200000e+01 : f32
    %254 = vector.broadcast %cst_144 : f32 to vector<12x1xf32>
    %255 = arith.divf %253, %254 : vector<12x1xf32>
    %256 = vector.broadcast %255 : vector<12x1xf32> to vector<12x32xf32>
    %257 = arith.subf %247, %256 : vector<12x32xf32>
    %258 = arith.mulf %257, %257 : vector<12x32xf32>
    %cst_145 = arith.constant dense<0.000000e+00> : vector<12xf32>
    %259 = vector.multi_reduction <add>, %258, %cst_145 [1] : vector<12x32xf32> to vector<12xf32>
    %260 = vector.shape_cast %259 : vector<12xf32> to vector<12x1xf32>
    %cst_146 = arith.constant 3.200000e+01 : f32
    %261 = vector.broadcast %cst_146 : f32 to vector<12x1xf32>
    %262 = arith.divf %260, %261 : vector<12x1xf32>
    %263 = vector.broadcast %255 : vector<12x1xf32> to vector<12x32xf32>
    %264 = arith.subf %247, %263 : vector<12x32xf32>
    %cst_147 = arith.constant 9.99999974E-6 : f32
    %265 = vector.broadcast %cst_147 : f32 to vector<12x1xf32>
    %266 = arith.addf %262, %265 : vector<12x1xf32>
    %267 = math.rsqrt %266 : vector<12x1xf32>
    %268 = vector.broadcast %267 : vector<12x1xf32> to vector<12x32xf32>
    %269 = arith.mulf %264, %268 : vector<12x32xf32>
    %270 = vector.broadcast %249 : vector<1x32xf32> to vector<12x32xf32>
    %271 = arith.mulf %269, %270 : vector<12x32xf32>
    %272 = vector.broadcast %251 : vector<1x32xf32> to vector<12x32xf32>
    %273 = arith.addf %271, %272 : vector<12x32xf32>
    %c0_148 = arith.constant 0 : index
    %c40 = arith.constant 40 : index
    %c0_149 = arith.constant 0 : index
    %274 = vector.load %arg9[%c0_148, %c40, %c0_149] : memref<3x80x64xf32, #tpu.memory_space<vmem>>, vector<1x32x64xf32>
    %275 = vector.shape_cast %274 : vector<1x32x64xf32> to vector<32x64xf32>
    %c0_150 = arith.constant 0 : index
    %c72 = arith.constant 72 : index
    %c0_151 = arith.constant 0 : index
    %276 = vector.load %arg9[%c0_150, %c72, %c0_151] : memref<3x80x64xf32, #tpu.memory_space<vmem>>, vector<1x1x64xf32>
    %277 = vector.shape_cast %276 : vector<1x1x64xf32> to vector<1x64xf32>
    %cst_152 = arith.constant dense<0.000000e+00> : vector<12x64xf32>
    %278 = tpu.matmul %273, %275, %cst_152 {dimension_numbers = #tpu.dot_dimension_numbers<[1], [0], [0], [1], [0, 0, 1, 1], [], []>} : vector<12x32xf32>, vector<32x64xf32>, vector<12x64xf32> -> vector<12x64xf32>
    %279 = vector.broadcast %277 : vector<1x64xf32> to vector<12x64xf32>
    %280 = arith.addf %278, %279 : vector<12x64xf32>
    %cst_153 = arith.constant 0.000000e+00 : f32
    %281 = vector.broadcast %cst_153 : f32 to vector<12x64xf32>
    %282 = arith.maximumf %280, %281 : vector<12x64xf32>
    %c0_154 = arith.constant 0 : index
    %c600 = arith.constant 600 : index
    %c0_155 = arith.constant 0 : index
    %283 = vector.load %arg8[%c0_154, %c600, %c0_155] : memref<3x752x32xf32, #tpu.memory_space<vmem>>, vector<1x64x32xf32>
    %284 = vector.shape_cast %283 : vector<1x64x32xf32> to vector<64x32xf32>
    %c0_156 = arith.constant 0 : index
    %c664 = arith.constant 664 : index
    %c0_157 = arith.constant 0 : index
    %285 = vector.load %arg8[%c0_156, %c664, %c0_157] : memref<3x752x32xf32, #tpu.memory_space<vmem>>, vector<1x1x32xf32>
    %286 = vector.shape_cast %285 : vector<1x1x32xf32> to vector<1x32xf32>
    %cst_158 = arith.constant dense<0.000000e+00> : vector<12x32xf32>
    %287 = tpu.matmul %282, %284, %cst_158 {dimension_numbers = #tpu.dot_dimension_numbers<[1], [0], [0], [1], [0, 0, 1, 1], [], []>} : vector<12x64xf32>, vector<64x32xf32>, vector<12x32xf32> -> vector<12x32xf32>
    %288 = vector.broadcast %286 : vector<1x32xf32> to vector<12x32xf32>
    %289 = arith.addf %287, %288 : vector<12x32xf32>
    %290 = arith.addf %273, %289 : vector<12x32xf32>
    %c0_159 = arith.constant 0 : index
    %c736 = arith.constant 736 : index
    %c0_160 = arith.constant 0 : index
    %291 = vector.load %arg8[%c0_159, %c736, %c0_160] : memref<3x752x32xf32, #tpu.memory_space<vmem>>, vector<1x1x32xf32>
    %292 = vector.shape_cast %291 : vector<1x1x32xf32> to vector<1x32xf32>
    %c0_161 = arith.constant 0 : index
    %c744 = arith.constant 744 : index
    %c0_162 = arith.constant 0 : index
    %293 = vector.load %arg8[%c0_161, %c744, %c0_162] : memref<3x752x32xf32, #tpu.memory_space<vmem>>, vector<1x1x32xf32>
    %294 = vector.shape_cast %293 : vector<1x1x32xf32> to vector<1x32xf32>
    %cst_163 = arith.constant dense<0.000000e+00> : vector<12xf32>
    %295 = vector.multi_reduction <add>, %290, %cst_163 [1] : vector<12x32xf32> to vector<12xf32>
    %296 = vector.shape_cast %295 : vector<12xf32> to vector<12x1xf32>
    %cst_164 = arith.constant 3.200000e+01 : f32
    %297 = vector.broadcast %cst_164 : f32 to vector<12x1xf32>
    %298 = arith.divf %296, %297 : vector<12x1xf32>
    %299 = vector.broadcast %298 : vector<12x1xf32> to vector<12x32xf32>
    %300 = arith.subf %290, %299 : vector<12x32xf32>
    %301 = arith.mulf %300, %300 : vector<12x32xf32>
    %cst_165 = arith.constant dense<0.000000e+00> : vector<12xf32>
    %302 = vector.multi_reduction <add>, %301, %cst_165 [1] : vector<12x32xf32> to vector<12xf32>
    %303 = vector.shape_cast %302 : vector<12xf32> to vector<12x1xf32>
    %cst_166 = arith.constant 3.200000e+01 : f32
    %304 = vector.broadcast %cst_166 : f32 to vector<12x1xf32>
    %305 = arith.divf %303, %304 : vector<12x1xf32>
    %306 = vector.broadcast %298 : vector<12x1xf32> to vector<12x32xf32>
    %307 = arith.subf %290, %306 : vector<12x32xf32>
    %cst_167 = arith.constant 9.99999974E-6 : f32
    %308 = vector.broadcast %cst_167 : f32 to vector<12x1xf32>
    %309 = arith.addf %305, %308 : vector<12x1xf32>
    %310 = math.rsqrt %309 : vector<12x1xf32>
    %311 = vector.broadcast %310 : vector<12x1xf32> to vector<12x32xf32>
    %312 = arith.mulf %307, %311 : vector<12x32xf32>
    %313 = vector.broadcast %292 : vector<1x32xf32> to vector<12x32xf32>
    %314 = arith.mulf %312, %313 : vector<12x32xf32>
    %315 = vector.broadcast %294 : vector<1x32xf32> to vector<12x32xf32>
    %316 = arith.addf %314, %315 : vector<12x32xf32>
    %c0_168 = arith.constant 0 : index
    %c0_169 = arith.constant 0 : index
    %c0_170 = arith.constant 0 : index
    %317 = vector.load %arg10[%c0_168, %c0_169, %c0_170] : memref<3x40x128xf32, #tpu.memory_space<vmem>>, vector<1x32x128xf32>
    %318 = vector.shape_cast %317 : vector<1x32x128xf32> to vector<32x128xf32>
    %c0_171 = arith.constant 0 : index
    %c32_172 = arith.constant 32 : index
    %c0_173 = arith.constant 0 : index
    %319 = vector.load %arg10[%c0_171, %c32_172, %c0_173] : memref<3x40x128xf32, #tpu.memory_space<vmem>>, vector<1x1x128xf32>
    %320 = vector.shape_cast %319 : vector<1x1x128xf32> to vector<1x128xf32>
    %cst_174 = arith.constant dense<0.000000e+00> : vector<12x128xf32>
    %321 = tpu.matmul %316, %318, %cst_174 {dimension_numbers = #tpu.dot_dimension_numbers<[1], [0], [0], [1], [0, 0, 1, 1], [], []>} : vector<12x32xf32>, vector<32x128xf32>, vector<12x128xf32> -> vector<12x128xf32>
    %322 = vector.broadcast %320 : vector<1x128xf32> to vector<12x128xf32>
    %323 = arith.addf %321, %322 : vector<12x128xf32>
    %c0_175 = arith.constant 0 : index
    %c0_176 = arith.constant 0 : index
    %324 = vector.load %arg0[%c0_175, %c0_176] : memref<16x16xf32, #tpu.memory_space<vmem>>, vector<16x16xf32>
    %c1 = arith.constant 1 : index
    %c0_177 = arith.constant 0 : index
    %c0_178 = arith.constant 0 : index
    %325 = vector.load %arg8[%c1, %c0_177, %c0_178] : memref<3x752x32xf32, #tpu.memory_space<vmem>>, vector<1x16x32xf32>
    %326 = vector.shape_cast %325 : vector<1x16x32xf32> to vector<16x32xf32>
    %c1_179 = arith.constant 1 : index
    %c16_180 = arith.constant 16 : index
    %c0_181 = arith.constant 0 : index
    %327 = vector.load %arg8[%c1_179, %c16_180, %c0_181] : memref<3x752x32xf32, #tpu.memory_space<vmem>>, vector<1x1x32xf32>
    %328 = vector.shape_cast %327 : vector<1x1x32xf32> to vector<1x32xf32>
    %cst_182 = arith.constant dense<0.000000e+00> : vector<16x32xf32>
    %329 = tpu.matmul %324, %326, %cst_182 {dimension_numbers = #tpu.dot_dimension_numbers<[1], [0], [0], [1], [0, 0, 1, 1], [], []>} : vector<16x16xf32>, vector<16x32xf32>, vector<16x32xf32> -> vector<16x32xf32>
    %330 = vector.broadcast %328 : vector<1x32xf32> to vector<16x32xf32>
    %331 = arith.addf %329, %330 : vector<16x32xf32>
    %c0_183 = arith.constant 0 : index
    %c0_184 = arith.constant 0 : index
    %332 = vector.load %arg3[%c0_183, %c0_184] : memref<16x32xf32, #tpu.memory_space<vmem>>, vector<16x32xf32>
    %333 = arith.addf %331, %332 : vector<16x32xf32>
    %c1_185 = arith.constant 1 : index
    %c24_186 = arith.constant 24 : index
    %c0_187 = arith.constant 0 : index
    %334 = vector.load %arg8[%c1_185, %c24_186, %c0_187] : memref<3x752x32xf32, #tpu.memory_space<vmem>>, vector<1x32x32xf32>
    %335 = vector.shape_cast %334 : vector<1x32x32xf32> to vector<32x32xf32>
    %c1_188 = arith.constant 1 : index
    %c56_189 = arith.constant 56 : index
    %c0_190 = arith.constant 0 : index
    %336 = vector.load %arg8[%c1_188, %c56_189, %c0_190] : memref<3x752x32xf32, #tpu.memory_space<vmem>>, vector<1x1x32xf32>
    %337 = vector.shape_cast %336 : vector<1x1x32xf32> to vector<1x32xf32>
    %cst_191 = arith.constant dense<0.000000e+00> : vector<16x32xf32>
    %338 = tpu.matmul %333, %335, %cst_191 {dimension_numbers = #tpu.dot_dimension_numbers<[1], [0], [0], [1], [0, 0, 1, 1], [], []>} : vector<16x32xf32>, vector<32x32xf32>, vector<16x32xf32> -> vector<16x32xf32>
    %339 = vector.broadcast %337 : vector<1x32xf32> to vector<16x32xf32>
    %340 = arith.addf %338, %339 : vector<16x32xf32>
    %c1_192 = arith.constant 1 : index
    %c64_193 = arith.constant 64 : index
    %c0_194 = arith.constant 0 : index
    %341 = vector.load %arg8[%c1_192, %c64_193, %c0_194] : memref<3x752x32xf32, #tpu.memory_space<vmem>>, vector<1x32x32xf32>
    %342 = vector.shape_cast %341 : vector<1x32x32xf32> to vector<32x32xf32>
    %c1_195 = arith.constant 1 : index
    %c96_196 = arith.constant 96 : index
    %c0_197 = arith.constant 0 : index
    %343 = vector.load %arg8[%c1_195, %c96_196, %c0_197] : memref<3x752x32xf32, #tpu.memory_space<vmem>>, vector<1x1x32xf32>
    %344 = vector.shape_cast %343 : vector<1x1x32xf32> to vector<1x32xf32>
    %cst_198 = arith.constant dense<0.000000e+00> : vector<16x32xf32>
    %345 = tpu.matmul %333, %342, %cst_198 {dimension_numbers = #tpu.dot_dimension_numbers<[1], [0], [0], [1], [0, 0, 1, 1], [], []>} : vector<16x32xf32>, vector<32x32xf32>, vector<16x32xf32> -> vector<16x32xf32>
    %346 = vector.broadcast %344 : vector<1x32xf32> to vector<16x32xf32>
    %347 = arith.addf %345, %346 : vector<16x32xf32>
    %c1_199 = arith.constant 1 : index
    %c104_200 = arith.constant 104 : index
    %c0_201 = arith.constant 0 : index
    %348 = vector.load %arg8[%c1_199, %c104_200, %c0_201] : memref<3x752x32xf32, #tpu.memory_space<vmem>>, vector<1x32x32xf32>
    %349 = vector.shape_cast %348 : vector<1x32x32xf32> to vector<32x32xf32>
    %c1_202 = arith.constant 1 : index
    %c136_203 = arith.constant 136 : index
    %c0_204 = arith.constant 0 : index
    %350 = vector.load %arg8[%c1_202, %c136_203, %c0_204] : memref<3x752x32xf32, #tpu.memory_space<vmem>>, vector<1x1x32xf32>
    %351 = vector.shape_cast %350 : vector<1x1x32xf32> to vector<1x32xf32>
    %cst_205 = arith.constant dense<0.000000e+00> : vector<16x32xf32>
    %352 = tpu.matmul %333, %349, %cst_205 {dimension_numbers = #tpu.dot_dimension_numbers<[1], [0], [0], [1], [0, 0, 1, 1], [], []>} : vector<16x32xf32>, vector<32x32xf32>, vector<16x32xf32> -> vector<16x32xf32>
    %353 = vector.broadcast %351 : vector<1x32xf32> to vector<16x32xf32>
    %354 = arith.addf %352, %353 : vector<16x32xf32>
    %c0_206 = arith.constant 0 : index
    %c0_207 = arith.constant 0 : index
    %355 = vector.load %arg5[%c0_206, %c0_207] : memref<16x16xf32, #tpu.memory_space<vmem>>, vector<16x16xf32>
    %cst_208 = arith.constant dense<0.000000e+00> : vector<16x16xf32>
    %356 = tpu.matmul %340, %347, %cst_208 {dimension_numbers = #tpu.dot_dimension_numbers<[1], [1], [0], [0], [0, 0, 1, 0], [], []>} : vector<16x32xf32>, vector<16x32xf32>, vector<16x16xf32> -> vector<16x16xf32>
    %cst_209 = arith.constant 0.176776692 : f32
    %357 = vector.broadcast %cst_209 : f32 to vector<16x16xf32>
    %358 = arith.mulf %356, %357 : vector<16x16xf32>
    %359 = arith.addf %358, %355 : vector<16x16xf32>
    %cst_210 = arith.constant dense<0xFF800000> : vector<16xf32>
    %360 = vector.multi_reduction <maximumf>, %359, %cst_210 [1] : vector<16x16xf32> to vector<16xf32>
    %361 = vector.shape_cast %360 : vector<16xf32> to vector<16x1xf32>
    %362 = vector.broadcast %361 : vector<16x1xf32> to vector<16x16xf32>
    %363 = arith.subf %359, %362 : vector<16x16xf32>
    %364 = math.exp %363 : vector<16x16xf32>
    %cst_211 = arith.constant dense<0.000000e+00> : vector<16xf32>
    %365 = vector.multi_reduction <add>, %364, %cst_211 [1] : vector<16x16xf32> to vector<16xf32>
    %366 = vector.shape_cast %365 : vector<16xf32> to vector<16x1xf32>
    %367 = vector.broadcast %366 : vector<16x1xf32> to vector<16x16xf32>
    %368 = arith.divf %364, %367 : vector<16x16xf32>
    %cst_212 = arith.constant dense<0.000000e+00> : vector<16x32xf32>
    %369 = tpu.matmul %368, %354, %cst_212 {dimension_numbers = #tpu.dot_dimension_numbers<[1], [0], [0], [1], [0, 0, 1, 1], [], []>} : vector<16x16xf32>, vector<16x32xf32>, vector<16x32xf32> -> vector<16x32xf32>
    %c1_213 = arith.constant 1 : index
    %c144_214 = arith.constant 144 : index
    %c0_215 = arith.constant 0 : index
    %370 = vector.load %arg8[%c1_213, %c144_214, %c0_215] : memref<3x752x32xf32, #tpu.memory_space<vmem>>, vector<1x32x32xf32>
    %371 = vector.shape_cast %370 : vector<1x32x32xf32> to vector<32x32xf32>
    %c1_216 = arith.constant 1 : index
    %c176_217 = arith.constant 176 : index
    %c0_218 = arith.constant 0 : index
    %372 = vector.load %arg8[%c1_216, %c176_217, %c0_218] : memref<3x752x32xf32, #tpu.memory_space<vmem>>, vector<1x1x32xf32>
    %373 = vector.shape_cast %372 : vector<1x1x32xf32> to vector<1x32xf32>
    %cst_219 = arith.constant dense<0.000000e+00> : vector<16x32xf32>
    %374 = tpu.matmul %369, %371, %cst_219 {dimension_numbers = #tpu.dot_dimension_numbers<[1], [0], [0], [1], [0, 0, 1, 1], [], []>} : vector<16x32xf32>, vector<32x32xf32>, vector<16x32xf32> -> vector<16x32xf32>
    %375 = vector.broadcast %373 : vector<1x32xf32> to vector<16x32xf32>
    %376 = arith.addf %374, %375 : vector<16x32xf32>
    %377 = arith.addf %333, %376 : vector<16x32xf32>
    %c1_220 = arith.constant 1 : index
    %c672_221 = arith.constant 672 : index
    %c0_222 = arith.constant 0 : index
    %378 = vector.load %arg8[%c1_220, %c672_221, %c0_222] : memref<3x752x32xf32, #tpu.memory_space<vmem>>, vector<1x1x32xf32>
    %379 = vector.shape_cast %378 : vector<1x1x32xf32> to vector<1x32xf32>
    %c1_223 = arith.constant 1 : index
    %c680_224 = arith.constant 680 : index
    %c0_225 = arith.constant 0 : index
    %380 = vector.load %arg8[%c1_223, %c680_224, %c0_225] : memref<3x752x32xf32, #tpu.memory_space<vmem>>, vector<1x1x32xf32>
    %381 = vector.shape_cast %380 : vector<1x1x32xf32> to vector<1x32xf32>
    %cst_226 = arith.constant dense<0.000000e+00> : vector<16xf32>
    %382 = vector.multi_reduction <add>, %377, %cst_226 [1] : vector<16x32xf32> to vector<16xf32>
    %383 = vector.shape_cast %382 : vector<16xf32> to vector<16x1xf32>
    %cst_227 = arith.constant 3.200000e+01 : f32
    %384 = vector.broadcast %cst_227 : f32 to vector<16x1xf32>
    %385 = arith.divf %383, %384 : vector<16x1xf32>
    %386 = vector.broadcast %385 : vector<16x1xf32> to vector<16x32xf32>
    %387 = arith.subf %377, %386 : vector<16x32xf32>
    %388 = arith.mulf %387, %387 : vector<16x32xf32>
    %cst_228 = arith.constant dense<0.000000e+00> : vector<16xf32>
    %389 = vector.multi_reduction <add>, %388, %cst_228 [1] : vector<16x32xf32> to vector<16xf32>
    %390 = vector.shape_cast %389 : vector<16xf32> to vector<16x1xf32>
    %cst_229 = arith.constant 3.200000e+01 : f32
    %391 = vector.broadcast %cst_229 : f32 to vector<16x1xf32>
    %392 = arith.divf %390, %391 : vector<16x1xf32>
    %393 = vector.broadcast %385 : vector<16x1xf32> to vector<16x32xf32>
    %394 = arith.subf %377, %393 : vector<16x32xf32>
    %cst_230 = arith.constant 9.99999974E-6 : f32
    %395 = vector.broadcast %cst_230 : f32 to vector<16x1xf32>
    %396 = arith.addf %392, %395 : vector<16x1xf32>
    %397 = math.rsqrt %396 : vector<16x1xf32>
    %398 = vector.broadcast %397 : vector<16x1xf32> to vector<16x32xf32>
    %399 = arith.mulf %394, %398 : vector<16x32xf32>
    %400 = vector.broadcast %379 : vector<1x32xf32> to vector<16x32xf32>
    %401 = arith.mulf %399, %400 : vector<16x32xf32>
    %402 = vector.broadcast %381 : vector<1x32xf32> to vector<16x32xf32>
    %403 = arith.addf %401, %402 : vector<16x32xf32>
    %c1_231 = arith.constant 1 : index
    %c0_232 = arith.constant 0 : index
    %c0_233 = arith.constant 0 : index
    %404 = vector.load %arg9[%c1_231, %c0_232, %c0_233] : memref<3x80x64xf32, #tpu.memory_space<vmem>>, vector<1x32x64xf32>
    %405 = vector.shape_cast %404 : vector<1x32x64xf32> to vector<32x64xf32>
    %c1_234 = arith.constant 1 : index
    %c32_235 = arith.constant 32 : index
    %c0_236 = arith.constant 0 : index
    %406 = vector.load %arg9[%c1_234, %c32_235, %c0_236] : memref<3x80x64xf32, #tpu.memory_space<vmem>>, vector<1x1x64xf32>
    %407 = vector.shape_cast %406 : vector<1x1x64xf32> to vector<1x64xf32>
    %cst_237 = arith.constant dense<0.000000e+00> : vector<16x64xf32>
    %408 = tpu.matmul %403, %405, %cst_237 {dimension_numbers = #tpu.dot_dimension_numbers<[1], [0], [0], [1], [0, 0, 1, 1], [], []>} : vector<16x32xf32>, vector<32x64xf32>, vector<16x64xf32> -> vector<16x64xf32>
    %409 = vector.broadcast %407 : vector<1x64xf32> to vector<16x64xf32>
    %410 = arith.addf %408, %409 : vector<16x64xf32>
    %cst_238 = arith.constant 0.000000e+00 : f32
    %411 = vector.broadcast %cst_238 : f32 to vector<16x64xf32>
    %412 = arith.maximumf %410, %411 : vector<16x64xf32>
    %c1_239 = arith.constant 1 : index
    %c184_240 = arith.constant 184 : index
    %c0_241 = arith.constant 0 : index
    %413 = vector.load %arg8[%c1_239, %c184_240, %c0_241] : memref<3x752x32xf32, #tpu.memory_space<vmem>>, vector<1x64x32xf32>
    %414 = vector.shape_cast %413 : vector<1x64x32xf32> to vector<64x32xf32>
    %c1_242 = arith.constant 1 : index
    %c248_243 = arith.constant 248 : index
    %c0_244 = arith.constant 0 : index
    %415 = vector.load %arg8[%c1_242, %c248_243, %c0_244] : memref<3x752x32xf32, #tpu.memory_space<vmem>>, vector<1x1x32xf32>
    %416 = vector.shape_cast %415 : vector<1x1x32xf32> to vector<1x32xf32>
    %cst_245 = arith.constant dense<0.000000e+00> : vector<16x32xf32>
    %417 = tpu.matmul %412, %414, %cst_245 {dimension_numbers = #tpu.dot_dimension_numbers<[1], [0], [0], [1], [0, 0, 1, 1], [], []>} : vector<16x64xf32>, vector<64x32xf32>, vector<16x32xf32> -> vector<16x32xf32>
    %418 = vector.broadcast %416 : vector<1x32xf32> to vector<16x32xf32>
    %419 = arith.addf %417, %418 : vector<16x32xf32>
    %420 = arith.addf %403, %419 : vector<16x32xf32>
    %c1_246 = arith.constant 1 : index
    %c688_247 = arith.constant 688 : index
    %c0_248 = arith.constant 0 : index
    %421 = vector.load %arg8[%c1_246, %c688_247, %c0_248] : memref<3x752x32xf32, #tpu.memory_space<vmem>>, vector<1x1x32xf32>
    %422 = vector.shape_cast %421 : vector<1x1x32xf32> to vector<1x32xf32>
    %c1_249 = arith.constant 1 : index
    %c696_250 = arith.constant 696 : index
    %c0_251 = arith.constant 0 : index
    %423 = vector.load %arg8[%c1_249, %c696_250, %c0_251] : memref<3x752x32xf32, #tpu.memory_space<vmem>>, vector<1x1x32xf32>
    %424 = vector.shape_cast %423 : vector<1x1x32xf32> to vector<1x32xf32>
    %cst_252 = arith.constant dense<0.000000e+00> : vector<16xf32>
    %425 = vector.multi_reduction <add>, %420, %cst_252 [1] : vector<16x32xf32> to vector<16xf32>
    %426 = vector.shape_cast %425 : vector<16xf32> to vector<16x1xf32>
    %cst_253 = arith.constant 3.200000e+01 : f32
    %427 = vector.broadcast %cst_253 : f32 to vector<16x1xf32>
    %428 = arith.divf %426, %427 : vector<16x1xf32>
    %429 = vector.broadcast %428 : vector<16x1xf32> to vector<16x32xf32>
    %430 = arith.subf %420, %429 : vector<16x32xf32>
    %431 = arith.mulf %430, %430 : vector<16x32xf32>
    %cst_254 = arith.constant dense<0.000000e+00> : vector<16xf32>
    %432 = vector.multi_reduction <add>, %431, %cst_254 [1] : vector<16x32xf32> to vector<16xf32>
    %433 = vector.shape_cast %432 : vector<16xf32> to vector<16x1xf32>
    %cst_255 = arith.constant 3.200000e+01 : f32
    %434 = vector.broadcast %cst_255 : f32 to vector<16x1xf32>
    %435 = arith.divf %433, %434 : vector<16x1xf32>
    %436 = vector.broadcast %428 : vector<16x1xf32> to vector<16x32xf32>
    %437 = arith.subf %420, %436 : vector<16x32xf32>
    %cst_256 = arith.constant 9.99999974E-6 : f32
    %438 = vector.broadcast %cst_256 : f32 to vector<16x1xf32>
    %439 = arith.addf %435, %438 : vector<16x1xf32>
    %440 = math.rsqrt %439 : vector<16x1xf32>
    %441 = vector.broadcast %440 : vector<16x1xf32> to vector<16x32xf32>
    %442 = arith.mulf %437, %441 : vector<16x32xf32>
    %443 = vector.broadcast %422 : vector<1x32xf32> to vector<16x32xf32>
    %444 = arith.mulf %442, %443 : vector<16x32xf32>
    %445 = vector.broadcast %424 : vector<1x32xf32> to vector<16x32xf32>
    %446 = arith.addf %444, %445 : vector<16x32xf32>
    %c1_257 = arith.constant 1 : index
    %c256_258 = arith.constant 256 : index
    %c0_259 = arith.constant 0 : index
    %447 = vector.load %arg8[%c1_257, %c256_258, %c0_259] : memref<3x752x32xf32, #tpu.memory_space<vmem>>, vector<1x16x32xf32>
    %448 = vector.shape_cast %447 : vector<1x16x32xf32> to vector<16x32xf32>
    %c1_260 = arith.constant 1 : index
    %c272_261 = arith.constant 272 : index
    %c0_262 = arith.constant 0 : index
    %449 = vector.load %arg8[%c1_260, %c272_261, %c0_262] : memref<3x752x32xf32, #tpu.memory_space<vmem>>, vector<1x1x32xf32>
    %450 = vector.shape_cast %449 : vector<1x1x32xf32> to vector<1x32xf32>
    %cst_263 = arith.constant dense<0.000000e+00> : vector<12x32xf32>
    %451 = tpu.matmul %1, %448, %cst_263 {dimension_numbers = #tpu.dot_dimension_numbers<[1], [0], [0], [1], [0, 0, 1, 1], [], []>} : vector<12x16xf32>, vector<16x32xf32>, vector<12x32xf32> -> vector<12x32xf32>
    %452 = vector.broadcast %450 : vector<1x32xf32> to vector<12x32xf32>
    %453 = arith.addf %451, %452 : vector<12x32xf32>
    %c0_264 = arith.constant 0 : index
    %c0_265 = arith.constant 0 : index
    %454 = vector.load %arg4[%c0_264, %c0_265] : memref<12x32xf32, #tpu.memory_space<vmem>>, vector<12x32xf32>
    %455 = arith.addf %453, %454 : vector<12x32xf32>
    %c1_266 = arith.constant 1 : index
    %c280_267 = arith.constant 280 : index
    %c0_268 = arith.constant 0 : index
    %456 = vector.load %arg8[%c1_266, %c280_267, %c0_268] : memref<3x752x32xf32, #tpu.memory_space<vmem>>, vector<1x32x32xf32>
    %457 = vector.shape_cast %456 : vector<1x32x32xf32> to vector<32x32xf32>
    %c1_269 = arith.constant 1 : index
    %c312_270 = arith.constant 312 : index
    %c0_271 = arith.constant 0 : index
    %458 = vector.load %arg8[%c1_269, %c312_270, %c0_271] : memref<3x752x32xf32, #tpu.memory_space<vmem>>, vector<1x1x32xf32>
    %459 = vector.shape_cast %458 : vector<1x1x32xf32> to vector<1x32xf32>
    %cst_272 = arith.constant dense<0.000000e+00> : vector<12x32xf32>
    %460 = tpu.matmul %455, %457, %cst_272 {dimension_numbers = #tpu.dot_dimension_numbers<[1], [0], [0], [1], [0, 0, 1, 1], [], []>} : vector<12x32xf32>, vector<32x32xf32>, vector<12x32xf32> -> vector<12x32xf32>
    %461 = vector.broadcast %459 : vector<1x32xf32> to vector<12x32xf32>
    %462 = arith.addf %460, %461 : vector<12x32xf32>
    %c1_273 = arith.constant 1 : index
    %c320_274 = arith.constant 320 : index
    %c0_275 = arith.constant 0 : index
    %463 = vector.load %arg8[%c1_273, %c320_274, %c0_275] : memref<3x752x32xf32, #tpu.memory_space<vmem>>, vector<1x32x32xf32>
    %464 = vector.shape_cast %463 : vector<1x32x32xf32> to vector<32x32xf32>
    %c1_276 = arith.constant 1 : index
    %c352_277 = arith.constant 352 : index
    %c0_278 = arith.constant 0 : index
    %465 = vector.load %arg8[%c1_276, %c352_277, %c0_278] : memref<3x752x32xf32, #tpu.memory_space<vmem>>, vector<1x1x32xf32>
    %466 = vector.shape_cast %465 : vector<1x1x32xf32> to vector<1x32xf32>
    %cst_279 = arith.constant dense<0.000000e+00> : vector<12x32xf32>
    %467 = tpu.matmul %455, %464, %cst_279 {dimension_numbers = #tpu.dot_dimension_numbers<[1], [0], [0], [1], [0, 0, 1, 1], [], []>} : vector<12x32xf32>, vector<32x32xf32>, vector<12x32xf32> -> vector<12x32xf32>
    %468 = vector.broadcast %466 : vector<1x32xf32> to vector<12x32xf32>
    %469 = arith.addf %467, %468 : vector<12x32xf32>
    %c1_280 = arith.constant 1 : index
    %c360_281 = arith.constant 360 : index
    %c0_282 = arith.constant 0 : index
    %470 = vector.load %arg8[%c1_280, %c360_281, %c0_282] : memref<3x752x32xf32, #tpu.memory_space<vmem>>, vector<1x32x32xf32>
    %471 = vector.shape_cast %470 : vector<1x32x32xf32> to vector<32x32xf32>
    %c1_283 = arith.constant 1 : index
    %c392_284 = arith.constant 392 : index
    %c0_285 = arith.constant 0 : index
    %472 = vector.load %arg8[%c1_283, %c392_284, %c0_285] : memref<3x752x32xf32, #tpu.memory_space<vmem>>, vector<1x1x32xf32>
    %473 = vector.shape_cast %472 : vector<1x1x32xf32> to vector<1x32xf32>
    %cst_286 = arith.constant dense<0.000000e+00> : vector<12x32xf32>
    %474 = tpu.matmul %455, %471, %cst_286 {dimension_numbers = #tpu.dot_dimension_numbers<[1], [0], [0], [1], [0, 0, 1, 1], [], []>} : vector<12x32xf32>, vector<32x32xf32>, vector<12x32xf32> -> vector<12x32xf32>
    %475 = vector.broadcast %473 : vector<1x32xf32> to vector<12x32xf32>
    %476 = arith.addf %474, %475 : vector<12x32xf32>
    %c0_287 = arith.constant 0 : index
    %c0_288 = arith.constant 0 : index
    %477 = vector.load %arg6[%c0_287, %c0_288] : memref<12x12xf32, #tpu.memory_space<vmem>>, vector<12x12xf32>
    %cst_289 = arith.constant dense<0.000000e+00> : vector<12x12xf32>
    %478 = tpu.matmul %462, %469, %cst_289 {dimension_numbers = #tpu.dot_dimension_numbers<[1], [1], [0], [0], [0, 0, 1, 0], [], []>} : vector<12x32xf32>, vector<12x32xf32>, vector<12x12xf32> -> vector<12x12xf32>
    %cst_290 = arith.constant 0.176776692 : f32
    %479 = vector.broadcast %cst_290 : f32 to vector<12x12xf32>
    %480 = arith.mulf %478, %479 : vector<12x12xf32>
    %481 = arith.addf %480, %477 : vector<12x12xf32>
    %cst_291 = arith.constant dense<0xFF800000> : vector<12xf32>
    %482 = vector.multi_reduction <maximumf>, %481, %cst_291 [1] : vector<12x12xf32> to vector<12xf32>
    %483 = vector.shape_cast %482 : vector<12xf32> to vector<12x1xf32>
    %484 = vector.broadcast %483 : vector<12x1xf32> to vector<12x12xf32>
    %485 = arith.subf %481, %484 : vector<12x12xf32>
    %486 = math.exp %485 : vector<12x12xf32>
    %cst_292 = arith.constant dense<0.000000e+00> : vector<12xf32>
    %487 = vector.multi_reduction <add>, %486, %cst_292 [1] : vector<12x12xf32> to vector<12xf32>
    %488 = vector.shape_cast %487 : vector<12xf32> to vector<12x1xf32>
    %489 = vector.broadcast %488 : vector<12x1xf32> to vector<12x12xf32>
    %490 = arith.divf %486, %489 : vector<12x12xf32>
    %cst_293 = arith.constant dense<0.000000e+00> : vector<12x32xf32>
    %491 = tpu.matmul %490, %476, %cst_293 {dimension_numbers = #tpu.dot_dimension_numbers<[1], [0], [0], [1], [0, 0, 1, 1], [], []>} : vector<12x12xf32>, vector<12x32xf32>, vector<12x32xf32> -> vector<12x32xf32>
    %c1_294 = arith.constant 1 : index
    %c400_295 = arith.constant 400 : index
    %c0_296 = arith.constant 0 : index
    %492 = vector.load %arg8[%c1_294, %c400_295, %c0_296] : memref<3x752x32xf32, #tpu.memory_space<vmem>>, vector<1x32x32xf32>
    %493 = vector.shape_cast %492 : vector<1x32x32xf32> to vector<32x32xf32>
    %c1_297 = arith.constant 1 : index
    %c432_298 = arith.constant 432 : index
    %c0_299 = arith.constant 0 : index
    %494 = vector.load %arg8[%c1_297, %c432_298, %c0_299] : memref<3x752x32xf32, #tpu.memory_space<vmem>>, vector<1x1x32xf32>
    %495 = vector.shape_cast %494 : vector<1x1x32xf32> to vector<1x32xf32>
    %cst_300 = arith.constant dense<0.000000e+00> : vector<12x32xf32>
    %496 = tpu.matmul %491, %493, %cst_300 {dimension_numbers = #tpu.dot_dimension_numbers<[1], [0], [0], [1], [0, 0, 1, 1], [], []>} : vector<12x32xf32>, vector<32x32xf32>, vector<12x32xf32> -> vector<12x32xf32>
    %497 = vector.broadcast %495 : vector<1x32xf32> to vector<12x32xf32>
    %498 = arith.addf %496, %497 : vector<12x32xf32>
    %499 = arith.addf %455, %498 : vector<12x32xf32>
    %c1_301 = arith.constant 1 : index
    %c704_302 = arith.constant 704 : index
    %c0_303 = arith.constant 0 : index
    %500 = vector.load %arg8[%c1_301, %c704_302, %c0_303] : memref<3x752x32xf32, #tpu.memory_space<vmem>>, vector<1x1x32xf32>
    %501 = vector.shape_cast %500 : vector<1x1x32xf32> to vector<1x32xf32>
    %c1_304 = arith.constant 1 : index
    %c712_305 = arith.constant 712 : index
    %c0_306 = arith.constant 0 : index
    %502 = vector.load %arg8[%c1_304, %c712_305, %c0_306] : memref<3x752x32xf32, #tpu.memory_space<vmem>>, vector<1x1x32xf32>
    %503 = vector.shape_cast %502 : vector<1x1x32xf32> to vector<1x32xf32>
    %cst_307 = arith.constant dense<0.000000e+00> : vector<12xf32>
    %504 = vector.multi_reduction <add>, %499, %cst_307 [1] : vector<12x32xf32> to vector<12xf32>
    %505 = vector.shape_cast %504 : vector<12xf32> to vector<12x1xf32>
    %cst_308 = arith.constant 3.200000e+01 : f32
    %506 = vector.broadcast %cst_308 : f32 to vector<12x1xf32>
    %507 = arith.divf %505, %506 : vector<12x1xf32>
    %508 = vector.broadcast %507 : vector<12x1xf32> to vector<12x32xf32>
    %509 = arith.subf %499, %508 : vector<12x32xf32>
    %510 = arith.mulf %509, %509 : vector<12x32xf32>
    %cst_309 = arith.constant dense<0.000000e+00> : vector<12xf32>
    %511 = vector.multi_reduction <add>, %510, %cst_309 [1] : vector<12x32xf32> to vector<12xf32>
    %512 = vector.shape_cast %511 : vector<12xf32> to vector<12x1xf32>
    %cst_310 = arith.constant 3.200000e+01 : f32
    %513 = vector.broadcast %cst_310 : f32 to vector<12x1xf32>
    %514 = arith.divf %512, %513 : vector<12x1xf32>
    %515 = vector.broadcast %507 : vector<12x1xf32> to vector<12x32xf32>
    %516 = arith.subf %499, %515 : vector<12x32xf32>
    %cst_311 = arith.constant 9.99999974E-6 : f32
    %517 = vector.broadcast %cst_311 : f32 to vector<12x1xf32>
    %518 = arith.addf %514, %517 : vector<12x1xf32>
    %519 = math.rsqrt %518 : vector<12x1xf32>
    %520 = vector.broadcast %519 : vector<12x1xf32> to vector<12x32xf32>
    %521 = arith.mulf %516, %520 : vector<12x32xf32>
    %522 = vector.broadcast %501 : vector<1x32xf32> to vector<12x32xf32>
    %523 = arith.mulf %521, %522 : vector<12x32xf32>
    %524 = vector.broadcast %503 : vector<1x32xf32> to vector<12x32xf32>
    %525 = arith.addf %523, %524 : vector<12x32xf32>
    %c1_312 = arith.constant 1 : index
    %c440_313 = arith.constant 440 : index
    %c0_314 = arith.constant 0 : index
    %526 = vector.load %arg8[%c1_312, %c440_313, %c0_314] : memref<3x752x32xf32, #tpu.memory_space<vmem>>, vector<1x32x32xf32>
    %527 = vector.shape_cast %526 : vector<1x32x32xf32> to vector<32x32xf32>
    %c1_315 = arith.constant 1 : index
    %c472_316 = arith.constant 472 : index
    %c0_317 = arith.constant 0 : index
    %528 = vector.load %arg8[%c1_315, %c472_316, %c0_317] : memref<3x752x32xf32, #tpu.memory_space<vmem>>, vector<1x1x32xf32>
    %529 = vector.shape_cast %528 : vector<1x1x32xf32> to vector<1x32xf32>
    %cst_318 = arith.constant dense<0.000000e+00> : vector<12x32xf32>
    %530 = tpu.matmul %525, %527, %cst_318 {dimension_numbers = #tpu.dot_dimension_numbers<[1], [0], [0], [1], [0, 0, 1, 1], [], []>} : vector<12x32xf32>, vector<32x32xf32>, vector<12x32xf32> -> vector<12x32xf32>
    %531 = vector.broadcast %529 : vector<1x32xf32> to vector<12x32xf32>
    %532 = arith.addf %530, %531 : vector<12x32xf32>
    %c1_319 = arith.constant 1 : index
    %c480_320 = arith.constant 480 : index
    %c0_321 = arith.constant 0 : index
    %533 = vector.load %arg8[%c1_319, %c480_320, %c0_321] : memref<3x752x32xf32, #tpu.memory_space<vmem>>, vector<1x32x32xf32>
    %534 = vector.shape_cast %533 : vector<1x32x32xf32> to vector<32x32xf32>
    %c1_322 = arith.constant 1 : index
    %c512_323 = arith.constant 512 : index
    %c0_324 = arith.constant 0 : index
    %535 = vector.load %arg8[%c1_322, %c512_323, %c0_324] : memref<3x752x32xf32, #tpu.memory_space<vmem>>, vector<1x1x32xf32>
    %536 = vector.shape_cast %535 : vector<1x1x32xf32> to vector<1x32xf32>
    %cst_325 = arith.constant dense<0.000000e+00> : vector<16x32xf32>
    %537 = tpu.matmul %446, %534, %cst_325 {dimension_numbers = #tpu.dot_dimension_numbers<[1], [0], [0], [1], [0, 0, 1, 1], [], []>} : vector<16x32xf32>, vector<32x32xf32>, vector<16x32xf32> -> vector<16x32xf32>
    %538 = vector.broadcast %536 : vector<1x32xf32> to vector<16x32xf32>
    %539 = arith.addf %537, %538 : vector<16x32xf32>
    %c1_326 = arith.constant 1 : index
    %c520_327 = arith.constant 520 : index
    %c0_328 = arith.constant 0 : index
    %540 = vector.load %arg8[%c1_326, %c520_327, %c0_328] : memref<3x752x32xf32, #tpu.memory_space<vmem>>, vector<1x32x32xf32>
    %541 = vector.shape_cast %540 : vector<1x32x32xf32> to vector<32x32xf32>
    %c1_329 = arith.constant 1 : index
    %c552_330 = arith.constant 552 : index
    %c0_331 = arith.constant 0 : index
    %542 = vector.load %arg8[%c1_329, %c552_330, %c0_331] : memref<3x752x32xf32, #tpu.memory_space<vmem>>, vector<1x1x32xf32>
    %543 = vector.shape_cast %542 : vector<1x1x32xf32> to vector<1x32xf32>
    %cst_332 = arith.constant dense<0.000000e+00> : vector<16x32xf32>
    %544 = tpu.matmul %446, %541, %cst_332 {dimension_numbers = #tpu.dot_dimension_numbers<[1], [0], [0], [1], [0, 0, 1, 1], [], []>} : vector<16x32xf32>, vector<32x32xf32>, vector<16x32xf32> -> vector<16x32xf32>
    %545 = vector.broadcast %543 : vector<1x32xf32> to vector<16x32xf32>
    %546 = arith.addf %544, %545 : vector<16x32xf32>
    %c0_333 = arith.constant 0 : index
    %c0_334 = arith.constant 0 : index
    %547 = vector.load %arg7[%c0_333, %c0_334] : memref<12x16xf32, #tpu.memory_space<vmem>>, vector<12x16xf32>
    %cst_335 = arith.constant dense<0.000000e+00> : vector<12x16xf32>
    %548 = tpu.matmul %532, %539, %cst_335 {dimension_numbers = #tpu.dot_dimension_numbers<[1], [1], [0], [0], [0, 0, 1, 0], [], []>} : vector<12x32xf32>, vector<16x32xf32>, vector<12x16xf32> -> vector<12x16xf32>
    %cst_336 = arith.constant 0.176776692 : f32
    %549 = vector.broadcast %cst_336 : f32 to vector<12x16xf32>
    %550 = arith.mulf %548, %549 : vector<12x16xf32>
    %551 = arith.addf %550, %547 : vector<12x16xf32>
    %cst_337 = arith.constant dense<0xFF800000> : vector<12xf32>
    %552 = vector.multi_reduction <maximumf>, %551, %cst_337 [1] : vector<12x16xf32> to vector<12xf32>
    %553 = vector.shape_cast %552 : vector<12xf32> to vector<12x1xf32>
    %554 = vector.broadcast %553 : vector<12x1xf32> to vector<12x16xf32>
    %555 = arith.subf %551, %554 : vector<12x16xf32>
    %556 = math.exp %555 : vector<12x16xf32>
    %cst_338 = arith.constant dense<0.000000e+00> : vector<12xf32>
    %557 = vector.multi_reduction <add>, %556, %cst_338 [1] : vector<12x16xf32> to vector<12xf32>
    %558 = vector.shape_cast %557 : vector<12xf32> to vector<12x1xf32>
    %559 = vector.broadcast %558 : vector<12x1xf32> to vector<12x16xf32>
    %560 = arith.divf %556, %559 : vector<12x16xf32>
    %cst_339 = arith.constant dense<0.000000e+00> : vector<12x32xf32>
    %561 = tpu.matmul %560, %546, %cst_339 {dimension_numbers = #tpu.dot_dimension_numbers<[1], [0], [0], [1], [0, 0, 1, 1], [], []>} : vector<12x16xf32>, vector<16x32xf32>, vector<12x32xf32> -> vector<12x32xf32>
    %c1_340 = arith.constant 1 : index
    %c560_341 = arith.constant 560 : index
    %c0_342 = arith.constant 0 : index
    %562 = vector.load %arg8[%c1_340, %c560_341, %c0_342] : memref<3x752x32xf32, #tpu.memory_space<vmem>>, vector<1x32x32xf32>
    %563 = vector.shape_cast %562 : vector<1x32x32xf32> to vector<32x32xf32>
    %c1_343 = arith.constant 1 : index
    %c592_344 = arith.constant 592 : index
    %c0_345 = arith.constant 0 : index
    %564 = vector.load %arg8[%c1_343, %c592_344, %c0_345] : memref<3x752x32xf32, #tpu.memory_space<vmem>>, vector<1x1x32xf32>
    %565 = vector.shape_cast %564 : vector<1x1x32xf32> to vector<1x32xf32>
    %cst_346 = arith.constant dense<0.000000e+00> : vector<12x32xf32>
    %566 = tpu.matmul %561, %563, %cst_346 {dimension_numbers = #tpu.dot_dimension_numbers<[1], [0], [0], [1], [0, 0, 1, 1], [], []>} : vector<12x32xf32>, vector<32x32xf32>, vector<12x32xf32> -> vector<12x32xf32>
    %567 = vector.broadcast %565 : vector<1x32xf32> to vector<12x32xf32>
    %568 = arith.addf %566, %567 : vector<12x32xf32>
    %569 = arith.addf %525, %568 : vector<12x32xf32>
    %c1_347 = arith.constant 1 : index
    %c720_348 = arith.constant 720 : index
    %c0_349 = arith.constant 0 : index
    %570 = vector.load %arg8[%c1_347, %c720_348, %c0_349] : memref<3x752x32xf32, #tpu.memory_space<vmem>>, vector<1x1x32xf32>
    %571 = vector.shape_cast %570 : vector<1x1x32xf32> to vector<1x32xf32>
    %c1_350 = arith.constant 1 : index
    %c728_351 = arith.constant 728 : index
    %c0_352 = arith.constant 0 : index
    %572 = vector.load %arg8[%c1_350, %c728_351, %c0_352] : memref<3x752x32xf32, #tpu.memory_space<vmem>>, vector<1x1x32xf32>
    %573 = vector.shape_cast %572 : vector<1x1x32xf32> to vector<1x32xf32>
    %cst_353 = arith.constant dense<0.000000e+00> : vector<12xf32>
    %574 = vector.multi_reduction <add>, %569, %cst_353 [1] : vector<12x32xf32> to vector<12xf32>
    %575 = vector.shape_cast %574 : vector<12xf32> to vector<12x1xf32>
    %cst_354 = arith.constant 3.200000e+01 : f32
    %576 = vector.broadcast %cst_354 : f32 to vector<12x1xf32>
    %577 = arith.divf %575, %576 : vector<12x1xf32>
    %578 = vector.broadcast %577 : vector<12x1xf32> to vector<12x32xf32>
    %579 = arith.subf %569, %578 : vector<12x32xf32>
    %580 = arith.mulf %579, %579 : vector<12x32xf32>
    %cst_355 = arith.constant dense<0.000000e+00> : vector<12xf32>
    %581 = vector.multi_reduction <add>, %580, %cst_355 [1] : vector<12x32xf32> to vector<12xf32>
    %582 = vector.shape_cast %581 : vector<12xf32> to vector<12x1xf32>
    %cst_356 = arith.constant 3.200000e+01 : f32
    %583 = vector.broadcast %cst_356 : f32 to vector<12x1xf32>
    %584 = arith.divf %582, %583 : vector<12x1xf32>
    %585 = vector.broadcast %577 : vector<12x1xf32> to vector<12x32xf32>
    %586 = arith.subf %569, %585 : vector<12x32xf32>
    %cst_357 = arith.constant 9.99999974E-6 : f32
    %587 = vector.broadcast %cst_357 : f32 to vector<12x1xf32>
    %588 = arith.addf %584, %587 : vector<12x1xf32>
    %589 = math.rsqrt %588 : vector<12x1xf32>
    %590 = vector.broadcast %589 : vector<12x1xf32> to vector<12x32xf32>
    %591 = arith.mulf %586, %590 : vector<12x32xf32>
    %592 = vector.broadcast %571 : vector<1x32xf32> to vector<12x32xf32>
    %593 = arith.mulf %591, %592 : vector<12x32xf32>
    %594 = vector.broadcast %573 : vector<1x32xf32> to vector<12x32xf32>
    %595 = arith.addf %593, %594 : vector<12x32xf32>
    %c1_358 = arith.constant 1 : index
    %c40_359 = arith.constant 40 : index
    %c0_360 = arith.constant 0 : index
    %596 = vector.load %arg9[%c1_358, %c40_359, %c0_360] : memref<3x80x64xf32, #tpu.memory_space<vmem>>, vector<1x32x64xf32>
    %597 = vector.shape_cast %596 : vector<1x32x64xf32> to vector<32x64xf32>
    %c1_361 = arith.constant 1 : index
    %c72_362 = arith.constant 72 : index
    %c0_363 = arith.constant 0 : index
    %598 = vector.load %arg9[%c1_361, %c72_362, %c0_363] : memref<3x80x64xf32, #tpu.memory_space<vmem>>, vector<1x1x64xf32>
    %599 = vector.shape_cast %598 : vector<1x1x64xf32> to vector<1x64xf32>
    %cst_364 = arith.constant dense<0.000000e+00> : vector<12x64xf32>
    %600 = tpu.matmul %595, %597, %cst_364 {dimension_numbers = #tpu.dot_dimension_numbers<[1], [0], [0], [1], [0, 0, 1, 1], [], []>} : vector<12x32xf32>, vector<32x64xf32>, vector<12x64xf32> -> vector<12x64xf32>
    %601 = vector.broadcast %599 : vector<1x64xf32> to vector<12x64xf32>
    %602 = arith.addf %600, %601 : vector<12x64xf32>
    %cst_365 = arith.constant 0.000000e+00 : f32
    %603 = vector.broadcast %cst_365 : f32 to vector<12x64xf32>
    %604 = arith.maximumf %602, %603 : vector<12x64xf32>
    %c1_366 = arith.constant 1 : index
    %c600_367 = arith.constant 600 : index
    %c0_368 = arith.constant 0 : index
    %605 = vector.load %arg8[%c1_366, %c600_367, %c0_368] : memref<3x752x32xf32, #tpu.memory_space<vmem>>, vector<1x64x32xf32>
    %606 = vector.shape_cast %605 : vector<1x64x32xf32> to vector<64x32xf32>
    %c1_369 = arith.constant 1 : index
    %c664_370 = arith.constant 664 : index
    %c0_371 = arith.constant 0 : index
    %607 = vector.load %arg8[%c1_369, %c664_370, %c0_371] : memref<3x752x32xf32, #tpu.memory_space<vmem>>, vector<1x1x32xf32>
    %608 = vector.shape_cast %607 : vector<1x1x32xf32> to vector<1x32xf32>
    %cst_372 = arith.constant dense<0.000000e+00> : vector<12x32xf32>
    %609 = tpu.matmul %604, %606, %cst_372 {dimension_numbers = #tpu.dot_dimension_numbers<[1], [0], [0], [1], [0, 0, 1, 1], [], []>} : vector<12x64xf32>, vector<64x32xf32>, vector<12x32xf32> -> vector<12x32xf32>
    %610 = vector.broadcast %608 : vector<1x32xf32> to vector<12x32xf32>
    %611 = arith.addf %609, %610 : vector<12x32xf32>
    %612 = arith.addf %595, %611 : vector<12x32xf32>
    %c1_373 = arith.constant 1 : index
    %c736_374 = arith.constant 736 : index
    %c0_375 = arith.constant 0 : index
    %613 = vector.load %arg8[%c1_373, %c736_374, %c0_375] : memref<3x752x32xf32, #tpu.memory_space<vmem>>, vector<1x1x32xf32>
    %614 = vector.shape_cast %613 : vector<1x1x32xf32> to vector<1x32xf32>
    %c1_376 = arith.constant 1 : index
    %c744_377 = arith.constant 744 : index
    %c0_378 = arith.constant 0 : index
    %615 = vector.load %arg8[%c1_376, %c744_377, %c0_378] : memref<3x752x32xf32, #tpu.memory_space<vmem>>, vector<1x1x32xf32>
    %616 = vector.shape_cast %615 : vector<1x1x32xf32> to vector<1x32xf32>
    %cst_379 = arith.constant dense<0.000000e+00> : vector<12xf32>
    %617 = vector.multi_reduction <add>, %612, %cst_379 [1] : vector<12x32xf32> to vector<12xf32>
    %618 = vector.shape_cast %617 : vector<12xf32> to vector<12x1xf32>
    %cst_380 = arith.constant 3.200000e+01 : f32
    %619 = vector.broadcast %cst_380 : f32 to vector<12x1xf32>
    %620 = arith.divf %618, %619 : vector<12x1xf32>
    %621 = vector.broadcast %620 : vector<12x1xf32> to vector<12x32xf32>
    %622 = arith.subf %612, %621 : vector<12x32xf32>
    %623 = arith.mulf %622, %622 : vector<12x32xf32>
    %cst_381 = arith.constant dense<0.000000e+00> : vector<12xf32>
    %624 = vector.multi_reduction <add>, %623, %cst_381 [1] : vector<12x32xf32> to vector<12xf32>
    %625 = vector.shape_cast %624 : vector<12xf32> to vector<12x1xf32>
    %cst_382 = arith.constant 3.200000e+01 : f32
    %626 = vector.broadcast %cst_382 : f32 to vector<12x1xf32>
    %627 = arith.divf %625, %626 : vector<12x1xf32>
    %628 = vector.broadcast %620 : vector<12x1xf32> to vector<12x32xf32>
    %629 = arith.subf %612, %628 : vector<12x32xf32>
    %cst_383 = arith.constant 9.99999974E-6 : f32
    %630 = vector.broadcast %cst_383 : f32 to vector<12x1xf32>
    %631 = arith.addf %627, %630 : vector<12x1xf32>
    %632 = math.rsqrt %631 : vector<12x1xf32>
    %633 = vector.broadcast %632 : vector<12x1xf32> to vector<12x32xf32>
    %634 = arith.mulf %629, %633 : vector<12x32xf32>
    %635 = vector.broadcast %614 : vector<1x32xf32> to vector<12x32xf32>
    %636 = arith.mulf %634, %635 : vector<12x32xf32>
    %637 = vector.broadcast %616 : vector<1x32xf32> to vector<12x32xf32>
    %638 = arith.addf %636, %637 : vector<12x32xf32>
    %c1_384 = arith.constant 1 : index
    %c0_385 = arith.constant 0 : index
    %c0_386 = arith.constant 0 : index
    %639 = vector.load %arg10[%c1_384, %c0_385, %c0_386] : memref<3x40x128xf32, #tpu.memory_space<vmem>>, vector<1x32x128xf32>
    %640 = vector.shape_cast %639 : vector<1x32x128xf32> to vector<32x128xf32>
    %c1_387 = arith.constant 1 : index
    %c32_388 = arith.constant 32 : index
    %c0_389 = arith.constant 0 : index
    %641 = vector.load %arg10[%c1_387, %c32_388, %c0_389] : memref<3x40x128xf32, #tpu.memory_space<vmem>>, vector<1x1x128xf32>
    %642 = vector.shape_cast %641 : vector<1x1x128xf32> to vector<1x128xf32>
    %cst_390 = arith.constant dense<0.000000e+00> : vector<12x128xf32>
    %643 = tpu.matmul %638, %640, %cst_390 {dimension_numbers = #tpu.dot_dimension_numbers<[1], [0], [0], [1], [0, 0, 1, 1], [], []>} : vector<12x32xf32>, vector<32x128xf32>, vector<12x128xf32> -> vector<12x128xf32>
    %644 = vector.broadcast %642 : vector<1x128xf32> to vector<12x128xf32>
    %645 = arith.addf %643, %644 : vector<12x128xf32>
    %c0_391 = arith.constant 0 : index
    %c0_392 = arith.constant 0 : index
    %646 = vector.load %arg0[%c0_391, %c0_392] : memref<16x16xf32, #tpu.memory_space<vmem>>, vector<16x16xf32>
    %c2 = arith.constant 2 : index
    %c0_393 = arith.constant 0 : index
    %c0_394 = arith.constant 0 : index
    %647 = vector.load %arg8[%c2, %c0_393, %c0_394] : memref<3x752x32xf32, #tpu.memory_space<vmem>>, vector<1x16x32xf32>
    %648 = vector.shape_cast %647 : vector<1x16x32xf32> to vector<16x32xf32>
    %c2_395 = arith.constant 2 : index
    %c16_396 = arith.constant 16 : index
    %c0_397 = arith.constant 0 : index
    %649 = vector.load %arg8[%c2_395, %c16_396, %c0_397] : memref<3x752x32xf32, #tpu.memory_space<vmem>>, vector<1x1x32xf32>
    %650 = vector.shape_cast %649 : vector<1x1x32xf32> to vector<1x32xf32>
    %cst_398 = arith.constant dense<0.000000e+00> : vector<16x32xf32>
    %651 = tpu.matmul %646, %648, %cst_398 {dimension_numbers = #tpu.dot_dimension_numbers<[1], [0], [0], [1], [0, 0, 1, 1], [], []>} : vector<16x16xf32>, vector<16x32xf32>, vector<16x32xf32> -> vector<16x32xf32>
    %652 = vector.broadcast %650 : vector<1x32xf32> to vector<16x32xf32>
    %653 = arith.addf %651, %652 : vector<16x32xf32>
    %c0_399 = arith.constant 0 : index
    %c0_400 = arith.constant 0 : index
    %654 = vector.load %arg3[%c0_399, %c0_400] : memref<16x32xf32, #tpu.memory_space<vmem>>, vector<16x32xf32>
    %655 = arith.addf %653, %654 : vector<16x32xf32>
    %c2_401 = arith.constant 2 : index
    %c24_402 = arith.constant 24 : index
    %c0_403 = arith.constant 0 : index
    %656 = vector.load %arg8[%c2_401, %c24_402, %c0_403] : memref<3x752x32xf32, #tpu.memory_space<vmem>>, vector<1x32x32xf32>
    %657 = vector.shape_cast %656 : vector<1x32x32xf32> to vector<32x32xf32>
    %c2_404 = arith.constant 2 : index
    %c56_405 = arith.constant 56 : index
    %c0_406 = arith.constant 0 : index
    %658 = vector.load %arg8[%c2_404, %c56_405, %c0_406] : memref<3x752x32xf32, #tpu.memory_space<vmem>>, vector<1x1x32xf32>
    %659 = vector.shape_cast %658 : vector<1x1x32xf32> to vector<1x32xf32>
    %cst_407 = arith.constant dense<0.000000e+00> : vector<16x32xf32>
    %660 = tpu.matmul %655, %657, %cst_407 {dimension_numbers = #tpu.dot_dimension_numbers<[1], [0], [0], [1], [0, 0, 1, 1], [], []>} : vector<16x32xf32>, vector<32x32xf32>, vector<16x32xf32> -> vector<16x32xf32>
    %661 = vector.broadcast %659 : vector<1x32xf32> to vector<16x32xf32>
    %662 = arith.addf %660, %661 : vector<16x32xf32>
    %c2_408 = arith.constant 2 : index
    %c64_409 = arith.constant 64 : index
    %c0_410 = arith.constant 0 : index
    %663 = vector.load %arg8[%c2_408, %c64_409, %c0_410] : memref<3x752x32xf32, #tpu.memory_space<vmem>>, vector<1x32x32xf32>
    %664 = vector.shape_cast %663 : vector<1x32x32xf32> to vector<32x32xf32>
    %c2_411 = arith.constant 2 : index
    %c96_412 = arith.constant 96 : index
    %c0_413 = arith.constant 0 : index
    %665 = vector.load %arg8[%c2_411, %c96_412, %c0_413] : memref<3x752x32xf32, #tpu.memory_space<vmem>>, vector<1x1x32xf32>
    %666 = vector.shape_cast %665 : vector<1x1x32xf32> to vector<1x32xf32>
    %cst_414 = arith.constant dense<0.000000e+00> : vector<16x32xf32>
    %667 = tpu.matmul %655, %664, %cst_414 {dimension_numbers = #tpu.dot_dimension_numbers<[1], [0], [0], [1], [0, 0, 1, 1], [], []>} : vector<16x32xf32>, vector<32x32xf32>, vector<16x32xf32> -> vector<16x32xf32>
    %668 = vector.broadcast %666 : vector<1x32xf32> to vector<16x32xf32>
    %669 = arith.addf %667, %668 : vector<16x32xf32>
    %c2_415 = arith.constant 2 : index
    %c104_416 = arith.constant 104 : index
    %c0_417 = arith.constant 0 : index
    %670 = vector.load %arg8[%c2_415, %c104_416, %c0_417] : memref<3x752x32xf32, #tpu.memory_space<vmem>>, vector<1x32x32xf32>
    %671 = vector.shape_cast %670 : vector<1x32x32xf32> to vector<32x32xf32>
    %c2_418 = arith.constant 2 : index
    %c136_419 = arith.constant 136 : index
    %c0_420 = arith.constant 0 : index
    %672 = vector.load %arg8[%c2_418, %c136_419, %c0_420] : memref<3x752x32xf32, #tpu.memory_space<vmem>>, vector<1x1x32xf32>
    %673 = vector.shape_cast %672 : vector<1x1x32xf32> to vector<1x32xf32>
    %cst_421 = arith.constant dense<0.000000e+00> : vector<16x32xf32>
    %674 = tpu.matmul %655, %671, %cst_421 {dimension_numbers = #tpu.dot_dimension_numbers<[1], [0], [0], [1], [0, 0, 1, 1], [], []>} : vector<16x32xf32>, vector<32x32xf32>, vector<16x32xf32> -> vector<16x32xf32>
    %675 = vector.broadcast %673 : vector<1x32xf32> to vector<16x32xf32>
    %676 = arith.addf %674, %675 : vector<16x32xf32>
    %c0_422 = arith.constant 0 : index
    %c0_423 = arith.constant 0 : index
    %677 = vector.load %arg5[%c0_422, %c0_423] : memref<16x16xf32, #tpu.memory_space<vmem>>, vector<16x16xf32>
    %cst_424 = arith.constant dense<0.000000e+00> : vector<16x16xf32>
    %678 = tpu.matmul %662, %669, %cst_424 {dimension_numbers = #tpu.dot_dimension_numbers<[1], [1], [0], [0], [0, 0, 1, 0], [], []>} : vector<16x32xf32>, vector<16x32xf32>, vector<16x16xf32> -> vector<16x16xf32>
    %cst_425 = arith.constant 0.176776692 : f32
    %679 = vector.broadcast %cst_425 : f32 to vector<16x16xf32>
    %680 = arith.mulf %678, %679 : vector<16x16xf32>
    %681 = arith.addf %680, %677 : vector<16x16xf32>
    %cst_426 = arith.constant dense<0xFF800000> : vector<16xf32>
    %682 = vector.multi_reduction <maximumf>, %681, %cst_426 [1] : vector<16x16xf32> to vector<16xf32>
    %683 = vector.shape_cast %682 : vector<16xf32> to vector<16x1xf32>
    %684 = vector.broadcast %683 : vector<16x1xf32> to vector<16x16xf32>
    %685 = arith.subf %681, %684 : vector<16x16xf32>
    %686 = math.exp %685 : vector<16x16xf32>
    %cst_427 = arith.constant dense<0.000000e+00> : vector<16xf32>
    %687 = vector.multi_reduction <add>, %686, %cst_427 [1] : vector<16x16xf32> to vector<16xf32>
    %688 = vector.shape_cast %687 : vector<16xf32> to vector<16x1xf32>
    %689 = vector.broadcast %688 : vector<16x1xf32> to vector<16x16xf32>
    %690 = arith.divf %686, %689 : vector<16x16xf32>
    %cst_428 = arith.constant dense<0.000000e+00> : vector<16x32xf32>
    %691 = tpu.matmul %690, %676, %cst_428 {dimension_numbers = #tpu.dot_dimension_numbers<[1], [0], [0], [1], [0, 0, 1, 1], [], []>} : vector<16x16xf32>, vector<16x32xf32>, vector<16x32xf32> -> vector<16x32xf32>
    %c2_429 = arith.constant 2 : index
    %c144_430 = arith.constant 144 : index
    %c0_431 = arith.constant 0 : index
    %692 = vector.load %arg8[%c2_429, %c144_430, %c0_431] : memref<3x752x32xf32, #tpu.memory_space<vmem>>, vector<1x32x32xf32>
    %693 = vector.shape_cast %692 : vector<1x32x32xf32> to vector<32x32xf32>
    %c2_432 = arith.constant 2 : index
    %c176_433 = arith.constant 176 : index
    %c0_434 = arith.constant 0 : index
    %694 = vector.load %arg8[%c2_432, %c176_433, %c0_434] : memref<3x752x32xf32, #tpu.memory_space<vmem>>, vector<1x1x32xf32>
    %695 = vector.shape_cast %694 : vector<1x1x32xf32> to vector<1x32xf32>
    %cst_435 = arith.constant dense<0.000000e+00> : vector<16x32xf32>
    %696 = tpu.matmul %691, %693, %cst_435 {dimension_numbers = #tpu.dot_dimension_numbers<[1], [0], [0], [1], [0, 0, 1, 1], [], []>} : vector<16x32xf32>, vector<32x32xf32>, vector<16x32xf32> -> vector<16x32xf32>
    %697 = vector.broadcast %695 : vector<1x32xf32> to vector<16x32xf32>
    %698 = arith.addf %696, %697 : vector<16x32xf32>
    %699 = arith.addf %655, %698 : vector<16x32xf32>
    %c2_436 = arith.constant 2 : index
    %c672_437 = arith.constant 672 : index
    %c0_438 = arith.constant 0 : index
    %700 = vector.load %arg8[%c2_436, %c672_437, %c0_438] : memref<3x752x32xf32, #tpu.memory_space<vmem>>, vector<1x1x32xf32>
    %701 = vector.shape_cast %700 : vector<1x1x32xf32> to vector<1x32xf32>
    %c2_439 = arith.constant 2 : index
    %c680_440 = arith.constant 680 : index
    %c0_441 = arith.constant 0 : index
    %702 = vector.load %arg8[%c2_439, %c680_440, %c0_441] : memref<3x752x32xf32, #tpu.memory_space<vmem>>, vector<1x1x32xf32>
    %703 = vector.shape_cast %702 : vector<1x1x32xf32> to vector<1x32xf32>
    %cst_442 = arith.constant dense<0.000000e+00> : vector<16xf32>
    %704 = vector.multi_reduction <add>, %699, %cst_442 [1] : vector<16x32xf32> to vector<16xf32>
    %705 = vector.shape_cast %704 : vector<16xf32> to vector<16x1xf32>
    %cst_443 = arith.constant 3.200000e+01 : f32
    %706 = vector.broadcast %cst_443 : f32 to vector<16x1xf32>
    %707 = arith.divf %705, %706 : vector<16x1xf32>
    %708 = vector.broadcast %707 : vector<16x1xf32> to vector<16x32xf32>
    %709 = arith.subf %699, %708 : vector<16x32xf32>
    %710 = arith.mulf %709, %709 : vector<16x32xf32>
    %cst_444 = arith.constant dense<0.000000e+00> : vector<16xf32>
    %711 = vector.multi_reduction <add>, %710, %cst_444 [1] : vector<16x32xf32> to vector<16xf32>
    %712 = vector.shape_cast %711 : vector<16xf32> to vector<16x1xf32>
    %cst_445 = arith.constant 3.200000e+01 : f32
    %713 = vector.broadcast %cst_445 : f32 to vector<16x1xf32>
    %714 = arith.divf %712, %713 : vector<16x1xf32>
    %715 = vector.broadcast %707 : vector<16x1xf32> to vector<16x32xf32>
    %716 = arith.subf %699, %715 : vector<16x32xf32>
    %cst_446 = arith.constant 9.99999974E-6 : f32
    %717 = vector.broadcast %cst_446 : f32 to vector<16x1xf32>
    %718 = arith.addf %714, %717 : vector<16x1xf32>
    %719 = math.rsqrt %718 : vector<16x1xf32>
    %720 = vector.broadcast %719 : vector<16x1xf32> to vector<16x32xf32>
    %721 = arith.mulf %716, %720 : vector<16x32xf32>
    %722 = vector.broadcast %701 : vector<1x32xf32> to vector<16x32xf32>
    %723 = arith.mulf %721, %722 : vector<16x32xf32>
    %724 = vector.broadcast %703 : vector<1x32xf32> to vector<16x32xf32>
    %725 = arith.addf %723, %724 : vector<16x32xf32>
    %c2_447 = arith.constant 2 : index
    %c0_448 = arith.constant 0 : index
    %c0_449 = arith.constant 0 : index
    %726 = vector.load %arg9[%c2_447, %c0_448, %c0_449] : memref<3x80x64xf32, #tpu.memory_space<vmem>>, vector<1x32x64xf32>
    %727 = vector.shape_cast %726 : vector<1x32x64xf32> to vector<32x64xf32>
    %c2_450 = arith.constant 2 : index
    %c32_451 = arith.constant 32 : index
    %c0_452 = arith.constant 0 : index
    %728 = vector.load %arg9[%c2_450, %c32_451, %c0_452] : memref<3x80x64xf32, #tpu.memory_space<vmem>>, vector<1x1x64xf32>
    %729 = vector.shape_cast %728 : vector<1x1x64xf32> to vector<1x64xf32>
    %cst_453 = arith.constant dense<0.000000e+00> : vector<16x64xf32>
    %730 = tpu.matmul %725, %727, %cst_453 {dimension_numbers = #tpu.dot_dimension_numbers<[1], [0], [0], [1], [0, 0, 1, 1], [], []>} : vector<16x32xf32>, vector<32x64xf32>, vector<16x64xf32> -> vector<16x64xf32>
    %731 = vector.broadcast %729 : vector<1x64xf32> to vector<16x64xf32>
    %732 = arith.addf %730, %731 : vector<16x64xf32>
    %cst_454 = arith.constant 0.000000e+00 : f32
    %733 = vector.broadcast %cst_454 : f32 to vector<16x64xf32>
    %734 = arith.maximumf %732, %733 : vector<16x64xf32>
    %c2_455 = arith.constant 2 : index
    %c184_456 = arith.constant 184 : index
    %c0_457 = arith.constant 0 : index
    %735 = vector.load %arg8[%c2_455, %c184_456, %c0_457] : memref<3x752x32xf32, #tpu.memory_space<vmem>>, vector<1x64x32xf32>
    %736 = vector.shape_cast %735 : vector<1x64x32xf32> to vector<64x32xf32>
    %c2_458 = arith.constant 2 : index
    %c248_459 = arith.constant 248 : index
    %c0_460 = arith.constant 0 : index
    %737 = vector.load %arg8[%c2_458, %c248_459, %c0_460] : memref<3x752x32xf32, #tpu.memory_space<vmem>>, vector<1x1x32xf32>
    %738 = vector.shape_cast %737 : vector<1x1x32xf32> to vector<1x32xf32>
    %cst_461 = arith.constant dense<0.000000e+00> : vector<16x32xf32>
    %739 = tpu.matmul %734, %736, %cst_461 {dimension_numbers = #tpu.dot_dimension_numbers<[1], [0], [0], [1], [0, 0, 1, 1], [], []>} : vector<16x64xf32>, vector<64x32xf32>, vector<16x32xf32> -> vector<16x32xf32>
    %740 = vector.broadcast %738 : vector<1x32xf32> to vector<16x32xf32>
    %741 = arith.addf %739, %740 : vector<16x32xf32>
    %742 = arith.addf %725, %741 : vector<16x32xf32>
    %c2_462 = arith.constant 2 : index
    %c688_463 = arith.constant 688 : index
    %c0_464 = arith.constant 0 : index
    %743 = vector.load %arg8[%c2_462, %c688_463, %c0_464] : memref<3x752x32xf32, #tpu.memory_space<vmem>>, vector<1x1x32xf32>
    %744 = vector.shape_cast %743 : vector<1x1x32xf32> to vector<1x32xf32>
    %c2_465 = arith.constant 2 : index
    %c696_466 = arith.constant 696 : index
    %c0_467 = arith.constant 0 : index
    %745 = vector.load %arg8[%c2_465, %c696_466, %c0_467] : memref<3x752x32xf32, #tpu.memory_space<vmem>>, vector<1x1x32xf32>
    %746 = vector.shape_cast %745 : vector<1x1x32xf32> to vector<1x32xf32>
    %cst_468 = arith.constant dense<0.000000e+00> : vector<16xf32>
    %747 = vector.multi_reduction <add>, %742, %cst_468 [1] : vector<16x32xf32> to vector<16xf32>
    %748 = vector.shape_cast %747 : vector<16xf32> to vector<16x1xf32>
    %cst_469 = arith.constant 3.200000e+01 : f32
    %749 = vector.broadcast %cst_469 : f32 to vector<16x1xf32>
    %750 = arith.divf %748, %749 : vector<16x1xf32>
    %751 = vector.broadcast %750 : vector<16x1xf32> to vector<16x32xf32>
    %752 = arith.subf %742, %751 : vector<16x32xf32>
    %753 = arith.mulf %752, %752 : vector<16x32xf32>
    %cst_470 = arith.constant dense<0.000000e+00> : vector<16xf32>
    %754 = vector.multi_reduction <add>, %753, %cst_470 [1] : vector<16x32xf32> to vector<16xf32>
    %755 = vector.shape_cast %754 : vector<16xf32> to vector<16x1xf32>
    %cst_471 = arith.constant 3.200000e+01 : f32
    %756 = vector.broadcast %cst_471 : f32 to vector<16x1xf32>
    %757 = arith.divf %755, %756 : vector<16x1xf32>
    %758 = vector.broadcast %750 : vector<16x1xf32> to vector<16x32xf32>
    %759 = arith.subf %742, %758 : vector<16x32xf32>
    %cst_472 = arith.constant 9.99999974E-6 : f32
    %760 = vector.broadcast %cst_472 : f32 to vector<16x1xf32>
    %761 = arith.addf %757, %760 : vector<16x1xf32>
    %762 = math.rsqrt %761 : vector<16x1xf32>
    %763 = vector.broadcast %762 : vector<16x1xf32> to vector<16x32xf32>
    %764 = arith.mulf %759, %763 : vector<16x32xf32>
    %765 = vector.broadcast %744 : vector<1x32xf32> to vector<16x32xf32>
    %766 = arith.mulf %764, %765 : vector<16x32xf32>
    %767 = vector.broadcast %746 : vector<1x32xf32> to vector<16x32xf32>
    %768 = arith.addf %766, %767 : vector<16x32xf32>
    %c2_473 = arith.constant 2 : index
    %c256_474 = arith.constant 256 : index
    %c0_475 = arith.constant 0 : index
    %769 = vector.load %arg8[%c2_473, %c256_474, %c0_475] : memref<3x752x32xf32, #tpu.memory_space<vmem>>, vector<1x16x32xf32>
    %770 = vector.shape_cast %769 : vector<1x16x32xf32> to vector<16x32xf32>
    %c2_476 = arith.constant 2 : index
    %c272_477 = arith.constant 272 : index
    %c0_478 = arith.constant 0 : index
    %771 = vector.load %arg8[%c2_476, %c272_477, %c0_478] : memref<3x752x32xf32, #tpu.memory_space<vmem>>, vector<1x1x32xf32>
    %772 = vector.shape_cast %771 : vector<1x1x32xf32> to vector<1x32xf32>
    %cst_479 = arith.constant dense<0.000000e+00> : vector<12x32xf32>
    %773 = tpu.matmul %1, %770, %cst_479 {dimension_numbers = #tpu.dot_dimension_numbers<[1], [0], [0], [1], [0, 0, 1, 1], [], []>} : vector<12x16xf32>, vector<16x32xf32>, vector<12x32xf32> -> vector<12x32xf32>
    %774 = vector.broadcast %772 : vector<1x32xf32> to vector<12x32xf32>
    %775 = arith.addf %773, %774 : vector<12x32xf32>
    %c0_480 = arith.constant 0 : index
    %c0_481 = arith.constant 0 : index
    %776 = vector.load %arg4[%c0_480, %c0_481] : memref<12x32xf32, #tpu.memory_space<vmem>>, vector<12x32xf32>
    %777 = arith.addf %775, %776 : vector<12x32xf32>
    %c2_482 = arith.constant 2 : index
    %c280_483 = arith.constant 280 : index
    %c0_484 = arith.constant 0 : index
    %778 = vector.load %arg8[%c2_482, %c280_483, %c0_484] : memref<3x752x32xf32, #tpu.memory_space<vmem>>, vector<1x32x32xf32>
    %779 = vector.shape_cast %778 : vector<1x32x32xf32> to vector<32x32xf32>
    %c2_485 = arith.constant 2 : index
    %c312_486 = arith.constant 312 : index
    %c0_487 = arith.constant 0 : index
    %780 = vector.load %arg8[%c2_485, %c312_486, %c0_487] : memref<3x752x32xf32, #tpu.memory_space<vmem>>, vector<1x1x32xf32>
    %781 = vector.shape_cast %780 : vector<1x1x32xf32> to vector<1x32xf32>
    %cst_488 = arith.constant dense<0.000000e+00> : vector<12x32xf32>
    %782 = tpu.matmul %777, %779, %cst_488 {dimension_numbers = #tpu.dot_dimension_numbers<[1], [0], [0], [1], [0, 0, 1, 1], [], []>} : vector<12x32xf32>, vector<32x32xf32>, vector<12x32xf32> -> vector<12x32xf32>
    %783 = vector.broadcast %781 : vector<1x32xf32> to vector<12x32xf32>
    %784 = arith.addf %782, %783 : vector<12x32xf32>
    %c2_489 = arith.constant 2 : index
    %c320_490 = arith.constant 320 : index
    %c0_491 = arith.constant 0 : index
    %785 = vector.load %arg8[%c2_489, %c320_490, %c0_491] : memref<3x752x32xf32, #tpu.memory_space<vmem>>, vector<1x32x32xf32>
    %786 = vector.shape_cast %785 : vector<1x32x32xf32> to vector<32x32xf32>
    %c2_492 = arith.constant 2 : index
    %c352_493 = arith.constant 352 : index
    %c0_494 = arith.constant 0 : index
    %787 = vector.load %arg8[%c2_492, %c352_493, %c0_494] : memref<3x752x32xf32, #tpu.memory_space<vmem>>, vector<1x1x32xf32>
    %788 = vector.shape_cast %787 : vector<1x1x32xf32> to vector<1x32xf32>
    %cst_495 = arith.constant dense<0.000000e+00> : vector<12x32xf32>
    %789 = tpu.matmul %777, %786, %cst_495 {dimension_numbers = #tpu.dot_dimension_numbers<[1], [0], [0], [1], [0, 0, 1, 1], [], []>} : vector<12x32xf32>, vector<32x32xf32>, vector<12x32xf32> -> vector<12x32xf32>
    %790 = vector.broadcast %788 : vector<1x32xf32> to vector<12x32xf32>
    %791 = arith.addf %789, %790 : vector<12x32xf32>
    %c2_496 = arith.constant 2 : index
    %c360_497 = arith.constant 360 : index
    %c0_498 = arith.constant 0 : index
    %792 = vector.load %arg8[%c2_496, %c360_497, %c0_498] : memref<3x752x32xf32, #tpu.memory_space<vmem>>, vector<1x32x32xf32>
    %793 = vector.shape_cast %792 : vector<1x32x32xf32> to vector<32x32xf32>
    %c2_499 = arith.constant 2 : index
    %c392_500 = arith.constant 392 : index
    %c0_501 = arith.constant 0 : index
    %794 = vector.load %arg8[%c2_499, %c392_500, %c0_501] : memref<3x752x32xf32, #tpu.memory_space<vmem>>, vector<1x1x32xf32>
    %795 = vector.shape_cast %794 : vector<1x1x32xf32> to vector<1x32xf32>
    %cst_502 = arith.constant dense<0.000000e+00> : vector<12x32xf32>
    %796 = tpu.matmul %777, %793, %cst_502 {dimension_numbers = #tpu.dot_dimension_numbers<[1], [0], [0], [1], [0, 0, 1, 1], [], []>} : vector<12x32xf32>, vector<32x32xf32>, vector<12x32xf32> -> vector<12x32xf32>
    %797 = vector.broadcast %795 : vector<1x32xf32> to vector<12x32xf32>
    %798 = arith.addf %796, %797 : vector<12x32xf32>
    %c0_503 = arith.constant 0 : index
    %c0_504 = arith.constant 0 : index
    %799 = vector.load %arg6[%c0_503, %c0_504] : memref<12x12xf32, #tpu.memory_space<vmem>>, vector<12x12xf32>
    %cst_505 = arith.constant dense<0.000000e+00> : vector<12x12xf32>
    %800 = tpu.matmul %784, %791, %cst_505 {dimension_numbers = #tpu.dot_dimension_numbers<[1], [1], [0], [0], [0, 0, 1, 0], [], []>} : vector<12x32xf32>, vector<12x32xf32>, vector<12x12xf32> -> vector<12x12xf32>
    %cst_506 = arith.constant 0.176776692 : f32
    %801 = vector.broadcast %cst_506 : f32 to vector<12x12xf32>
    %802 = arith.mulf %800, %801 : vector<12x12xf32>
    %803 = arith.addf %802, %799 : vector<12x12xf32>
    %cst_507 = arith.constant dense<0xFF800000> : vector<12xf32>
    %804 = vector.multi_reduction <maximumf>, %803, %cst_507 [1] : vector<12x12xf32> to vector<12xf32>
    %805 = vector.shape_cast %804 : vector<12xf32> to vector<12x1xf32>
    %806 = vector.broadcast %805 : vector<12x1xf32> to vector<12x12xf32>
    %807 = arith.subf %803, %806 : vector<12x12xf32>
    %808 = math.exp %807 : vector<12x12xf32>
    %cst_508 = arith.constant dense<0.000000e+00> : vector<12xf32>
    %809 = vector.multi_reduction <add>, %808, %cst_508 [1] : vector<12x12xf32> to vector<12xf32>
    %810 = vector.shape_cast %809 : vector<12xf32> to vector<12x1xf32>
    %811 = vector.broadcast %810 : vector<12x1xf32> to vector<12x12xf32>
    %812 = arith.divf %808, %811 : vector<12x12xf32>
    %cst_509 = arith.constant dense<0.000000e+00> : vector<12x32xf32>
    %813 = tpu.matmul %812, %798, %cst_509 {dimension_numbers = #tpu.dot_dimension_numbers<[1], [0], [0], [1], [0, 0, 1, 1], [], []>} : vector<12x12xf32>, vector<12x32xf32>, vector<12x32xf32> -> vector<12x32xf32>
    %c2_510 = arith.constant 2 : index
    %c400_511 = arith.constant 400 : index
    %c0_512 = arith.constant 0 : index
    %814 = vector.load %arg8[%c2_510, %c400_511, %c0_512] : memref<3x752x32xf32, #tpu.memory_space<vmem>>, vector<1x32x32xf32>
    %815 = vector.shape_cast %814 : vector<1x32x32xf32> to vector<32x32xf32>
    %c2_513 = arith.constant 2 : index
    %c432_514 = arith.constant 432 : index
    %c0_515 = arith.constant 0 : index
    %816 = vector.load %arg8[%c2_513, %c432_514, %c0_515] : memref<3x752x32xf32, #tpu.memory_space<vmem>>, vector<1x1x32xf32>
    %817 = vector.shape_cast %816 : vector<1x1x32xf32> to vector<1x32xf32>
    %cst_516 = arith.constant dense<0.000000e+00> : vector<12x32xf32>
    %818 = tpu.matmul %813, %815, %cst_516 {dimension_numbers = #tpu.dot_dimension_numbers<[1], [0], [0], [1], [0, 0, 1, 1], [], []>} : vector<12x32xf32>, vector<32x32xf32>, vector<12x32xf32> -> vector<12x32xf32>
    %819 = vector.broadcast %817 : vector<1x32xf32> to vector<12x32xf32>
    %820 = arith.addf %818, %819 : vector<12x32xf32>
    %821 = arith.addf %777, %820 : vector<12x32xf32>
    %c2_517 = arith.constant 2 : index
    %c704_518 = arith.constant 704 : index
    %c0_519 = arith.constant 0 : index
    %822 = vector.load %arg8[%c2_517, %c704_518, %c0_519] : memref<3x752x32xf32, #tpu.memory_space<vmem>>, vector<1x1x32xf32>
    %823 = vector.shape_cast %822 : vector<1x1x32xf32> to vector<1x32xf32>
    %c2_520 = arith.constant 2 : index
    %c712_521 = arith.constant 712 : index
    %c0_522 = arith.constant 0 : index
    %824 = vector.load %arg8[%c2_520, %c712_521, %c0_522] : memref<3x752x32xf32, #tpu.memory_space<vmem>>, vector<1x1x32xf32>
    %825 = vector.shape_cast %824 : vector<1x1x32xf32> to vector<1x32xf32>
    %cst_523 = arith.constant dense<0.000000e+00> : vector<12xf32>
    %826 = vector.multi_reduction <add>, %821, %cst_523 [1] : vector<12x32xf32> to vector<12xf32>
    %827 = vector.shape_cast %826 : vector<12xf32> to vector<12x1xf32>
    %cst_524 = arith.constant 3.200000e+01 : f32
    %828 = vector.broadcast %cst_524 : f32 to vector<12x1xf32>
    %829 = arith.divf %827, %828 : vector<12x1xf32>
    %830 = vector.broadcast %829 : vector<12x1xf32> to vector<12x32xf32>
    %831 = arith.subf %821, %830 : vector<12x32xf32>
    %832 = arith.mulf %831, %831 : vector<12x32xf32>
    %cst_525 = arith.constant dense<0.000000e+00> : vector<12xf32>
    %833 = vector.multi_reduction <add>, %832, %cst_525 [1] : vector<12x32xf32> to vector<12xf32>
    %834 = vector.shape_cast %833 : vector<12xf32> to vector<12x1xf32>
    %cst_526 = arith.constant 3.200000e+01 : f32
    %835 = vector.broadcast %cst_526 : f32 to vector<12x1xf32>
    %836 = arith.divf %834, %835 : vector<12x1xf32>
    %837 = vector.broadcast %829 : vector<12x1xf32> to vector<12x32xf32>
    %838 = arith.subf %821, %837 : vector<12x32xf32>
    %cst_527 = arith.constant 9.99999974E-6 : f32
    %839 = vector.broadcast %cst_527 : f32 to vector<12x1xf32>
    %840 = arith.addf %836, %839 : vector<12x1xf32>
    %841 = math.rsqrt %840 : vector<12x1xf32>
    %842 = vector.broadcast %841 : vector<12x1xf32> to vector<12x32xf32>
    %843 = arith.mulf %838, %842 : vector<12x32xf32>
    %844 = vector.broadcast %823 : vector<1x32xf32> to vector<12x32xf32>
    %845 = arith.mulf %843, %844 : vector<12x32xf32>
    %846 = vector.broadcast %825 : vector<1x32xf32> to vector<12x32xf32>
    %847 = arith.addf %845, %846 : vector<12x32xf32>
    %c2_528 = arith.constant 2 : index
    %c440_529 = arith.constant 440 : index
    %c0_530 = arith.constant 0 : index
    %848 = vector.load %arg8[%c2_528, %c440_529, %c0_530] : memref<3x752x32xf32, #tpu.memory_space<vmem>>, vector<1x32x32xf32>
    %849 = vector.shape_cast %848 : vector<1x32x32xf32> to vector<32x32xf32>
    %c2_531 = arith.constant 2 : index
    %c472_532 = arith.constant 472 : index
    %c0_533 = arith.constant 0 : index
    %850 = vector.load %arg8[%c2_531, %c472_532, %c0_533] : memref<3x752x32xf32, #tpu.memory_space<vmem>>, vector<1x1x32xf32>
    %851 = vector.shape_cast %850 : vector<1x1x32xf32> to vector<1x32xf32>
    %cst_534 = arith.constant dense<0.000000e+00> : vector<12x32xf32>
    %852 = tpu.matmul %847, %849, %cst_534 {dimension_numbers = #tpu.dot_dimension_numbers<[1], [0], [0], [1], [0, 0, 1, 1], [], []>} : vector<12x32xf32>, vector<32x32xf32>, vector<12x32xf32> -> vector<12x32xf32>
    %853 = vector.broadcast %851 : vector<1x32xf32> to vector<12x32xf32>
    %854 = arith.addf %852, %853 : vector<12x32xf32>
    %c2_535 = arith.constant 2 : index
    %c480_536 = arith.constant 480 : index
    %c0_537 = arith.constant 0 : index
    %855 = vector.load %arg8[%c2_535, %c480_536, %c0_537] : memref<3x752x32xf32, #tpu.memory_space<vmem>>, vector<1x32x32xf32>
    %856 = vector.shape_cast %855 : vector<1x32x32xf32> to vector<32x32xf32>
    %c2_538 = arith.constant 2 : index
    %c512_539 = arith.constant 512 : index
    %c0_540 = arith.constant 0 : index
    %857 = vector.load %arg8[%c2_538, %c512_539, %c0_540] : memref<3x752x32xf32, #tpu.memory_space<vmem>>, vector<1x1x32xf32>
    %858 = vector.shape_cast %857 : vector<1x1x32xf32> to vector<1x32xf32>
    %cst_541 = arith.constant dense<0.000000e+00> : vector<16x32xf32>
    %859 = tpu.matmul %768, %856, %cst_541 {dimension_numbers = #tpu.dot_dimension_numbers<[1], [0], [0], [1], [0, 0, 1, 1], [], []>} : vector<16x32xf32>, vector<32x32xf32>, vector<16x32xf32> -> vector<16x32xf32>
    %860 = vector.broadcast %858 : vector<1x32xf32> to vector<16x32xf32>
    %861 = arith.addf %859, %860 : vector<16x32xf32>
    %c2_542 = arith.constant 2 : index
    %c520_543 = arith.constant 520 : index
    %c0_544 = arith.constant 0 : index
    %862 = vector.load %arg8[%c2_542, %c520_543, %c0_544] : memref<3x752x32xf32, #tpu.memory_space<vmem>>, vector<1x32x32xf32>
    %863 = vector.shape_cast %862 : vector<1x32x32xf32> to vector<32x32xf32>
    %c2_545 = arith.constant 2 : index
    %c552_546 = arith.constant 552 : index
    %c0_547 = arith.constant 0 : index
    %864 = vector.load %arg8[%c2_545, %c552_546, %c0_547] : memref<3x752x32xf32, #tpu.memory_space<vmem>>, vector<1x1x32xf32>
    %865 = vector.shape_cast %864 : vector<1x1x32xf32> to vector<1x32xf32>
    %cst_548 = arith.constant dense<0.000000e+00> : vector<16x32xf32>
    %866 = tpu.matmul %768, %863, %cst_548 {dimension_numbers = #tpu.dot_dimension_numbers<[1], [0], [0], [1], [0, 0, 1, 1], [], []>} : vector<16x32xf32>, vector<32x32xf32>, vector<16x32xf32> -> vector<16x32xf32>
    %867 = vector.broadcast %865 : vector<1x32xf32> to vector<16x32xf32>
    %868 = arith.addf %866, %867 : vector<16x32xf32>
    %c0_549 = arith.constant 0 : index
    %c0_550 = arith.constant 0 : index
    %869 = vector.load %arg7[%c0_549, %c0_550] : memref<12x16xf32, #tpu.memory_space<vmem>>, vector<12x16xf32>
    %cst_551 = arith.constant dense<0.000000e+00> : vector<12x16xf32>
    %870 = tpu.matmul %854, %861, %cst_551 {dimension_numbers = #tpu.dot_dimension_numbers<[1], [1], [0], [0], [0, 0, 1, 0], [], []>} : vector<12x32xf32>, vector<16x32xf32>, vector<12x16xf32> -> vector<12x16xf32>
    %cst_552 = arith.constant 0.176776692 : f32
    %871 = vector.broadcast %cst_552 : f32 to vector<12x16xf32>
    %872 = arith.mulf %870, %871 : vector<12x16xf32>
    %873 = arith.addf %872, %869 : vector<12x16xf32>
    %cst_553 = arith.constant dense<0xFF800000> : vector<12xf32>
    %874 = vector.multi_reduction <maximumf>, %873, %cst_553 [1] : vector<12x16xf32> to vector<12xf32>
    %875 = vector.shape_cast %874 : vector<12xf32> to vector<12x1xf32>
    %876 = vector.broadcast %875 : vector<12x1xf32> to vector<12x16xf32>
    %877 = arith.subf %873, %876 : vector<12x16xf32>
    %878 = math.exp %877 : vector<12x16xf32>
    %cst_554 = arith.constant dense<0.000000e+00> : vector<12xf32>
    %879 = vector.multi_reduction <add>, %878, %cst_554 [1] : vector<12x16xf32> to vector<12xf32>
    %880 = vector.shape_cast %879 : vector<12xf32> to vector<12x1xf32>
    %881 = vector.broadcast %880 : vector<12x1xf32> to vector<12x16xf32>
    %882 = arith.divf %878, %881 : vector<12x16xf32>
    %cst_555 = arith.constant dense<0.000000e+00> : vector<12x32xf32>
    %883 = tpu.matmul %882, %868, %cst_555 {dimension_numbers = #tpu.dot_dimension_numbers<[1], [0], [0], [1], [0, 0, 1, 1], [], []>} : vector<12x16xf32>, vector<16x32xf32>, vector<12x32xf32> -> vector<12x32xf32>
    %c2_556 = arith.constant 2 : index
    %c560_557 = arith.constant 560 : index
    %c0_558 = arith.constant 0 : index
    %884 = vector.load %arg8[%c2_556, %c560_557, %c0_558] : memref<3x752x32xf32, #tpu.memory_space<vmem>>, vector<1x32x32xf32>
    %885 = vector.shape_cast %884 : vector<1x32x32xf32> to vector<32x32xf32>
    %c2_559 = arith.constant 2 : index
    %c592_560 = arith.constant 592 : index
    %c0_561 = arith.constant 0 : index
    %886 = vector.load %arg8[%c2_559, %c592_560, %c0_561] : memref<3x752x32xf32, #tpu.memory_space<vmem>>, vector<1x1x32xf32>
    %887 = vector.shape_cast %886 : vector<1x1x32xf32> to vector<1x32xf32>
    %cst_562 = arith.constant dense<0.000000e+00> : vector<12x32xf32>
    %888 = tpu.matmul %883, %885, %cst_562 {dimension_numbers = #tpu.dot_dimension_numbers<[1], [0], [0], [1], [0, 0, 1, 1], [], []>} : vector<12x32xf32>, vector<32x32xf32>, vector<12x32xf32> -> vector<12x32xf32>
    %889 = vector.broadcast %887 : vector<1x32xf32> to vector<12x32xf32>
    %890 = arith.addf %888, %889 : vector<12x32xf32>
    %891 = arith.addf %847, %890 : vector<12x32xf32>
    %c2_563 = arith.constant 2 : index
    %c720_564 = arith.constant 720 : index
    %c0_565 = arith.constant 0 : index
    %892 = vector.load %arg8[%c2_563, %c720_564, %c0_565] : memref<3x752x32xf32, #tpu.memory_space<vmem>>, vector<1x1x32xf32>
    %893 = vector.shape_cast %892 : vector<1x1x32xf32> to vector<1x32xf32>
    %c2_566 = arith.constant 2 : index
    %c728_567 = arith.constant 728 : index
    %c0_568 = arith.constant 0 : index
    %894 = vector.load %arg8[%c2_566, %c728_567, %c0_568] : memref<3x752x32xf32, #tpu.memory_space<vmem>>, vector<1x1x32xf32>
    %895 = vector.shape_cast %894 : vector<1x1x32xf32> to vector<1x32xf32>
    %cst_569 = arith.constant dense<0.000000e+00> : vector<12xf32>
    %896 = vector.multi_reduction <add>, %891, %cst_569 [1] : vector<12x32xf32> to vector<12xf32>
    %897 = vector.shape_cast %896 : vector<12xf32> to vector<12x1xf32>
    %cst_570 = arith.constant 3.200000e+01 : f32
    %898 = vector.broadcast %cst_570 : f32 to vector<12x1xf32>
    %899 = arith.divf %897, %898 : vector<12x1xf32>
    %900 = vector.broadcast %899 : vector<12x1xf32> to vector<12x32xf32>
    %901 = arith.subf %891, %900 : vector<12x32xf32>
    %902 = arith.mulf %901, %901 : vector<12x32xf32>
    %cst_571 = arith.constant dense<0.000000e+00> : vector<12xf32>
    %903 = vector.multi_reduction <add>, %902, %cst_571 [1] : vector<12x32xf32> to vector<12xf32>
    %904 = vector.shape_cast %903 : vector<12xf32> to vector<12x1xf32>
    %cst_572 = arith.constant 3.200000e+01 : f32
    %905 = vector.broadcast %cst_572 : f32 to vector<12x1xf32>
    %906 = arith.divf %904, %905 : vector<12x1xf32>
    %907 = vector.broadcast %899 : vector<12x1xf32> to vector<12x32xf32>
    %908 = arith.subf %891, %907 : vector<12x32xf32>
    %cst_573 = arith.constant 9.99999974E-6 : f32
    %909 = vector.broadcast %cst_573 : f32 to vector<12x1xf32>
    %910 = arith.addf %906, %909 : vector<12x1xf32>
    %911 = math.rsqrt %910 : vector<12x1xf32>
    %912 = vector.broadcast %911 : vector<12x1xf32> to vector<12x32xf32>
    %913 = arith.mulf %908, %912 : vector<12x32xf32>
    %914 = vector.broadcast %893 : vector<1x32xf32> to vector<12x32xf32>
    %915 = arith.mulf %913, %914 : vector<12x32xf32>
    %916 = vector.broadcast %895 : vector<1x32xf32> to vector<12x32xf32>
    %917 = arith.addf %915, %916 : vector<12x32xf32>
    %c2_574 = arith.constant 2 : index
    %c40_575 = arith.constant 40 : index
    %c0_576 = arith.constant 0 : index
    %918 = vector.load %arg9[%c2_574, %c40_575, %c0_576] : memref<3x80x64xf32, #tpu.memory_space<vmem>>, vector<1x32x64xf32>
    %919 = vector.shape_cast %918 : vector<1x32x64xf32> to vector<32x64xf32>
    %c2_577 = arith.constant 2 : index
    %c72_578 = arith.constant 72 : index
    %c0_579 = arith.constant 0 : index
    %920 = vector.load %arg9[%c2_577, %c72_578, %c0_579] : memref<3x80x64xf32, #tpu.memory_space<vmem>>, vector<1x1x64xf32>
    %921 = vector.shape_cast %920 : vector<1x1x64xf32> to vector<1x64xf32>
    %cst_580 = arith.constant dense<0.000000e+00> : vector<12x64xf32>
    %922 = tpu.matmul %917, %919, %cst_580 {dimension_numbers = #tpu.dot_dimension_numbers<[1], [0], [0], [1], [0, 0, 1, 1], [], []>} : vector<12x32xf32>, vector<32x64xf32>, vector<12x64xf32> -> vector<12x64xf32>
    %923 = vector.broadcast %921 : vector<1x64xf32> to vector<12x64xf32>
    %924 = arith.addf %922, %923 : vector<12x64xf32>
    %cst_581 = arith.constant 0.000000e+00 : f32
    %925 = vector.broadcast %cst_581 : f32 to vector<12x64xf32>
    %926 = arith.maximumf %924, %925 : vector<12x64xf32>
    %c2_582 = arith.constant 2 : index
    %c600_583 = arith.constant 600 : index
    %c0_584 = arith.constant 0 : index
    %927 = vector.load %arg8[%c2_582, %c600_583, %c0_584] : memref<3x752x32xf32, #tpu.memory_space<vmem>>, vector<1x64x32xf32>
    %928 = vector.shape_cast %927 : vector<1x64x32xf32> to vector<64x32xf32>
    %c2_585 = arith.constant 2 : index
    %c664_586 = arith.constant 664 : index
    %c0_587 = arith.constant 0 : index
    %929 = vector.load %arg8[%c2_585, %c664_586, %c0_587] : memref<3x752x32xf32, #tpu.memory_space<vmem>>, vector<1x1x32xf32>
    %930 = vector.shape_cast %929 : vector<1x1x32xf32> to vector<1x32xf32>
    %cst_588 = arith.constant dense<0.000000e+00> : vector<12x32xf32>
    %931 = tpu.matmul %926, %928, %cst_588 {dimension_numbers = #tpu.dot_dimension_numbers<[1], [0], [0], [1], [0, 0, 1, 1], [], []>} : vector<12x64xf32>, vector<64x32xf32>, vector<12x32xf32> -> vector<12x32xf32>
    %932 = vector.broadcast %930 : vector<1x32xf32> to vector<12x32xf32>
    %933 = arith.addf %931, %932 : vector<12x32xf32>
    %934 = arith.addf %917, %933 : vector<12x32xf32>
    %c2_589 = arith.constant 2 : index
    %c736_590 = arith.constant 736 : index
    %c0_591 = arith.constant 0 : index
    %935 = vector.load %arg8[%c2_589, %c736_590, %c0_591] : memref<3x752x32xf32, #tpu.memory_space<vmem>>, vector<1x1x32xf32>
    %936 = vector.shape_cast %935 : vector<1x1x32xf32> to vector<1x32xf32>
    %c2_592 = arith.constant 2 : index
    %c744_593 = arith.constant 744 : index
    %c0_594 = arith.constant 0 : index
    %937 = vector.load %arg8[%c2_592, %c744_593, %c0_594] : memref<3x752x32xf32, #tpu.memory_space<vmem>>, vector<1x1x32xf32>
    %938 = vector.shape_cast %937 : vector<1x1x32xf32> to vector<1x32xf32>
    %cst_595 = arith.constant dense<0.000000e+00> : vector<12xf32>
    %939 = vector.multi_reduction <add>, %934, %cst_595 [1] : vector<12x32xf32> to vector<12xf32>
    %940 = vector.shape_cast %939 : vector<12xf32> to vector<12x1xf32>
    %cst_596 = arith.constant 3.200000e+01 : f32
    %941 = vector.broadcast %cst_596 : f32 to vector<12x1xf32>
    %942 = arith.divf %940, %941 : vector<12x1xf32>
    %943 = vector.broadcast %942 : vector<12x1xf32> to vector<12x32xf32>
    %944 = arith.subf %934, %943 : vector<12x32xf32>
    %945 = arith.mulf %944, %944 : vector<12x32xf32>
    %cst_597 = arith.constant dense<0.000000e+00> : vector<12xf32>
    %946 = vector.multi_reduction <add>, %945, %cst_597 [1] : vector<12x32xf32> to vector<12xf32>
    %947 = vector.shape_cast %946 : vector<12xf32> to vector<12x1xf32>
    %cst_598 = arith.constant 3.200000e+01 : f32
    %948 = vector.broadcast %cst_598 : f32 to vector<12x1xf32>
    %949 = arith.divf %947, %948 : vector<12x1xf32>
    %950 = vector.broadcast %942 : vector<12x1xf32> to vector<12x32xf32>
    %951 = arith.subf %934, %950 : vector<12x32xf32>
    %cst_599 = arith.constant 9.99999974E-6 : f32
    %952 = vector.broadcast %cst_599 : f32 to vector<12x1xf32>
    %953 = arith.addf %949, %952 : vector<12x1xf32>
    %954 = math.rsqrt %953 : vector<12x1xf32>
    %955 = vector.broadcast %954 : vector<12x1xf32> to vector<12x32xf32>
    %956 = arith.mulf %951, %955 : vector<12x32xf32>
    %957 = vector.broadcast %936 : vector<1x32xf32> to vector<12x32xf32>
    %958 = arith.mulf %956, %957 : vector<12x32xf32>
    %959 = vector.broadcast %938 : vector<1x32xf32> to vector<12x32xf32>
    %960 = arith.addf %958, %959 : vector<12x32xf32>
    %c2_600 = arith.constant 2 : index
    %c0_601 = arith.constant 0 : index
    %c0_602 = arith.constant 0 : index
    %961 = vector.load %arg10[%c2_600, %c0_601, %c0_602] : memref<3x40x128xf32, #tpu.memory_space<vmem>>, vector<1x32x128xf32>
    %962 = vector.shape_cast %961 : vector<1x32x128xf32> to vector<32x128xf32>
    %c2_603 = arith.constant 2 : index
    %c32_604 = arith.constant 32 : index
    %c0_605 = arith.constant 0 : index
    %963 = vector.load %arg10[%c2_603, %c32_604, %c0_605] : memref<3x40x128xf32, #tpu.memory_space<vmem>>, vector<1x1x128xf32>
    %964 = vector.shape_cast %963 : vector<1x1x128xf32> to vector<1x128xf32>
    %cst_606 = arith.constant dense<0.000000e+00> : vector<12x128xf32>
    %965 = tpu.matmul %960, %962, %cst_606 {dimension_numbers = #tpu.dot_dimension_numbers<[1], [0], [0], [1], [0, 0, 1, 1], [], []>} : vector<12x32xf32>, vector<32x128xf32>, vector<12x128xf32> -> vector<12x128xf32>
    %966 = vector.broadcast %964 : vector<1x128xf32> to vector<12x128xf32>
    %967 = arith.addf %965, %966 : vector<12x128xf32>
    %cst_607 = arith.constant 0.000000e+00 : f32
    %968 = vector.broadcast %cst_607 : f32 to vector<12x128xf32>
    %969 = arith.subf %968, %323 : vector<12x128xf32>
    %970 = math.exp %969 : vector<12x128xf32>
    %cst_608 = arith.constant 1.000000e+00 : f32
    %971 = vector.broadcast %cst_608 : f32 to vector<12x128xf32>
    %972 = arith.addf %971, %970 : vector<12x128xf32>
    %cst_609 = arith.constant 1.000000e+00 : f32
    %973 = vector.broadcast %cst_609 : f32 to vector<12x128xf32>
    %974 = arith.divf %973, %972 : vector<12x128xf32>
    %cst_610 = arith.constant 1.000000e+00 : f32
    %975 = vector.broadcast %cst_610 : f32 to vector<12x128xf32>
    %976 = arith.subf %975, %974 : vector<12x128xf32>
    %977 = arith.mulf %645, %976 : vector<12x128xf32>
    %cst_611 = arith.constant 1.000000e+00 : f32
    %978 = vector.broadcast %cst_611 : f32 to vector<12x128xf32>
    %979 = arith.subf %978, %976 : vector<12x128xf32>
    %980 = arith.mulf %967, %979 : vector<12x128xf32>
    %981 = arith.addf %977, %980 : vector<12x128xf32>
    %c0_612 = arith.constant 0 : index
    %c0_613 = arith.constant 0 : index
    %982 = vector.load %arg11[%c0_612, %c0_613] : memref<12x128xf32, #tpu.memory_space<vmem>>, vector<12x128xf32>
    tpu.vector_store %arg11[%c0_612, %c0_613], %981 {strides = array<i32>} : memref<12x128xf32, #tpu.memory_space<vmem>>, vector<12x128xf32>,
    return
  }
}

</mosaic_0001>

<bundles_post_ra>
// kernel: tile.19
= control target key start
LH: loop header
LB: loop body
LE: loop exit
PB: predicated region body
PF: predicated region fallthrough
CT: control target
= control target key end

     0   :  { %vm3_vm0 = vcmask 261120   ;;  %s34_s0 = inlined_call_operand.vmem [shape: f32[2,6,32], index: 0, kind: input, shape index: {}]   ;;  %s35_s1 = inlined_call_operand.vmem [shape: f32[12,32], index: 1, kind: output, shape index: {}]  }
   0x1   :  { %v2_v0 = vld [vmem:[%s34_s0] sm:$0x3f]   ;;  %v10_v1 = vld [vmem:[%s34_s0 + $0x8] sm:$0x3f]  }
   0x2   :  { %4 = vst.msk [vmem:[%s35_s1] sm:$0x3f] %vm3_vm0, %v2_v0   ;;  %11 = vst.msk [vmem:[%s35_s1 + $0x6] sm:$0x3f] %vm3_vm0, %v10_v1  }

// kernel: squeeze.2
= control target key start
LH: loop header
LB: loop body
LE: loop exit
PB: predicated region body
PF: predicated region fallthrough
CT: control target
= control target key end

     0   :  { %vm3_vm0 = vcmask 97280   ;;  %s34_s0 = inlined_call_operand.vmem [shape: f32[2,6,12,1], index: 0, kind: input, shape index: {}]   ;;  %s35_s1 = inlined_call_operand.vmem [shape: f32[12,12], index: 1, kind: output, shape index: {}]  }
   0x1   :  { %v2_v0 = vld [vmem:[%s34_s0] sm:$0x3f]   ;;  %v10_v1 = vld [vmem:[%s34_s0 + $0x8] sm:$0x3f]  }
   0x2   :  { %4 = vst.msk [vmem:[%s35_s1] sm:$0x3f] %vm3_vm0, %v2_v0   ;;  %11 = vst.msk [vmem:[%s35_s1 + $0x6] sm:$0x3f] %vm3_vm0, %v10_v1  }

// kernel: _lambda_.1
= control target key start
LH: loop header
LB: loop body
LE: loop exit
PB: predicated region body
PF: predicated region fallthrough
CT: control target
= control target key end

     0   :  { %16 = vsyncpa [#allocation3], 0  ;;  %s10607_s0 = inlined_call_operand.hbm [shape: f32[16,16], index: 0, kind: input, shape index: {}]   ;;  %s10608_s1 = inlined_call_operand.vmem [shape: f32[12,16], index: 1, kind: input, shape index: {}]   ;;  %s10609_s2 = inlined_call_operand.vmem [shape: f32[12,16], index: 2, kind: input, shape index: {}]   ;;  %s10610_s3 = inlined_call_operand.vmem [shape: f32[16,32], index: 3, kind: input, shape index: {}]   ;;  %s10611_s4 = inlined_call_operand.vmem [shape: f32[12,32], index: 4, kind: input, shape index: {}]   ;;  %s10612_s5 = inlined_call_operand.vmem [shape: f32[16,16], index: 5, kind: input, shape index: {}]   ;;  %s10613_s6 = inlined_call_operand.vmem [shape: f32[12,12], index: 6, kind: input, shape index: {}]   ;;  %s10614_s7 = inlined_call_operand.vmem [shape: f32[12,16], index: 7, kind: input, shape index: {}]   ;;  %s10615_s8 = inlined_call_operand.hbm [shape: f32[3,752,32], index: 8, kind: input, shape index: {}]   ;;  %s10616_s9 = inlined_call_operand.hbm [shape: f32[3,80,64], index: 9, kind: input, shape index: {}]   ;;  %s10617_s10 = inlined_call_operand.hbm [shape: f32[3,40,128], index: 10, kind: input, shape index: {}]   ;;  %s10618_s11 = inlined_call_operand.vmem [shape: f32[12,128], index: 11, kind: output, shape index: {}]  }
   0x1   :  { %17 = vsyncpa [#allocation5], 0 }
   0x2   :  { %18 = vsyncpa [#allocation8], 0  ;;  %s9902_s17 = smov [#allocation4]   ;;  %s9903_s19 = smov [#allocation2]  }
   0x3   :  { %s50_s18 = sshll.u32 %s9902_s17, 4  ;;  %s24_s20 = sshll.u32 %s9903_s19, 4  ;;  %s51_s18 = int_to_ptr.vmem [resolvable:$true] %s50_s18  ;;  %s9969_s20 = int_to_ptr.vmem [resolvable:$true] %s24_s20 }
   0x4   :  { %s9808_s23 = scalar_lea.hbm %s10615_s8, 36096 }
   0x5   :  { %p9809_p0 = scmp.ne.s32.totalorder %s10615_s8, %s9808_s23  ;;  %p9812_p1 = scmp.lt.u32.totalorder %s9808_s23, %s10615_s8 }
   0x7   :  { %p9814_p2 = pnand %p9812_p1, %p9809_p0 }
   0x9   :  { %9817 = shalt.err (!%p9814_p2)
}
   0xa   :  { %s9818_s28 = scalar_lea.vmem %s51_s18, 36096  ;;  %p9823_p4 = scmp.lt.s32.totalorder %s51_s18, %s51_s18 }
   0xb   :  { %p9819_p3 = scmp.ne.s32.totalorder %s51_s18, %s9818_s28  ;;  %p9824_p5 = scmp.lt.s32.totalorder %s9818_s28, %s9818_s28 }
   0xd   :  { %p9825_p6 = por %p9824_p5, %p9823_p4 }
   0xf   :  { %p9826_p7 = pnand %p9825_p6, %p9819_p3 }
  0x11   :  { %9829 = shalt.err (!%p9826_p7)
}
  0x12   :  { %s9904_s29 = smov 128   ;;  %s9905_s30 = smov 8  }
  0x13   :  { %56 = dma.hbm_to_vmem [thread:$0]  %s10615_s8, 36096, %s51_s18, [#allocation5], %s9904_s29, %s9904_s29, %s9905_s30  }
  0x14   :  { %s9830_s16 = scalar_lea.hbm %s10607_s0, 256 }
  0x15   :  { %p9831_p8 = scmp.ne.s32.totalorder %s10607_s0, %s9830_s16  ;;  %p9834_p9 = scmp.lt.u32.totalorder %s9830_s16, %s10607_s0 }
  0x17   :  { %p9836_p10 = pnand %p9834_p9, %p9831_p8 }
  0x19   :  { %9839 = shalt.err (!%p9836_p10)
}
  0x1a   :  { %s9840_s23 = scalar_lea.vmem %s9969_s20, 256  ;;  %p9845_p12 = scmp.lt.s32.totalorder %s9969_s20, %s9969_s20 }
  0x1b   :  { %p9841_p11 = scmp.ne.s32.totalorder %s9969_s20, %s9840_s23  ;;  %p9846_p13 = scmp.lt.s32.totalorder %s9840_s23, %s9840_s23 }
  0x1d   :  { %p9847_p0 = por %p9846_p13, %p9845_p12 }
  0x1f   :  { %p9848_p1 = pnand %p9847_p0, %p9841_p11 }
  0x21   :  { %9851 = shalt.err (!%p9848_p1)
}
  0x22   :  { %30 = dma.hbm_to_vmem [thread:$0]  %s10607_s0, 256, %s9969_s20, [#allocation3], %s9904_s29, %s9904_s29, %s9905_s30  }
  0x23   :  { %s9906_s24 = smov [#allocation6]   ;;  %s9907_s26 = smov [#allocation7]  }
  0x24   :  { %s62_s25 = sshll.u32 %s9906_s24, 4  ;;  %s74_s27 = sshll.u32 %s9907_s26, 4  ;;  %s63_s25 = int_to_ptr.vmem [resolvable:$true] %s62_s25  ;;  %s10006_s27 = int_to_ptr.vmem [resolvable:$true] %s74_s27 }
  0x25   :  { %s9852_s13 = scalar_lea.hbm %s10616_s9, 3840 }
  0x26   :  { %p9853_p2 = scmp.ne.s32.totalorder %s10616_s9, %s9852_s13  ;;  %p9856_p3 = scmp.lt.u32.totalorder %s9852_s13, %s10616_s9 }
  0x28   :  { %p9858_p4 = pnand %p9856_p3, %p9853_p2 }
  0x2a   :  { %9861 = shalt.err (!%p9858_p4)
}
  0x2b   :  { %s9862_s0 = scalar_lea.vmem %s63_s25, 3840  ;;  %p9867_p6 = scmp.lt.s32.totalorder %s63_s25, %s63_s25 }
  0x2c   :  { %p9863_p5 = scmp.ne.s32.totalorder %s63_s25, %s9862_s0  ;;  %p9868_p7 = scmp.lt.s32.totalorder %s9862_s0, %s9862_s0 }
  0x2e   :  { %p9869_p8 = por %p9868_p7, %p9867_p6 }
  0x30   :  { %p9870_p9 = pnand %p9869_p8, %p9863_p5 }
  0x32   :  { %9873 = shalt.err (!%p9870_p9)
}
  0x33   :  { %68 = dma.hbm_to_vmem [thread:$0]  %s10616_s9, 3840, %s63_s25, [#allocation5], %s9904_s29, %s9904_s29, %s9905_s30  }
  0x34   :  { %s9874_s23 = scalar_lea.hbm %s10617_s10, 1920 }
  0x35   :  { %p9875_p10 = scmp.ne.s32.totalorder %s10617_s10, %s9874_s23  ;;  %p9878_p11 = scmp.lt.u32.totalorder %s9874_s23, %s10617_s10 }
  0x37   :  { %p9880_p12 = pnand %p9878_p11, %p9875_p10 }
  0x39   :  { %9883 = shalt.err (!%p9880_p12)
}
  0x3a   :  { %s9884_s28 = scalar_lea.vmem %s10006_s27, 1920  ;;  %p9889_p0 = scmp.lt.s32.totalorder %s10006_s27, %s10006_s27 }
  0x3b   :  { %p9885_p13 = scmp.ne.s32.totalorder %s10006_s27, %s9884_s28  ;;  %p9890_p1 = scmp.lt.s32.totalorder %s9884_s28, %s9884_s28 }
  0x3d   :  { %p9891_p2 = por %p9890_p1, %p9889_p0 }
  0x3f   :  { %p9892_p3 = pnand %p9891_p2, %p9885_p13 }
  0x41   :  { %9895 = shalt.err (!%p9892_p3)
}
  0x42   :  { %80 = dma.hbm_to_vmem [thread:$0]  %s10617_s10, 1920, %s10006_s27, [#allocation8], %s9904_s29, %s9904_s29, %s9905_s30  }
  0x43   :  { %9896 = dma.done.wait [#allocation3], 256  }
  0x44   :  { %9897 = vsyncadd [#allocation3], 4294967040 }
  0x45   :  { %9898 = dma.done.wait [#allocation5], 39936  }
  0x46   :  { %9899 = vsyncadd [#allocation5], 4294927360 }
  0x47   :  { %9900 = dma.done.wait [#allocation8], 1920  }
  0x48   :  { %9901 = vsyncadd [#allocation8], 4294965376  ;;  %vm106_vm0 = vcmask 130048   ;;  %v99_v0 = vld [vmem:[#allocation4] sm:$0xff]  ;;  %v100_v1 = vld [vmem:[#allocation4 + $0x8] sm:$0xff]  ;;  %vm201_vm1 = vcmask 261120  }
  0x49   :  { %v97_v2 = vld [vmem:[#allocation2] sm:$0xff]  ;;  %v9059_v3 = vpack.c.bf16 %v100_v1, %v99_v0  ;;  %v192_v4 = vld [vmem:[#allocation4 + $0x18] sm:$0xff]  ;;  %v193_v5 = vld [vmem:[#allocation4 + $0x20] sm:$0xff]  ;;  %vm885_vm3 = vcmask 523264   ;;  %vm1482_vm4 = vcmask 1043456   ;;  %vm9908_vm5 = vmmov 1  }
  0x4a   :  { %8286 = vmatprep.mubr.msk.f32.mxu0 %vm106_vm0, %v97_v2  ;;  %v9063_v6 = vpack.c.bf16 %v193_v5, %v192_v4  ;;  %v283_v7 = vld [vmem:[#allocation4 + $0x40] sm:$0xff]  ;;  %v284_v8 = vld [vmem:[#allocation4 + $0x48] sm:$0xff]  ;;  %v98_v10 = vld [vmem:[#allocation2 + $0x8] sm:$0xff]  ;;  %vm1456_vm7 = vcmask 93184   ;;  %vm1452_vm8 = vcmask 97280   ;;  %vm1658_vm9 = vcmask 257024  }
  0x4b   :  { %9060 = vmatprep.subr.bf16.mxu0 %v9059_v3  ;;  %v9071_v9 = vpack.c.bf16 %v284_v8, %v283_v7  ;;  %v194_v11 = vld [vmem:[#allocation4 + $0x28] sm:$0xff]  ;;  %v195_v12 = vld [vmem:[#allocation4 + $0x30] sm:$0xff]  ;;  %v286_v15 = vld [vmem:[#allocation4 + $0x58] sm:$0xff]  ;;  %vm2054_vm10 = vcmask 125952  }
  0x4c   :  { %9062 = vmatpush3.bf16.msra.mxu0 %v9059_v3  ;;  %9064 = vmatprep.subr.bf16.mxu1 %v9063_v6  ;;  %v9067_v13 = vpack.c.bf16 %v195_v12, %v194_v11  ;;  %v285_v14 = vld [vmem:[#allocation4 + $0x50] sm:$0xff]  ;;  %v367_v17 = vld [vmem:[#allocation4 + $0x68] sm:$0xff]  ;;  %v189_v25 = vld [vmem:[%s10610_s3 + $0x8] sm:$0xff] }
  0x4d   :  { %9066 = vmatpush3.bf16.msra.mxu1 %v9063_v6  ;;  %9072 = vmatprep.subr.bf16.mxu0 %v9071_v9  ;;  %v9075_v16 = vpack.c.bf16 %v286_v15, %v285_v14  ;;  %v368_v18 = vld [vmem:[#allocation4 + $0x70] sm:$0xff]  ;;  %v369_v27 = vld [vmem:[#allocation4 + $0x78] sm:$0xff]  ;;  %v370_v28 = vld [vmem:[#allocation4 + $0x80] sm:$0xff] }
  0x4e   :  { %9068 = vmatprep.subr.bf16.mxu1 %v9067_v13  ;;  %v9079_v19 = vpack.c.bf16 %v368_v18, %v367_v17  ;;  %v7598_v20 = vld [vmem:[#allocation4 + $0x10] ss:$0 sm:$0xff]  ;;  %v9083_v31 = vpack.c.bf16 %v370_v28, %v369_v27  ;;  %v7604_v32 = vld [vmem:[#allocation4 + $0x60] ss:$0 sm:$0xff]  ;;  %v7601_v33 = vld [vmem:[#allocation4 + $0x38] ss:$0 sm:$0xff] }
  0x4f   :  { %8287 = vmatmul.mubr.msk.f32.vlgmr.msra.gmra.mrb[0].mxu0 %vm106_vm0, %v98_v10  ;;  %v188_v24 = vld [vmem:[%s10610_s3] sm:$0xff]  ;;  %vm10069_vm2 = vmpackc.low %vm201_vm1, %vm201_vm1  ;;  %v7607_v43 = vld [vmem:[#allocation4 + $0x88] ss:$0 sm:$0xff] }
  0x50   :  { %9074 = vmatpush3.bf16.msra.mxu0 %v9071_v9  ;;  %v451_v52 = vld [vmem:[%s10612_s5] sm:$0xff]  ;;  %v452_v55 = vld [vmem:[%s10612_s5 + $0x8] sm:$0xff]  ;;  %v649_v8 = vld [vmem:[#allocation4 + $0xa0] sm:$0xff] }
  0x51   :  { %9070 = vmatpush3.bf16.msra.mxu1 %v9067_v13  ;;  %9076 = vmatprep.subr.bf16.mxu0 %v9075_v16  ;;  %v647_v6 = vld [vmem:[#allocation4 + $0x90] sm:$0xff]  ;;  %v648_v7 = vld [vmem:[#allocation4 + $0x98] sm:$0xff]  ;;  %v650_v10 = vld [vmem:[#allocation4 + $0xa8] sm:$0xff] }
  0x52   :  { %9080 = vmatprep.subr.bf16.mxu1 %v9079_v19  ;;  %v9097_v9 = vpack.c.bf16 %v648_v7, %v647_v6  ;;  %v9101_v11 = vpack.c.bf16 %v650_v10, %v649_v8  ;;  %v93_v10 = vld [vmem:[%s10608_s1] sm:$0xff]  ;;  %vm10140_vm6 = vmpackc.low %vm1482_vm4, %vm9908_vm5 }
  0x54   :  { %9078 = vmatpush3.bf16.msra.mxu0 %v9075_v16 }
 0x122   :  { %v8288_v21 = vpop.f32.mrb[0].mxu0 }
 0x123   :  { %v185_v22 = vadd.f32 %v8288_v21, %v7598_v20  ;;  %v179_v23 = vpop.f32.mrb[1].mxu0 }
 0x124   :  { %v180_v26 = vadd.f32 %v7598_v20, %v179_v23  ;;  %v7616_v20 = vld [vmem:[#allocation4 + $0xb0] ss:$0 sm:$0xff] }
 0x125   :  { %v10053_v30 = vadd.f32 %v189_v25, %v185_v22 }
 0x126   :  { %v10051_v29 = vadd.f32 %v188_v24, %v180_v26 }
 0x128   :  { %8297 = vmatprep.mubr.msk.f32.mxu1 %vm201_vm1, %v10051_v29  ;;  %8308 = vmatprep.mubr.msk.f32.mxu0 %vm201_vm1, %v10051_v29 }
 0x129   :  { %8298 = vmatmul.mubr.msk.f32.vlgmr.msra.gmra.mrb[0].mxu1 %vm201_vm1, %v10053_v30  ;;  %8309 = vmatmul.mubr.msk.f32.vlgmr.msra.gmra.mrb[2].mxu0 %vm201_vm1, %v10053_v30 }
 0x12a   :  { %9082 = vmatpush3.bf16.msra.mxu1 %v9079_v19  ;;  %8319 = vmatprep.mubr.msk.f32.mxu1 %vm201_vm1, %v10051_v29 }
 0x12b   :  { %9084 = vmatprep.subr.bf16.mxu1 %v9083_v31 }
 0x12e   :  { %9086 = vmatpush3.bf16.msra.mxu1 %v9083_v31 }
 0x131   :  { %8320 = vmatmul.mubr.msk.f32.vlgmr.msra.gmra.mrb[2].mxu1 %vm201_vm1, %v10053_v30 }
 0x1fc   :  { %v8299_v34 = vpop.f32.mrb[0].mxu1  ;;  %v8310_v35 = vpop.f32.mrb[2].mxu0 }
 0x1fd   :  { %v364_v36 = vadd.f32 %v8310_v35, %v7604_v32  ;;  %v274_v37 = vpop.f32.mrb[1].mxu1  ;;  %v358_v38 = vpop.f32.mrb[3].mxu0  ;;  %v280_v48 = vadd.f32 %v8299_v34, %v7601_v33 }
 0x1fe   :  { %v275_v39 = vadd.f32 %v7601_v33, %v274_v37  ;;  %v359_v40 = vadd.f32 %v7604_v32, %v358_v38 }
 0x200   :  { %v9087_v42 = vpack.c.bf16 %v364_v36, %v359_v40  ;;  %8326 = vmatprep.mubr.msk.f32.mxu0 %vm201_vm1, %v275_v39  ;;  %v781_v40 = vld [vmem:[#allocation6 + $0x8] sm:$0xff] }
 0x202   :  { %9089 = vmatprep.subr.msk.bf16.mxu0 %vm10069_vm2, %v9087_v42 }
 0x203   :  { %9092 = vmatpush3.bf16.xpose.msk.msra.mxu0 %vm10069_vm2, %v9087_v42 }
 0x204   :  { %v8321_v44 = vpop.f32.mrb[2].mxu1  ;;  %9098 = vmatprep.subr.bf16.mxu0 %v9097_v9 }
 0x205   :  { %v448_v45 = vadd.f32 %v8321_v44, %v7607_v43  ;;  %v442_v46 = vpop.f32.mrb[3].mxu1  ;;  %v783_v44 = vld [vmem:[#allocation6 + $0x18] sm:$0xff] }
 0x206   :  { %v443_v47 = vadd.f32 %v7607_v43, %v442_v46  ;;  %v782_v43 = vld [vmem:[#allocation6 + $0x10] sm:$0xff] }
 0x207   :  { %v1009_v46 = vld [vmem:[#allocation4 + $0x100] sm:$0xff] }
 0x208   :  { %v9093_v49 = vpack.c.bf16 %v448_v45, %v443_v47  ;;  %v9109_v45 = vpack.c.bf16 %v783_v44, %v782_v43  ;;  %v1010_v47 = vld [vmem:[#allocation4 + $0x108] sm:$0xff]  ;;  %v1098_v43 = vld [vmem:[%s10611_s4 + $0x8] sm:$0xf] }
 0x20a   :  { %9094 = vmatprep.subr.bf16.mxu1 %v9093_v49  ;;  %8327 = vmatmul.mubr.msk.f32.vlgmr.msra.gmra.mrb[4].mxu0 %vm201_vm1, %v280_v48  ;;  %v9129_v48 = vpack.c.bf16 %v1010_v47, %v1009_v46  ;;  %v1194_v46 = vld [vmem:[#allocation4 + $0x158] sm:$0xff] }
 0x20b   :  { %9096 = vmatpush3.bf16.msra.mxu1 %v9093_v49  ;;  %9100 = vmatpush3.bf16.msra.mxu0 %v9097_v9  ;;  %v872_v49 = vld [vmem:[#allocation4 + $0xb8] sm:$0xff] }
 0x20c   :  { %9102 = vmatprep.subr.bf16.mxu0 %v9101_v11 }
 0x20f   :  { %9104 = vmatpush3.bf16.msra.mxu0 %v9101_v11  ;;  %v94_v11 = vld [vmem:[%s10608_s1 + $0x8] sm:$0xf] }
 0x2dd   :  { %v8328_v50 = vpop.f32.mrb[4].mxu0 }
 0x2de   :  { %v531_v51 = vpop.f32.mrb[5].mxu0  ;;  %v541_v53 = vmul.f32 0.17677669, %v8328_v50  ;;  %v873_v50 = vld [vmem:[#allocation4 + $0xc0] sm:$0xff] }
 0x2df   :  { %v540_v54 = vmul.f32 0.17677669, %v531_v51  ;;  %v874_v51 = vld [vmem:[#allocation4 + $0xc8] sm:$0xff] }
 0x2e0   :  { %v543_v58 = vadd.f32 %v541_v53, %v452_v55  ;;  %v875_v53 = vld [vmem:[#allocation4 + $0xd0] sm:$0xff]  ;;  %v876_v55 = vld [vmem:[#allocation4 + $0xd8] sm:$0xff] }
 0x2e1   :  { %v542_v56 = vadd.f32 %v540_v54, %v451_v52  ;;  %v9113_v52 = vpack.c.bf16 %v873_v50, %v872_v49  ;;  %v9117_v54 = vpack.c.bf16 %v875_v53, %v874_v51 }
 0x2e2   :  { %v547_v59 = vsel %vm106_vm0, %v543_v58, -inf }
 0x2e3   :  { %v544_v57 = vsel %vm106_vm0, %v542_v56, -inf  ;;  %9114 = vmatprep.subr.bf16.mxu0 %v9113_v52 }
 0x2e4   :  { %545 = vmax.xlane.f32.xlu0 %v544_v57 }
 0x2e8   :  { %548 = vmax.xlane.f32.xlu0 %v547_v59 }
 0x371   :  { %v546_v60 = vpop.xlane.xlu0 %545 }
 0x372   :  { %v550_v61 = vsub.f32 %v542_v56, %v546_v60  ;;  %v877_v56 = vld [vmem:[#allocation4 + $0xe0] sm:$0xff] }
 0x373   :  { %v9121_v57 = vpack.c.bf16 %v877_v56, %v876_v55  ;;  %v7638_v56 = vld [vmem:[#allocation4 + $0x188] ss:$0 sm:$0xff] }
 0x374   :  { %v552_v62 = vmul.f32 1.442695, %v550_v61 }
 0x375   :  { %v549_v63 = vpop.xlane.xlu0 %548 }
 0x376   :  { %9642 = vpow2.f32 %v552_v62  ;;  %v551_v0 = vsub.f32 %v543_v58, %v549_v63 }
 0x378   :  { %v554_v1 = vmul.f32 1.442695, %v551_v0 }
 0x37a   :  { %9644 = vpow2.f32 %v554_v1  ;;  %v7619_v1 = vld [vmem:[#allocation4 + $0x2a0] ss:$0 sm:$0xff] }
 0x380   :  { %v9643_v2 = vpop.eup %9642 }
 0x381   :  { %v556_v3 = vsel %vm106_vm0, %v9643_v2, 0.0 }
 0x382   :  { %557 = vadd.xlane.f32.xlu1 %v556_v3 }
 0x384   :  { %v9645_v4 = vpop.eup %9644 }
 0x385   :  { %v559_v5 = vsel %vm106_vm0, %v9645_v4, 0.0 }
 0x386   :  { %560 = vadd.xlane.f32.xlu1 %v559_v5  ;;  %v7620_v5 = vld [vmem:[#allocation4 + $0x2a8] ss:$0 sm:$0xff] }
 0x40f   :  { %v558_v12 = vpop.xlane.xlu1 %557 }
 0x410   :  { %9646 = vrcp.f32 %v558_v12  ;;  %v878_v12 = vld [vmem:[#allocation4 + $0xe8] sm:$0xff] }
 0x413   :  { %v561_v13 = vpop.xlane.xlu1 %560 }
 0x414   :  { %9648 = vrcp.f32 %v561_v13  ;;  %v879_v13 = vld [vmem:[#allocation4 + $0xf0] sm:$0xff] }
 0x41a   :  { %v9647_v14 = vpop.eup %9646 }
 0x41b   :  { %v563_v15 = vmul.f32 %v9647_v14, %v9643_v2  ;;  %v9125_v14 = vpack.c.bf16 %v879_v13, %v878_v12  ;;  %v1359_v12 = vld [vmem:[%s10613_s6] sm:$0xff] }
 0x41d   :  { %8333 = vmatprep.mubr.msk.f32.mxu1 %vm106_vm0, %v563_v15  ;;  %v1101_v15 = vld [vmem:[#allocation4 + $0x118] sm:$0xff] }
 0x41e   :  { %v9649_v16 = vpop.eup %9648 }
 0x41f   :  { %v565_v17 = vmul.f32 %v9649_v16, %v9645_v4  ;;  %v1102_v16 = vld [vmem:[#allocation4 + $0x120] sm:$0xff] }
 0x421   :  { %8334 = vmatmul.mubr.msk.f32.vlgmr.msra.gmra.mrb[4].mxu1 %vm106_vm0, %v565_v17  ;;  %v9133_v17 = vpack.c.bf16 %v1102_v16, %v1101_v15 }
 0x4f4   :  { %v8335_v18 = vpop.f32.mrb[4].mxu1 }
 0x4f5   :  { %v638_v19 = vpop.f32.mrb[5].mxu1 }
 0x4f6   :  { %8344 = vmatprep.mubr.msk.f32.mxu0 %vm201_vm1, %v638_v19  ;;  %v1104_v19 = vld [vmem:[#allocation4 + $0x130] sm:$0xff] }
 0x4f7   :  { %8345 = vmatmul.mubr.msk.f32.vlgmr.msra.gmra.mrb[6].mxu0 %vm201_vm1, %v8335_v18  ;;  %v1103_v18 = vld [vmem:[#allocation4 + $0x128] sm:$0xff] }
 0x4f8   :  { %9116 = vmatpush3.bf16.msra.mxu0 %v9113_v52  ;;  %v7632_v52 = vld [vmem:[#allocation4 + $0x138] ss:$0 sm:$0xff] }
 0x4f9   :  { %9118 = vmatprep.subr.bf16.mxu0 %v9117_v54 }
 0x4fc   :  { %9120 = vmatpush3.bf16.msra.mxu0 %v9117_v54 }
 0x4fd   :  { %9122 = vmatprep.subr.bf16.mxu0 %v9121_v57 }
 0x500   :  { %9124 = vmatpush3.bf16.msra.mxu0 %v9121_v57 }
 0x501   :  { %9126 = vmatprep.subr.bf16.mxu0 %v9125_v14 }
 0x504   :  { %9128 = vmatpush3.bf16.msra.mxu0 %v9125_v14 }
 0x5ca   :  { %v8346_v21 = vpop.f32.mrb[6].mxu0 }
 0x5cb   :  { %v734_v22 = vadd.f32 %v8346_v21, %v7616_v20  ;;  %v728_v23 = vpop.f32.mrb[7].mxu0  ;;  %v1275_v21 = vld [vmem:[#allocation4 + $0x168] sm:$0xff] }
 0x5cc   :  { %v729_v24 = vadd.f32 %v7616_v20, %v728_v23  ;;  %v9137_v20 = vpack.c.bf16 %v1104_v19, %v1103_v18 }
 0x5cd   :  { %v738_v25 = vadd.f32 %v734_v22, %v10053_v30  ;;  %v1276_v22 = vld [vmem:[#allocation4 + $0x170] sm:$0xff] }
 0x5ce   :  { %v737_v26 = vadd.f32 %v729_v24, %v10051_v29  ;;  %v780_v29 = vld [vmem:[#allocation6] sm:$0xff]  ;;  %v9149_v23 = vpack.c.bf16 %v1276_v22, %v1275_v21  ;;  %v1191_v24 = vld [vmem:[#allocation4 + $0x140] sm:$0xff] }
 0x5cf   :  { %v744_v27 = vsel %vm201_vm1, %v738_v25, 0.0  ;;  %v9105_v42 = vpack.c.bf16 %v781_v40, %v780_v29  ;;  %v1097_v40 = vld [vmem:[%s10611_s4] sm:$0xff] }
 0x5d0   :  { %745 = vadd.xlane.f32.xlu1 %v744_v27  ;;  %v741_v28 = vsel %vm201_vm1, %v737_v26, 0.0  ;;  %9150 = vmatprep.subr.bf16.mxu0 %v9149_v23  ;;  %v7621_v27 = vld [vmem:[#allocation6 + $0x20] ss:$0 sm:$0xff] }
 0x5d1   :  { %742 = vadd.xlane.f32.xlu0 %v741_v28  ;;  %9106 = vmatprep.subr.bf16.mxu1 %v9105_v42 }
 0x5d2   :  { %9108 = vmatpush3.bf16.msra.mxu1 %v9105_v42 }
 0x5d3   :  { %9110 = vmatprep.subr.bf16.mxu1 %v9109_v45 }
 0x5d6   :  { %9112 = vmatpush3.bf16.msra.mxu1 %v9109_v45  ;;  %v1193_v45 = vld [vmem:[#allocation4 + $0x150] sm:$0xff] }
 0x5d7   :  { %9130 = vmatprep.subr.bf16.mxu1 %v9129_v48  ;;  %v9145_v49 = vpack.c.bf16 %v1194_v46, %v1193_v45 }
 0x65d   :  { %v746_v31 = vpop.xlane.xlu1 %745 }
 0x65e   :  { %v749_v32 = vmul.f32 0.03125, %v746_v31  ;;  %v743_v33 = vpop.xlane.xlu0 %742 }
 0x65f   :  { %v748_v34 = vmul.f32 0.03125, %v743_v33 }
 0x660   :  { %v751_v35 = vsub.f32 %v738_v25, %v749_v32  ;;  %v1192_v25 = vld [vmem:[#allocation4 + $0x148] sm:$0xff] }
 0x661   :  { %v750_v36 = vsub.f32 %v737_v26, %v748_v34  ;;  %v9141_v26 = vpack.c.bf16 %v1192_v25, %v1191_v24  ;;  %v7629_v34 = vld [vmem:[#allocation4 + $0x110] ss:$0 sm:$0xff]  ;;  %v7624_v24 = vld [vmem:[#allocation4 + $0xf8] ss:$0 sm:$0xff] }
 0x662   :  { %v753_v37 = vmul.f32 %v751_v35, %v751_v35 }
 0x663   :  { %v752_v38 = vmul.f32 %v750_v36, %v750_v36 }
 0x664   :  { %v757_v39 = vsel %vm201_vm1, %v753_v37, 0.0 }
 0x665   :  { %758 = vadd.xlane.f32.xlu1 %v757_v39  ;;  %v754_v30 = vsel %vm201_vm1, %v752_v38, 0.0 }
 0x666   :  { %755 = vadd.xlane.f32.xlu0 %v754_v30 }
 0x6f2   :  { %v759_v58 = vpop.xlane.xlu1 %758 }
 0x6f3   :  { %v761_v59 = vmul.f32 0.03125, %v759_v58  ;;  %v756_v60 = vpop.xlane.xlu0 %755 }
 0x6f4   :  { %v760_v61 = vmul.f32 0.03125, %v756_v60 }
 0x6f5   :  { %v763_v62 = vadd.f32 1e-05, %v761_v59 }
 0x6f6   :  { %v762_v63 = vadd.f32 1e-05, %v760_v61  ;;  %v7635_v61 = vld [vmem:[#allocation4 + $0x160] ss:$0 sm:$0xff] }
 0x6f7   :  { %9650 = vrsqrt.f32 %v763_v62 }
 0x6f8   :  { %9652 = vrsqrt.f32 %v762_v63 }
 0x701   :  { %v9651_v0 = vpop.eup %9650 }
 0x702   :  { %v9653_v2 = vpop.eup %9652  ;;  %v767_v3 = vmul.f32 %v9651_v0, %v751_v35  ;;  %v1277_v35 = vld [vmem:[#allocation4 + $0x178] sm:$0xff] }
 0x703   :  { %v766_v4 = vmul.f32 %v9653_v2, %v750_v36  ;;  %v1278_v36 = vld [vmem:[#allocation4 + $0x180] sm:$0xff] }
 0x704   :  { %v773_v6 = vmul.f32 %v7619_v1, %v767_v3  ;;  %v9153_v42 = vpack.c.bf16 %v1278_v36, %v1277_v35 }
 0x705   :  { %v772_v7 = vmul.f32 %v7619_v1, %v766_v4 }
 0x706   :  { %v10101_v9 = vadd.f32 %v7620_v5, %v773_v6 }
 0x707   :  { %v10099_v8 = vadd.f32 %v7620_v5, %v772_v7  ;;  %v1360_v7 = vld [vmem:[%s10613_s6 + $0x8] sm:$0xf] }
 0x709   :  { %8355 = vmatprep.mubr.msk.f32.mxu1 %vm201_vm1, %v10099_v8 }
 0x70a   :  { %8356 = vmatmul.mubr.msk.f32.vlgmr.msra.gmra.mrb[6].mxu1 %vm201_vm1, %v10101_v9 }
 0x70b   :  { %9132 = vmatpush3.bf16.msra.mxu1 %v9129_v48  ;;  %8381 = vmatprep.mubr.msk.f32.mxu1 %vm106_vm0, %v93_v10 }
 0x70c   :  { %9134 = vmatprep.subr.bf16.mxu1 %v9133_v17 }
 0x70e   :  { %8382 = vmatmul.mubr.msk.f32.vlgmr.msra.gmra.mrb[8].mxu1 %vm106_vm0, %v94_v11 }
 0x70f   :  { %9136 = vmatpush3.bf16.msra.mxu1 %v9133_v17 }
 0x710   :  { %9138 = vmatprep.subr.bf16.mxu1 %v9137_v20 }
 0x713   :  { %9140 = vmatpush3.bf16.msra.mxu1 %v9137_v20 }
 0x714   :  { %9142 = vmatprep.subr.bf16.mxu1 %v9141_v26 }
 0x7dd   :  { %v8357_v28 = vpop.f32.mrb[6].mxu1 }
 0x7de   :  { %v867_v31 = vadd.f32 %v8357_v28, %v7621_v27  ;;  %v861_v32 = vpop.f32.mrb[7].mxu1 }
 0x7df   :  { %v862_v33 = vadd.f32 %v7621_v27, %v861_v32 }
 0x7e0   :  { %v871_v39 = vmax.f32 %v867_v31, 0.0 }
 0x7e1   :  { %v870_v37 = vmax.f32 %v862_v33, 0.0  ;;  %v8383_v38 = vpop.f32.mrb[8].mxu1 }
 0x7e2   :  { %v1094_v30 = vadd.f32 %v8383_v38, %v7629_v34  ;;  %v1088_v29 = vpop.f32.mrb[9].mxu1  ;;  %v1562_v38 = vld [vmem:[#allocation4 + $0x198] sm:$0xff] }
 0x7e3   :  { %v1089_v44 = vadd.f32 %v7629_v34, %v1088_v29  ;;  %8374 = vmatprep.mubr.msk.f32.mxu0 %vm885_vm3, %v870_v37  ;;  %v1561_v37 = vld [vmem:[#allocation4 + $0x190] sm:$0xff] }
 0x7e4   :  { %8375 = vmatmul.mubr.msk.f32.vlgmr.msra.gmra.mrb[8].mxu0 %vm885_vm3, %v871_v39  ;;  %v10125_v48 = vadd.f32 %v1098_v43, %v1094_v30  ;;  %v9169_v39 = vpack.c.bf16 %v1562_v38, %v1561_v37 }
 0x7e5   :  { %v10123_v47 = vadd.f32 %v1097_v40, %v1089_v44  ;;  %9152 = vmatpush3.bf16.msra.mxu0 %v9149_v23  ;;  %v1563_v40 = vld [vmem:[#allocation4 + $0x1a0] sm:$0xff] }
 0x7e6   :  { %9154 = vmatprep.subr.bf16.mxu0 %v9153_v42 }
 0x7e7   :  { %8392 = vmatprep.mubr.msk.f32.mxu1 %vm201_vm1, %v10123_v47  ;;  %8414 = vmatprep.mubr.msk.f32.mxu0 %vm201_vm1, %v10123_v47 }
 0x7e8   :  { %8393 = vmatmul.mubr.msk.f32.vlgmr.msra.gmra.mrb[10].mxu1 %vm201_vm1, %v10125_v48 }
 0x7e9   :  { %9144 = vmatpush3.bf16.msra.mxu1 %v9141_v26  ;;  %9156 = vmatpush3.bf16.msra.mxu0 %v9153_v42  ;;  %v1564_v42 = vld [vmem:[#allocation4 + $0x1a8] sm:$0xff] }
 0x7ea   :  { %8403 = vmatprep.mubr.msk.f32.mxu1 %vm201_vm1, %v10123_v47  ;;  %9146 = vmatprep.subr.bf16.mxu1 %v9145_v49  ;;  %v9173_v45 = vpack.c.bf16 %v1564_v42, %v1563_v40  ;;  %v1696_v40 = vld [vmem:[#allocation4 + $0x1c8] sm:$0xff]  ;;  %v1697_v42 = vld [vmem:[#allocation4 + $0x1d0] sm:$0xff] }
 0x7ec   :  { %8415 = vmatmul.mubr.msk.f32.vlgmr.msra.gmra.mrb[10].mxu0 %vm201_vm1, %v10125_v48 }
 0x7ed   :  { %9148 = vmatpush3.bf16.msra.mxu1 %v9145_v49 }
 0x7f0   :  { %8404 = vmatmul.mubr.msk.f32.vlgmr.msra.gmra.mrb[12].mxu1 %vm201_vm1, %v10125_v48 }
 0x8b7   :  { %v8376_v50 = vpop.f32.mrb[8].mxu0 }
 0x8b8   :  { %v958_v51 = vpop.f32.mrb[9].mxu0  ;;  %v964_v25 = vadd.f32 %v8376_v50, %v7624_v24 }
 0x8b9   :  { %v959_v26 = vadd.f32 %v7624_v24, %v958_v51 }
 0x8ba   :  { %v968_v32 = vadd.f32 %v964_v25, %v10101_v9 }
 0x8bb   :  { %v8394_v53 = vpop.f32.mrb[10].mxu1  ;;  %v967_v34 = vadd.f32 %v959_v26, %v10099_v8 }
 0x8bc   :  { %v1182_v54 = vpop.f32.mrb[11].mxu1  ;;  %v1188_v5 = vadd.f32 %v8394_v53, %v7632_v52  ;;  %v974_v35 = vsel %vm201_vm1, %v968_v32, 0.0 }
 0x8bd   :  { %v1183_v55 = vadd.f32 %v7632_v52, %v1182_v54  ;;  %v971_v36 = vsel %vm201_vm1, %v967_v34, 0.0  ;;  %v7648_v54 = vld [vmem:[#allocation4 + $0x1b0] ss:$0 sm:$0xff] }
 0x8bf   :  { %v8416_v57 = vpop.f32.mrb[10].mxu0  ;;  %8421 = vmatprep.mubr.msk.f32.mxu1 %vm201_vm1, %v1183_v55 }
 0x8c0   :  { %v1356_v58 = vadd.f32 %v8416_v57, %v7638_v56  ;;  %v1350_v59 = vpop.f32.mrb[11].mxu0 }
 0x8c1   :  { %v1351_v60 = vadd.f32 %v7638_v56, %v1350_v59 }
 0x8c3   :  { %v9163_v63 = vpack.c.bf16 %v1356_v58, %v1351_v60  ;;  %v8405_v0 = vpop.f32.mrb[12].mxu1 }
 0x8c4   :  { %v1272_v1 = vadd.f32 %v8405_v0, %v7635_v61  ;;  %v1266_v2 = vpop.f32.mrb[13].mxu1 }
 0x8c5   :  { %v1267_v3 = vadd.f32 %v7635_v61, %v1266_v2  ;;  %9165 = vmatprep.subr.msk.bf16.mxu0 %vm10140_vm6, %v9163_v63 }
 0x8c6   :  { %9168 = vmatpush3.bf16.msk.msra.mxu0 %vm10140_vm6, %v9163_v63 }
 0x8c7   :  { %v9157_v4 = vpack.c.bf16 %v1272_v1, %v1267_v3  ;;  %9170 = vmatprep.subr.bf16.mxu0 %v9169_v39 }
 0x8c9   :  { %9159 = vmatprep.subr.msk.bf16.mxu1 %vm10069_vm2, %v9157_v4 }
 0x8ca   :  { %9162 = vmatpush3.bf16.xpose.msk.msra.mxu1 %vm10069_vm2, %v9157_v4 }
 0x8d1   :  { %8422 = vmatmul.mubr.msk.f32.vlgmr.msra.gmra.mrb[14].mxu1 %vm201_vm1, %v1188_v5 }
 0x9a4   :  { %v8423_v6 = vpop.f32.mrb[14].mxu1 }
 0x9a5   :  { %v1449_v10 = vmul.f32 0.17677669, %v8423_v6  ;;  %v1439_v11 = vpop.f32.mrb[15].mxu1  ;;  %v1784_v6 = vld [vmem:[#allocation4 + $0x1e0] sm:$0xff] }
 0x9a6   :  { %v1448_v13 = vmul.f32 0.17677669, %v1439_v11 }
 0x9a7   :  { %v1451_v14 = vadd.f32 %v1449_v10, %v1360_v7  ;;  %v1785_v7 = vld [vmem:[#allocation4 + $0x1e8] sm:$0xff] }
 0x9a8   :  { %v1450_v15 = vadd.f32 %v1448_v13, %v1359_v12  ;;  %v9185_v10 = vpack.c.bf16 %v1785_v7, %v1784_v6 }
 0x9a9   :  { %v1457_v16 = vsel %vm1456_vm7, %v1451_v14, -inf }
 0x9aa   :  { %1458 = vmax.xlane.f32.xlu1 %v1457_v16  ;;  %v1453_v17 = vsel %vm1452_vm8, %v1450_v15, -inf }
 0x9ab   :  { %1454 = vmax.xlane.f32.xlu0 %v1453_v17 }
 0xa37   :  { %v1459_v18 = vpop.xlane.xlu1 %1458 }
 0xa38   :  { %v1461_v19 = vsub.f32 %v1451_v14, %v1459_v18  ;;  %v1455_v20 = vpop.xlane.xlu0 %1454 }
 0xa39   :  { %v1460_v21 = vsub.f32 %v1450_v15, %v1455_v20 }
 0xa3a   :  { %v1464_v22 = vmul.f32 1.442695, %v1461_v19 }
 0xa3b   :  { %v1462_v23 = vmul.f32 1.442695, %v1460_v21 }
 0xa3c   :  { %9654 = vpow2.f32 %v1464_v22 }
 0xa3d   :  { %9656 = vpow2.f32 %v1462_v23 }
 0xa46   :  { %v9655_v27 = vpop.eup %9654 }
 0xa47   :  { %v9657_v28 = vpop.eup %9656  ;;  %v1469_v31 = vsel %vm1456_vm7, %v9655_v27, 0.0 }
 0xa48   :  { %1470 = vadd.xlane.f32.xlu1 %v1469_v31  ;;  %v1466_v33 = vsel %vm1452_vm8, %v9657_v28, 0.0  ;;  %v7627_v31 = vld [vmem:[#allocation4 + $0x2b0] ss:$0 sm:$0xff] }
 0xa49   :  { %1467 = vadd.xlane.f32.xlu0 %v1466_v33 }
 0xa4c   :  { %975 = vadd.xlane.f32.xlu1 %v974_v35  ;;  %v7628_v35 = vld [vmem:[#allocation4 + $0x2b8] ss:$0 sm:$0xff] }
 0xa4d   :  { %972 = vadd.xlane.f32.xlu0 %v971_v36 }
 0xad5   :  { %v1471_v30 = vpop.xlane.xlu1 %1470 }
 0xad6   :  { %9658 = vrcp.f32 %v1471_v30  ;;  %v1468_v29 = vpop.xlane.xlu0 %1467  ;;  %v1694_v30 = vld [vmem:[#allocation4 + $0x1b8] sm:$0xff] }
 0xad7   :  { %9660 = vrcp.f32 %v1468_v29  ;;  %v1695_v29 = vld [vmem:[#allocation4 + $0x1c0] sm:$0xff] }
 0xad9   :  { %v976_v50 = vpop.xlane.xlu1 %975 }
 0xada   :  { %v973_v51 = vpop.xlane.xlu0 %972  ;;  %v978_v52 = vmul.f32 0.03125, %v976_v50 }
 0xadb   :  { %v977_v53 = vmul.f32 0.03125, %v973_v51 }
 0xadc   :  { %v980_v56 = vsub.f32 %v968_v32, %v978_v52 }
 0xadd   :  { %v979_v59 = vsub.f32 %v967_v34, %v977_v53 }
 0xade   :  { %v982_v1 = vmul.f32 %v980_v56, %v980_v56 }
 0xadf   :  { %v981_v3 = vmul.f32 %v979_v59, %v979_v59 }
 0xae0   :  { %v9659_v9 = vpop.eup %9658  ;;  %v986_v4 = vsel %vm201_vm1, %v982_v1, 0.0 }
 0xae1   :  { %v9661_v43 = vpop.eup %9660  ;;  %v1475_v44 = vmul.f32 %v9659_v9, %v9655_v27  ;;  %v983_v5 = vsel %vm201_vm1, %v981_v3, 0.0  ;;  %v9177_v9 = vpack.c.bf16 %v1695_v29, %v1694_v30 }
 0xae2   :  { %v1473_v8 = vmul.f32 %v9661_v43, %v9657_v28  ;;  %v9181_v43 = vpack.c.bf16 %v1697_v42, %v1696_v40  ;;  %v2155_v40 = vld [vmem:[#allocation4 + $0x230] sm:$0xff]  ;;  %v2156_v42 = vld [vmem:[#allocation4 + $0x238] sm:$0xff] }
 0xae3   :  { %9178 = vmatprep.subr.bf16.mxu1 %v9177_v9 }
 0xae4   :  { %8428 = vmatprep.mubr.msk.f32.mxu0 %vm1452_vm8, %v1473_v8  ;;  %9180 = vmatpush3.bf16.msra.mxu1 %v9177_v9  ;;  %v1874_v8 = vld [vmem:[#allocation4 + $0x208] sm:$0xff] }
 0xae5   :  { %8429 = vmatmul.mubr.msk.f32.vlgmr.msra.gmra.mrb[12].mxu0 %vm1452_vm8, %v1475_v44  ;;  %9182 = vmatprep.subr.bf16.mxu1 %v9181_v43  ;;  %v1875_v44 = vld [vmem:[#allocation4 + $0x210] sm:$0xff] }
 0xae6   :  { %9172 = vmatpush3.bf16.msra.mxu0 %v9169_v39 }
 0xae7   :  { %9174 = vmatprep.subr.bf16.mxu0 %v9173_v45 }
 0xae8   :  { %9184 = vmatpush3.bf16.msra.mxu1 %v9181_v43  ;;  %v9211_v43 = vpack.c.bf16 %v2156_v42, %v2155_v40 }
 0xaea   :  { %9176 = vmatpush3.bf16.msra.mxu0 %v9173_v45  ;;  %v9193_v45 = vpack.c.bf16 %v1875_v44, %v1874_v8 }
 0xaeb   :  { %9186 = vmatprep.subr.bf16.mxu0 %v9185_v10 }
 0xaec   :  { %9194 = vmatprep.subr.bf16.mxu1 %v9193_v45 }
 0xbb8   :  { %v8430_v46 = vpop.f32.mrb[12].mxu0 }
 0xbb9   :  { %v1552_v49 = vpop.f32.mrb[13].mxu0 }
 0xbba   :  { %8439 = vmatprep.mubr.msk.f32.mxu0 %vm201_vm1, %v1552_v49 }
 0xbbb   :  { %8440 = vmatmul.mubr.msk.f32.vlgmr.msra.gmra.mrb[14].mxu0 %vm201_vm1, %v8430_v46 }
 0xbbc   :  { %9188 = vmatpush3.bf16.msra.mxu0 %v9185_v10 }
 0xc8e   :  { %v8441_v55 = vpop.f32.mrb[14].mxu0 }
 0xc8f   :  { %v1648_v57 = vadd.f32 %v8441_v55, %v7648_v54  ;;  %v1642_v58 = vpop.f32.mrb[15].mxu0  ;;  %v7651_v55 = vld [vmem:[#allocation4 + $0x2c0] ss:$0 sm:$0xff] }
 0xc90   :  { %v1643_v60 = vadd.f32 %v7648_v54, %v1642_v58 }
 0xc91   :  { %v1652_v61 = vadd.f32 %v1648_v57, %v10125_v48  ;;  %v1786_v48 = vld [vmem:[#allocation4 + $0x1f0] sm:$0xff] }
 0xc92   :  { %v1651_v63 = vadd.f32 %v1643_v60, %v10123_v47  ;;  %v1787_v47 = vld [vmem:[#allocation4 + $0x1f8] sm:$0xff] }
 0xc93   :  { %v1659_v0 = vsel %vm1658_vm9, %v1652_v61, 0.0  ;;  %v9189_v11 = vpack.c.bf16 %v1787_v47, %v1786_v48  ;;  %v7653_v47 = vld [vmem:[#allocation4 + $0x1d8] ss:$0 sm:$0xff] }
 0xc94   :  { %1660 = vadd.xlane.f32.xlu1 %v1659_v0  ;;  %v1655_v2 = vsel %vm201_vm1, %v1651_v63, 0.0  ;;  %v1877_v0 = vld [vmem:[#allocation4 + $0x220] sm:$0xff] }
 0xc95   :  { %1656 = vadd.xlane.f32.xlu0 %v1655_v2  ;;  %9190 = vmatprep.subr.bf16.mxu0 %v9189_v11 }
 0xc96   :  { %9192 = vmatpush3.bf16.msra.mxu0 %v9189_v11 }
 0xc98   :  { %987 = vadd.xlane.f32.xlu1 %v986_v4  ;;  %v7656_v4 = vld [vmem:[#allocation4 + $0x200] ss:$0 sm:$0xff] }
 0xc99   :  { %984 = vadd.xlane.f32.xlu0 %v983_v5 }
 0xd21   :  { %v1661_v12 = vpop.xlane.xlu1 %1660 }
 0xd22   :  { %v1663_v13 = vmul.f32 0.03125, %v1661_v12  ;;  %v1657_v14 = vpop.xlane.xlu0 %1656 }
 0xd23   :  { %v1662_v15 = vmul.f32 0.03125, %v1657_v14 }
 0xd24   :  { %v1665_v16 = vsub.f32 %v1652_v61, %v1663_v13 }
 0xd25   :  { %v1664_v17 = vsub.f32 %v1651_v63, %v1662_v15  ;;  %v988_v18 = vpop.xlane.xlu1 %987  ;;  %v1876_v63 = vld [vmem:[#allocation4 + $0x218] sm:$0xff]  ;;  %v7659_v15 = vld [vmem:[#allocation4 + $0x228] ss:$0 sm:$0xff] }
 0xd26   :  { %v990_v19 = vmul.f32 0.03125, %v988_v18  ;;  %v985_v20 = vpop.xlane.xlu0 %984  ;;  %v1667_v21 = vmul.f32 %v1665_v16, %v1665_v16  ;;  %v9197_v3 = vpack.c.bf16 %v1877_v0, %v1876_v63 }
 0xd27   :  { %v989_v22 = vmul.f32 0.03125, %v985_v20  ;;  %v1666_v23 = vmul.f32 %v1664_v17, %v1664_v17 }
 0xd28   :  { %v992_v24 = vadd.f32 1e-05, %v990_v19  ;;  %v1671_v25 = vsel %vm1658_vm9, %v1667_v21, 0.0 }
 0xd29   :  { %v991_v26 = vadd.f32 1e-05, %v989_v22  ;;  %1672 = vadd.xlane.f32.xlu1 %v1671_v25  ;;  %v1668_v27 = vsel %vm201_vm1, %v1666_v23, 0.0  ;;  %v1959_v22 = vld [vmem:[%s10614_s7 + $0x8] sm:$0xf]  ;;  %v1958_v25 = vld [vmem:[%s10614_s7] sm:$0xff] }
 0xd2a   :  { %9662 = vrsqrt.f32 %v992_v24  ;;  %1669 = vadd.xlane.f32.xlu0 %v1668_v27 }
 0xd2b   :  { %9664 = vrsqrt.f32 %v991_v26 }
 0xd34   :  { %v9663_v28 = vpop.eup %9662 }
 0xd35   :  { %v9665_v32 = vpop.eup %9664  ;;  %v996_v33 = vmul.f32 %v9663_v28, %v980_v56 }
 0xd36   :  { %v995_v34 = vmul.f32 %v9665_v32, %v979_v59  ;;  %v7652_v59 = vld [vmem:[#allocation4 + $0x2c8] ss:$0 sm:$0xff] }
 0xd37   :  { %v1002_v36 = vmul.f32 %v7627_v31, %v996_v33 }
 0xd38   :  { %v1001_v37 = vmul.f32 %v7627_v31, %v995_v34 }
 0xd39   :  { %v1008_v39 = vadd.f32 %v7628_v35, %v1002_v36 }
 0xd3a   :  { %v1007_v38 = vadd.f32 %v7628_v35, %v1001_v37 }
 0xd3c   :  { %8461 = vmatprep.mubr.msk.f32.mxu0 %vm201_vm1, %v1007_v38 }
 0xd3d   :  { %8462 = vmatmul.mubr.msk.f32.vlgmr.msra.gmra.mrb[16].mxu0 %vm201_vm1, %v1008_v39 }
 0xdb6   :  { %v1673_v46 = vpop.xlane.xlu1 %1672 }
 0xdb7   :  { %v1675_v49 = vmul.f32 0.03125, %v1673_v46  ;;  %v1670_v50 = vpop.xlane.xlu0 %1669  ;;  %v2157_v46 = vld [vmem:[#allocation4 + $0x240] sm:$0xff] }
 0xdb8   :  { %v1674_v51 = vmul.f32 0.03125, %v1670_v50 }
 0xdb9   :  { %v1677_v52 = vadd.f32 1e-05, %v1675_v49  ;;  %v2158_v49 = vld [vmem:[#allocation4 + $0x248] sm:$0xff] }
 0xdba   :  { %v1676_v53 = vadd.f32 1e-05, %v1674_v51 }
 0xdbb   :  { %9666 = vrsqrt.f32 %v1677_v52 }
 0xdbc   :  { %9668 = vrsqrt.f32 %v1676_v53  ;;  %v9215_v53 = vpack.c.bf16 %v2158_v49, %v2157_v46 }
 0xdc5   :  { %v9667_v54 = vpop.eup %9666 }
 0xdc6   :  { %v9669_v56 = vpop.eup %9668  ;;  %v1681_v57 = vmul.f32 %v9667_v54, %v1665_v16 }
 0xdc7   :  { %v1680_v58 = vmul.f32 %v9669_v56, %v1664_v17  ;;  %v7668_v56 = vld [vmem:[#allocation4 + $0x250] ss:$0 sm:$0xff] }
 0xdc8   :  { %v1687_v60 = vmul.f32 %v7651_v55, %v1681_v57 }
 0xdc9   :  { %v1686_v61 = vmul.f32 %v7651_v55, %v1680_v58 }
 0xdca   :  { %v10183_v2 = vadd.f32 %v7652_v59, %v1687_v60 }
 0xdcb   :  { %v10181_v1 = vadd.f32 %v7652_v59, %v1686_v61 }
 0xdcd   :  { %8450 = vmatprep.mubr.msk.f32.mxu1 %vm201_vm1, %v10181_v1 }
 0xdce   :  { %8451 = vmatmul.mubr.msk.f32.vlgmr.msra.gmra.mrb[16].mxu1 %vm201_vm1, %v10183_v2 }
 0xdcf   :  { %9196 = vmatpush3.bf16.msra.mxu1 %v9193_v45  ;;  %8472 = vmatprep.mubr.msk.f32.mxu1 %vm201_vm1, %v1007_v38 }
 0xdd0   :  { %9198 = vmatprep.subr.bf16.mxu1 %v9197_v3 }
 0xdd3   :  { %9200 = vmatpush3.bf16.msra.mxu1 %v9197_v3 }
 0xdd6   :  { %8473 = vmatmul.mubr.msk.f32.vlgmr.msra.gmra.mrb[18].mxu1 %vm201_vm1, %v1008_v39 }
 0xe10   :  { %v8463_v5 = vpop.f32.mrb[16].mxu0 }
 0xe11   :  { %v1871_v6 = vadd.f32 %v8463_v5, %v7656_v4  ;;  %v1865_v7 = vpop.f32.mrb[17].mxu0 }
 0xe12   :  { %v1866_v10 = vadd.f32 %v7656_v4, %v1865_v7 }
 0xe14   :  { %v9201_v48 = vpack.c.bf16 %v1871_v6, %v1866_v10 }
 0xe16   :  { %9203 = vmatprep.subr.msk.bf16.mxu0 %vm10069_vm2, %v9201_v48 }
 0xe17   :  { %9206 = vmatpush3.bf16.xpose.msk.msra.mxu0 %vm10069_vm2, %v9201_v48 }
 0xea1   :  { %v8452_v11 = vpop.f32.mrb[16].mxu1 }
 0xea2   :  { %v1775_v12 = vpop.f32.mrb[17].mxu1  ;;  %v1781_v14 = vadd.f32 %v8452_v11, %v7653_v47 }
 0xea3   :  { %v1776_v13 = vadd.f32 %v7653_v47, %v1775_v12 }
 0xea5   :  { %8479 = vmatprep.mubr.msk.f32.mxu0 %vm201_vm1, %v1776_v13  ;;  %v2288_v13 = vld [vmem:[#allocation6 + $0x30] sm:$0xff] }
 0xea6   :  { %8480 = vmatmul.mubr.msk.f32.vlgmr.msra.gmra.mrb[18].mxu0 %vm201_vm1, %v1781_v14 }
 0xea9   :  { %v8474_v16 = vpop.f32.mrb[18].mxu1 }
 0xeaa   :  { %v1955_v17 = vadd.f32 %v8474_v16, %v7659_v15  ;;  %v1949_v18 = vpop.f32.mrb[19].mxu1  ;;  %v2290_v16 = vld [vmem:[#allocation6 + $0x40] sm:$0xff] }
 0xeab   :  { %v1950_v19 = vadd.f32 %v7659_v15, %v1949_v18  ;;  %v2289_v15 = vld [vmem:[#allocation6 + $0x38] sm:$0xff]  ;;  %v2379_v18 = vld [vmem:[#allocation4 + $0x258] sm:$0xff] }
 0xead   :  { %v9207_v20 = vpack.c.bf16 %v1955_v17, %v1950_v19  ;;  %v9223_v17 = vpack.c.bf16 %v2290_v16, %v2289_v15  ;;  %v2380_v19 = vld [vmem:[#allocation4 + $0x260] sm:$0xff]  ;;  %v2606_v16 = vld [vmem:[#allocation4 + $0x2f0] sm:$0xff] }
 0xeaf   :  { %9208 = vmatprep.subr.bf16.mxu1 %v9207_v20 }
 0xeb0   :  { %9210 = vmatpush3.bf16.msra.mxu1 %v9207_v20  ;;  %v2381_v20 = vld [vmem:[#allocation4 + $0x268] sm:$0xff] }
 0xeb1   :  { %9212 = vmatprep.subr.bf16.mxu1 %v9211_v43 }
 0xf79   :  { %v8481_v21 = vpop.f32.mrb[18].mxu0 }
 0xf7a   :  { %v2048_v23 = vmul.f32 0.17677669, %v8481_v21  ;;  %v2038_v24 = vpop.f32.mrb[19].mxu0  ;;  %v9227_v21 = vpack.c.bf16 %v2380_v19, %v2379_v18 }
 0xf7b   :  { %v2047_v26 = vmul.f32 0.17677669, %v2038_v24  ;;  %v2383_v24 = vld [vmem:[#allocation4 + $0x278] sm:$0xff] }
 0xf7c   :  { %v2050_v27 = vadd.f32 %v2048_v23, %v1959_v22  ;;  %v2382_v22 = vld [vmem:[#allocation4 + $0x270] sm:$0xff] }
 0xf7d   :  { %v2049_v28 = vadd.f32 %v2047_v26, %v1958_v25  ;;  %v9231_v23 = vpack.c.bf16 %v2382_v22, %v2381_v20  ;;  %v2384_v25 = vld [vmem:[#allocation4 + $0x280] sm:$0xff] }
 0xf7e   :  { %v2055_v31 = vsel %vm2054_vm10, %v2050_v27, -inf  ;;  %v9235_v26 = vpack.c.bf16 %v2384_v25, %v2383_v24 }
 0xf7f   :  { %2056 = vmax.xlane.f32.xlu1 %v2055_v31  ;;  %v2051_v32 = vsel %vm106_vm0, %v2049_v28, -inf }
 0xf80   :  { %2052 = vmax.xlane.f32.xlu0 %v2051_v32 }
0x100c   :  { %v2057_v33 = vpop.xlane.xlu1 %2056 }
0x100d   :  { %v2059_v34 = vsub.f32 %v2050_v27, %v2057_v33  ;;  %v2053_v35 = vpop.xlane.xlu0 %2052 }
0x100e   :  { %v2058_v36 = vsub.f32 %v2049_v28, %v2053_v35 }
0x100f   :  { %v2062_v37 = vmul.f32 1.442695, %v2059_v34 }
0x1010   :  { %v2060_v38 = vmul.f32 1.442695, %v2058_v36  ;;  %v7671_v36 = vld [vmem:[#allocation4 + $0x2d0] ss:$0 sm:$0xff] }
0x1011   :  { %9670 = vpow2.f32 %v2062_v37 }
0x1012   :  { %9672 = vpow2.f32 %v2060_v38 }
0x101b   :  { %v9671_v39 = vpop.eup %9670 }
0x101c   :  { %v9673_v30 = vpop.eup %9672  ;;  %v2067_v29 = vsel %vm2054_vm10, %v9671_v39, 0.0 }
0x101d   :  { %2068 = vadd.xlane.f32.xlu1 %v2067_v29  ;;  %v2064_v9 = vsel %vm106_vm0, %v9673_v30, 0.0 }
0x101e   :  { %2065 = vadd.xlane.f32.xlu0 %v2064_v9 }
0x10aa   :  { %v2069_v8 = vpop.xlane.xlu1 %2068 }
0x10ab   :  { %9674 = vrcp.f32 %v2069_v8  ;;  %v2066_v44 = vpop.xlane.xlu0 %2065  ;;  %v2386_v8 = vld [vmem:[#allocation4 + $0x290] sm:$0xff] }
0x10ac   :  { %9676 = vrcp.f32 %v2066_v44 }
0x10b5   :  { %v9675_v45 = vpop.eup %9674 }
0x10b6   :  { %v9677_v50 = vpop.eup %9676  ;;  %v2073_v52 = vmul.f32 %v9675_v45, %v9671_v39  ;;  %v7673_v45 = vld [vmem:[#allocation6 + $0x48] ss:$0 sm:$0xff] }
0x10b7   :  { %v2071_v51 = vmul.f32 %v9677_v50, %v9673_v30  ;;  %v7672_v30 = vld [vmem:[#allocation4 + $0x2d8] ss:$0 sm:$0xff] }
0x10b9   :  { %8486 = vmatprep.mubr.msk.f32.mxu1 %vm106_vm0, %v2071_v51 }
0x10ba   :  { %8487 = vmatmul.mubr.msk.f32.vlgmr.msra.gmra.mrb[20].mxu1 %vm106_vm0, %v2073_v52 }
0x10bb   :  { %9214 = vmatpush3.bf16.msra.mxu1 %v9211_v43  ;;  %v2385_v43 = vld [vmem:[#allocation4 + $0x288] sm:$0xff] }
0x10bc   :  { %9216 = vmatprep.subr.bf16.mxu1 %v9215_v53  ;;  %v9239_v44 = vpack.c.bf16 %v2386_v8, %v2385_v43  ;;  %v2692_v43 = vld [vmem:[#allocation4 + $0x318] sm:$0xff]  ;;  %v2693_v8 = vld [vmem:[#allocation4 + $0x320] sm:$0xff] }
0x10bf   :  { %9218 = vmatpush3.bf16.msra.mxu1 %v9215_v53 }
0x10c0   :  { %9228 = vmatprep.subr.bf16.mxu1 %v9227_v21 }
0x118d   :  { %v8488_v54 = vpop.f32.mrb[20].mxu1 }
0x118e   :  { %v2146_v55 = vpop.f32.mrb[21].mxu1 }
0x118f   :  { %8497 = vmatprep.mubr.msk.f32.mxu1 %vm201_vm1, %v2146_v55 }
0x1190   :  { %8498 = vmatmul.mubr.msk.f32.vlgmr.msra.gmra.mrb[22].mxu1 %vm201_vm1, %v8488_v54  ;;  %v7676_v54 = vld [vmem:[#allocation4 + $0x298] ss:$0 sm:$0xff] }
0x1191   :  { %9230 = vmatpush3.bf16.msra.mxu1 %v9227_v21 }
0x1192   :  { %9232 = vmatprep.subr.bf16.mxu1 %v9231_v23 }
0x1195   :  { %9234 = vmatpush3.bf16.msra.mxu1 %v9231_v23 }
0x1196   :  { %9236 = vmatprep.subr.bf16.mxu1 %v9235_v26 }
0x1199   :  { %9238 = vmatpush3.bf16.msra.mxu1 %v9235_v26  ;;  %v7679_v26 = vld [vmem:[#allocation4 + $0x2e0] ss:$0 sm:$0xff] }
0x119a   :  { %9240 = vmatprep.subr.bf16.mxu1 %v9239_v44 }
0x119d   :  { %9242 = vmatpush3.bf16.msra.mxu1 %v9239_v44  ;;  %v9259_v44 = vpack.c.bf16 %v2693_v8, %v2692_v43  ;;  %v3144_v43 = vld [vmem:[#allocation4 + $0x390] sm:$0xff] }
0x1263   :  { %v8499_v57 = vpop.f32.mrb[22].mxu1 }
0x1264   :  { %v2242_v58 = vadd.f32 %v8499_v57, %v7668_v56  ;;  %v2236_v59 = vpop.f32.mrb[23].mxu1 }
0x1265   :  { %v2237_v60 = vadd.f32 %v7668_v56, %v2236_v59 }
0x1266   :  { %v2246_v61 = vadd.f32 %v2242_v58, %v10183_v2 }
0x1267   :  { %v2245_v63 = vadd.f32 %v2237_v60, %v10181_v1  ;;  %v2287_v1 = vld [vmem:[#allocation6 + $0x28] sm:$0xff] }
0x1268   :  { %v2252_v0 = vsel %vm1658_vm9, %v2246_v61, 0.0  ;;  %v9219_v14 = vpack.c.bf16 %v2288_v13, %v2287_v1  ;;  %v2517_v13 = vld [vmem:[#allocation7 + $0x10] sm:$0xff] }
0x1269   :  { %2253 = vadd.xlane.f32.xlu1 %v2252_v0  ;;  %v2249_v3 = vsel %vm201_vm1, %v2245_v63, 0.0 }
0x126a   :  { %2250 = vadd.xlane.f32.xlu0 %v2249_v3  ;;  %9220 = vmatprep.subr.bf16.mxu0 %v9219_v14 }
0x126b   :  { %9222 = vmatpush3.bf16.msra.mxu0 %v9219_v14  ;;  %v2518_v14 = vld [vmem:[#allocation7 + $0x18] sm:$0xff] }
0x126c   :  { %9224 = vmatprep.subr.bf16.mxu0 %v9223_v17  ;;  %v9247_v15 = vpack.c.bf16 %v2518_v14, %v2517_v13  ;;  %v7693_v14 = vld [vmem:[#allocation4 + $0x378] ss:$0 sm:$0xff] }
0x126f   :  { %9226 = vmatpush3.bf16.msra.mxu0 %v9223_v17  ;;  %v2607_v17 = vld [vmem:[#allocation4 + $0x2f8] sm:$0xff] }
0x1270   :  { %v9251_v18 = vpack.c.bf16 %v2607_v17, %v2606_v16 }
0x12f6   :  { %v2254_v4 = vpop.xlane.xlu1 %2253 }
0x12f7   :  { %v2256_v5 = vmul.f32 0.03125, %v2254_v4  ;;  %v2251_v6 = vpop.xlane.xlu0 %2250 }
0x12f8   :  { %v2255_v7 = vmul.f32 0.03125, %v2251_v6 }
0x12f9   :  { %v2258_v10 = vsub.f32 %v2246_v61, %v2256_v5 }
0x12fa   :  { %v2257_v48 = vsub.f32 %v2245_v63, %v2255_v7 }
0x12fb   :  { %v2260_v47 = vmul.f32 %v2258_v10, %v2258_v10 }
0x12fc   :  { %v2259_v11 = vmul.f32 %v2257_v48, %v2257_v48 }
0x12fd   :  { %v2264_v12 = vsel %vm1658_vm9, %v2260_v47, 0.0 }
0x12fe   :  { %2265 = vadd.xlane.f32.xlu1 %v2264_v12  ;;  %v2261_v2 = vsel %vm201_vm1, %v2259_v11, 0.0  ;;  %v2515_v12 = vld [vmem:[#allocation7] sm:$0xff] }
0x12ff   :  { %2262 = vadd.xlane.f32.xlu0 %v2261_v2  ;;  %v2516_v2 = vld [vmem:[#allocation7 + $0x8] sm:$0xff] }
0x1300   :  { %v9243_v1 = vpack.c.bf16 %v2516_v2, %v2515_v12 }
0x1302   :  { %9244 = vmatprep.subr.bf16.mxu0 %v9243_v1 }
0x138b   :  { %v2266_v27 = vpop.xlane.xlu1 %2265 }
0x138c   :  { %v2268_v28 = vmul.f32 0.03125, %v2266_v27  ;;  %v2263_v31 = vpop.xlane.xlu0 %2262 }
0x138d   :  { %v2267_v32 = vmul.f32 0.03125, %v2263_v31 }
0x138e   :  { %v2270_v33 = vadd.f32 1e-05, %v2268_v28 }
0x138f   :  { %v2269_v34 = vadd.f32 1e-05, %v2267_v32  ;;  %v7680_v32 = vld [vmem:[#allocation4 + $0x2e8] ss:$0 sm:$0xff] }
0x1390   :  { %9678 = vrsqrt.f32 %v2270_v33 }
0x1391   :  { %9680 = vrsqrt.f32 %v2269_v34 }
0x139a   :  { %v9679_v35 = vpop.eup %9678 }
0x139b   :  { %v9681_v37 = vpop.eup %9680  ;;  %v2274_v38 = vmul.f32 %v9679_v35, %v2258_v10 }
0x139c   :  { %v2273_v39 = vmul.f32 %v9681_v37, %v2257_v48  ;;  %v9782_v37 = vld [vmem:[#allocation2] sm:$0xff] }
0x139d   :  { %v2280_v29 = vmul.f32 %v7671_v36, %v2274_v38  ;;  %v9783_v38 = vld [vmem:[#allocation2 + $0x8] sm:$0xff] }
0x139e   :  { %v2279_v9 = vmul.f32 %v7671_v36, %v2273_v39  ;;  %v2690_v39 = vld [vmem:[#allocation4 + $0x308] sm:$0xff] }
0x139f   :  { %v2286_v42 = vadd.f32 %v7672_v30, %v2280_v29 }
0x13a0   :  { %v2285_v40 = vadd.f32 %v7672_v30, %v2279_v9  ;;  %v2691_v30 = vld [vmem:[#allocation4 + $0x310] sm:$0xff] }
0x13a1   :  { %v9255_v29 = vpack.c.bf16 %v2691_v30, %v2690_v39  ;;  %v2780_v9 = vld [vmem:[#allocation4 + $0x330] sm:$0xff] }
0x13a2   :  { %8508 = vmatprep.mubr.msk.f32.mxu0 %vm201_vm1, %v2285_v40 }
0x13a3   :  { %8509 = vmatmul.mubr.msk.f32.vlgmr.msra.gmra.mrb[20].mxu0 %vm201_vm1, %v2286_v42 }
0x13a4   :  { %9246 = vmatpush3.bf16.msra.mxu0 %v9243_v1 }
0x13a5   :  { %9248 = vmatprep.subr.bf16.mxu0 %v9247_v15 }
0x13a8   :  { %9250 = vmatpush3.bf16.msra.mxu0 %v9247_v15 }
0x13a9   :  { %9252 = vmatprep.subr.bf16.mxu0 %v9251_v18 }
0x1476   :  { %v8510_v46 = vpop.f32.mrb[20].mxu0 }
0x1477   :  { %v2374_v49 = vadd.f32 %v8510_v46, %v7673_v45  ;;  %v2368_v50 = vpop.f32.mrb[21].mxu0  ;;  %v2783_v46 = vld [vmem:[#allocation4 + $0x348] sm:$0xff] }
0x1478   :  { %v2369_v51 = vadd.f32 %v7673_v45, %v2368_v50  ;;  %v2782_v45 = vld [vmem:[#allocation4 + $0x340] sm:$0xff]  ;;  %v2864_v50 = vld [vmem:[#allocation4 + $0x358] sm:$0xff] }
0x1479   :  { %v2378_v53 = vmax.f32 %v2374_v49, 0.0  ;;  %v9267_v49 = vpack.c.bf16 %v2783_v46, %v2782_v45 }
0x147a   :  { %v2377_v52 = vmax.f32 %v2369_v51, 0.0  ;;  %v2865_v51 = vld [vmem:[#allocation4 + $0x360] sm:$0xff] }
0x147c   :  { %8527 = vmatprep.mubr.msk.f32.mxu1 %vm885_vm3, %v2377_v52  ;;  %v9271_v52 = vpack.c.bf16 %v2865_v51, %v2864_v50 }
0x147d   :  { %8528 = vmatmul.mubr.msk.f32.vlgmr.msra.gmra.mrb[24].mxu1 %vm885_vm3, %v2378_v53 }
0x1550   :  { %v8529_v55 = vpop.f32.mrb[24].mxu1 }
0x1551   :  { %v2470_v56 = vadd.f32 %v8529_v55, %v7676_v54  ;;  %v2464_v57 = vpop.f32.mrb[25].mxu1  ;;  %v7684_v55 = vld [vmem:[#allocation4 + $0x300] ss:$0 sm:$0xff] }
0x1552   :  { %v2465_v58 = vadd.f32 %v7676_v54, %v2464_v57 }
0x1553   :  { %v2474_v59 = vadd.f32 %v2470_v56, %v2286_v42 }
0x1554   :  { %v2473_v60 = vadd.f32 %v2465_v58, %v2285_v40  ;;  %v2781_v40 = vld [vmem:[#allocation4 + $0x338] sm:$0xff] }
0x1555   :  { %v2480_v61 = vsel %vm1658_vm9, %v2474_v59, 0.0  ;;  %v9263_v42 = vpack.c.bf16 %v2781_v40, %v2780_v9  ;;  %v3142_v40 = vld [vmem:[#allocation4 + $0x380] sm:$0xff] }
0x1556   :  { %2481 = vadd.xlane.f32.xlu1 %v2480_v61  ;;  %v2477_v63 = vsel %vm201_vm1, %v2473_v60, 0.0  ;;  %v2867_v61 = vld [vmem:[#allocation4 + $0x370] sm:$0xff] }
0x1557   :  { %2478 = vadd.xlane.f32.xlu0 %v2477_v63  ;;  %9264 = vmatprep.subr.bf16.mxu1 %v9263_v42  ;;  %v9784_v63 = vld [vmem:[%s10610_s3] sm:$0xff] }
0x1558   :  { %9266 = vmatpush3.bf16.msra.mxu1 %v9263_v42  ;;  %v3143_v42 = vld [vmem:[#allocation4 + $0x388] sm:$0xff] }
0x1559   :  { %9268 = vmatprep.subr.bf16.mxu1 %v9267_v49  ;;  %v9289_v8 = vpack.c.bf16 %v3143_v42, %v3142_v40 }
0x155c   :  { %9270 = vmatpush3.bf16.msra.mxu1 %v9267_v49 }
0x15e3   :  { %v2482_v0 = vpop.xlane.xlu1 %2481 }
0x15e4   :  { %v2484_v3 = vmul.f32 0.03125, %v2482_v0  ;;  %v2479_v4 = vpop.xlane.xlu0 %2478 }
0x15e5   :  { %v2483_v5 = vmul.f32 0.03125, %v2479_v4 }
0x15e6   :  { %v2486_v6 = vsub.f32 %v2474_v59, %v2484_v3  ;;  %v9785_v3 = vld [vmem:[%s10610_s3 + $0x8] sm:$0xff] }
0x15e7   :  { %v2485_v7 = vsub.f32 %v2473_v60, %v2483_v5  ;;  %v2866_v60 = vld [vmem:[#allocation4 + $0x368] sm:$0xff] }
0x15e8   :  { %v2488_v10 = vmul.f32 %v2486_v6, %v2486_v6  ;;  %v9275_v5 = vpack.c.bf16 %v2867_v61, %v2866_v60 }
0x15e9   :  { %v2487_v48 = vmul.f32 %v2485_v7, %v2485_v7 }
0x15ea   :  { %v2492_v47 = vsel %vm1658_vm9, %v2488_v10, 0.0 }
0x15eb   :  { %2493 = vadd.xlane.f32.xlu1 %v2492_v47  ;;  %v2489_v11 = vsel %vm201_vm1, %v2487_v48, 0.0 }
0x15ec   :  { %2490 = vadd.xlane.f32.xlu0 %v2489_v11 }
0x1678   :  { %v2494_v19 = vpop.xlane.xlu1 %2493 }
0x1679   :  { %v2496_v20 = vmul.f32 0.03125, %v2494_v19  ;;  %v2491_v21 = vpop.xlane.xlu0 %2490 }
0x167a   :  { %v2495_v22 = vmul.f32 0.03125, %v2491_v21 }
0x167b   :  { %v2498_v23 = vadd.f32 1e-05, %v2496_v20 }
0x167c   :  { %v2497_v24 = vadd.f32 1e-05, %v2495_v22 }
0x167d   :  { %9682 = vrsqrt.f32 %v2498_v23 }
0x167e   :  { %9684 = vrsqrt.f32 %v2497_v24 }
0x1687   :  { %v9683_v25 = vpop.eup %9682 }
0x1688   :  { %v9685_v27 = vpop.eup %9684  ;;  %v2502_v28 = vmul.f32 %v9683_v25, %v2486_v6  ;;  %v7690_v6 = vld [vmem:[#allocation4 + $0x350] ss:$0 sm:$0xff]  ;;  %v9786_v25 = vld [vmem:[%s10612_s5 + $0x8] sm:$0xff] }
0x1689   :  { %v2501_v31 = vmul.f32 %v9685_v27, %v2485_v7  ;;  %v7687_v7 = vld [vmem:[#allocation4 + $0x328] ss:$0 sm:$0xff]  ;;  %v9787_v27 = vld [vmem:[%s10612_s5] sm:$0xff] }
0x168a   :  { %v2508_v33 = vmul.f32 %v7679_v26, %v2502_v28 }
0x168b   :  { %v2507_v34 = vmul.f32 %v7679_v26, %v2501_v31 }
0x168c   :  { %v2514_v36 = vadd.f32 %v7680_v32, %v2508_v33 }
0x168d   :  { %v2513_v35 = vadd.f32 %v7680_v32, %v2507_v34 }
0x168f   :  { %8538 = vmatprep.mubr.msk.f32.mxu0 %vm201_vm1, %v2513_v35 }
0x1690   :  { %8539 = vmatmul.mubr.msk.f32.vlgmr.msra.gmra.mrb[22].mxu0 %vm201_vm1, %v2514_v36 }
0x1691   :  { %9254 = vmatpush3.bf16.msra.mxu0 %v9251_v18  ;;  %8545 = vmatprep.mubr.msk.f32.mxu0 %vm106_vm0, %v9782_v37 }
0x1692   :  { %9256 = vmatprep.subr.bf16.mxu0 %v9255_v29 }
0x1694   :  { %8546 = vmatmul.mubr.msk.f32.vlgmr.msra.gmra.mrb[24].mxu0 %vm106_vm0, %v9783_v38 }
0x1695   :  { %9258 = vmatpush3.bf16.msra.mxu0 %v9255_v29 }
0x1696   :  { %9260 = vmatprep.subr.bf16.mxu0 %v9259_v44 }
0x1699   :  { %9262 = vmatpush3.bf16.msra.mxu0 %v9259_v44  ;;  %v3145_v44 = vld [vmem:[#allocation4 + $0x398] sm:$0xff] }
0x169a   :  { %9272 = vmatprep.subr.bf16.mxu0 %v9271_v52  ;;  %v9293_v45 = vpack.c.bf16 %v3145_v44, %v3144_v43  ;;  %v7706_v43 = vld [vmem:[#allocation4 + $0x598] ss:$0 sm:$0xff] }
0x1763   :  { %v10229_v53 = vpop.f32.mrb[22].mxu0 }
0x1764   :  { %v10231_v54 = vpop.f32.mrb[23].mxu0 }
0x1767   :  { %v8547_v56 = vpop.f32.mrb[24].mxu0 }
0x1768   :  { %v2685_v57 = vadd.f32 %v8547_v56, %v7684_v55  ;;  %v2679_v58 = vpop.f32.mrb[25].mxu0 }
0x1769   :  { %v2680_v59 = vadd.f32 %v7684_v55, %v2679_v58  ;;  %v7702_v58 = vld [vmem:[#allocation4 + $0x3a0] ss:$0 sm:$0xff] }
0x176a   :  { %v10241_v4 = vadd.f32 %v9785_v3, %v2685_v57 }
0x176b   :  { %v10236_v0 = vadd.f32 %v9784_v63, %v2680_v59 }
0x176d   :  { %8556 = vmatprep.mubr.msk.f32.mxu0 %vm201_vm1, %v10236_v0  ;;  %8567 = vmatprep.mubr.msk.f32.mxu1 %vm201_vm1, %v10236_v0 }
0x176e   :  { %8557 = vmatmul.mubr.msk.f32.vlgmr.msra.gmra.mrb[26].mxu0 %vm201_vm1, %v10241_v4  ;;  %8568 = vmatmul.mubr.msk.f32.vlgmr.msra.gmra.mrb[26].mxu1 %vm201_vm1, %v10241_v4 }
0x176f   :  { %9274 = vmatpush3.bf16.msra.mxu0 %v9271_v52  ;;  %8578 = vmatprep.mubr.msk.f32.mxu0 %vm201_vm1, %v10236_v0 }
0x1770   :  { %9276 = vmatprep.subr.bf16.mxu0 %v9275_v5 }
0x1773   :  { %9278 = vmatpush3.bf16.msra.mxu0 %v9275_v5 }
0x1776   :  { %8579 = vmatmul.mubr.msk.f32.vlgmr.msra.gmra.mrb[28].mxu0 %vm201_vm1, %v10241_v4 }
0x1841   :  { %v8558_v10 = vpop.f32.mrb[26].mxu0  ;;  %v8569_v48 = vpop.f32.mrb[26].mxu1 }
0x1842   :  { %v2861_v47 = vadd.f32 %v8569_v48, %v7690_v6  ;;  %v2771_v11 = vpop.f32.mrb[27].mxu0  ;;  %v2855_v12 = vpop.f32.mrb[27].mxu1  ;;  %v2777_v19 = vadd.f32 %v8558_v10, %v7687_v7 }
0x1843   :  { %v2772_v2 = vadd.f32 %v7687_v7, %v2771_v11  ;;  %v2856_v1 = vadd.f32 %v7690_v6, %v2855_v12 }
0x1845   :  { %v9279_v13 = vpack.c.bf16 %v2861_v47, %v2856_v1  ;;  %8585 = vmatprep.mubr.msk.f32.mxu1 %vm201_vm1, %v2772_v2 }
0x1847   :  { %9281 = vmatprep.subr.msk.bf16.mxu1 %vm10069_vm2, %v9279_v13 }
0x1848   :  { %9284 = vmatpush3.bf16.xpose.msk.msra.mxu1 %vm10069_vm2, %v9279_v13 }
0x1849   :  { %v8580_v15 = vpop.f32.mrb[28].mxu0  ;;  %9290 = vmatprep.subr.bf16.mxu1 %v9289_v8 }
0x184a   :  { %v2945_v16 = vadd.f32 %v8580_v15, %v7693_v14  ;;  %v2939_v17 = vpop.f32.mrb[29].mxu0  ;;  %v3276_v15 = vld [vmem:[#allocation6 + $0x58] sm:$0xff] }
0x184b   :  { %v2940_v18 = vadd.f32 %v7693_v14, %v2939_v17  ;;  %v3277_v17 = vld [vmem:[#allocation6 + $0x60] sm:$0xff] }
0x184d   :  { %v9285_v20 = vpack.c.bf16 %v2945_v16, %v2940_v18  ;;  %v3278_v18 = vld [vmem:[#allocation6 + $0x68] sm:$0xff] }
0x184f   :  { %9286 = vmatprep.subr.bf16.mxu0 %v9285_v20  ;;  %8586 = vmatmul.mubr.msk.f32.vlgmr.msra.gmra.mrb[28].mxu1 %vm201_vm1, %v2777_v19  ;;  %v9301_v19 = vpack.c.bf16 %v3278_v18, %v3277_v17 }
0x1850   :  { %9288 = vmatpush3.bf16.msra.mxu0 %v9285_v20  ;;  %9292 = vmatpush3.bf16.msra.mxu1 %v9289_v8  ;;  %v3503_v20 = vld [vmem:[#allocation4 + $0x3f0] sm:$0xff] }
0x1851   :  { %9294 = vmatprep.subr.bf16.mxu1 %v9293_v45 }
0x1854   :  { %9296 = vmatpush3.bf16.msra.mxu1 %v9293_v45 }
0x1922   :  { %v8587_v21 = vpop.f32.mrb[28].mxu1 }
0x1923   :  { %v3036_v22 = vmul.f32 0.17677669, %v8587_v21  ;;  %v3026_v23 = vpop.f32.mrb[29].mxu1  ;;  %v3504_v21 = vld [vmem:[#allocation4 + $0x3f8] sm:$0xff] }
0x1924   :  { %v3035_v24 = vmul.f32 0.17677669, %v3026_v23  ;;  %v3367_v23 = vld [vmem:[#allocation4 + $0x3a8] sm:$0xff] }
0x1925   :  { %v3038_v26 = vadd.f32 %v9786_v25, %v3036_v22  ;;  %v9321_v22 = vpack.c.bf16 %v3504_v21, %v3503_v20  ;;  %v3369_v25 = vld [vmem:[#allocation4 + $0x3b8] sm:$0xff]  ;;  %v3685_v20 = vld [vmem:[#allocation4 + $0x440] sm:$0xff]  ;;  %v3686_v21 = vld [vmem:[#allocation4 + $0x448] sm:$0xff] }
0x1926   :  { %v3037_v28 = vadd.f32 %v9787_v27, %v3035_v24  ;;  %v3368_v24 = vld [vmem:[#allocation4 + $0x3b0] sm:$0xff]  ;;  %v3370_v27 = vld [vmem:[#allocation4 + $0x3c0] sm:$0xff] }
0x1927   :  { %v3042_v31 = vsel %vm106_vm0, %v3038_v26, -inf }
0x1928   :  { %3043 = vmax.xlane.f32.xlu1 %v3042_v31  ;;  %v3039_v32 = vsel %vm106_vm0, %v3037_v28, -inf  ;;  %v3371_v31 = vld [vmem:[#allocation4 + $0x3c8] sm:$0xff] }
0x1929   :  { %3040 = vmax.xlane.f32.xlu0 %v3039_v32  ;;  %v3372_v32 = vld [vmem:[#allocation4 + $0x3d0] sm:$0xff] }
0x19b5   :  { %v3044_v33 = vpop.xlane.xlu1 %3043 }
0x19b6   :  { %v3046_v34 = vsub.f32 %v3038_v26, %v3044_v33  ;;  %v3041_v35 = vpop.xlane.xlu0 %3040  ;;  %v9305_v26 = vpack.c.bf16 %v3368_v24, %v3367_v23  ;;  %v9313_v33 = vpack.c.bf16 %v3372_v32, %v3371_v31  ;;  %v9789_v24 = vld [vmem:[%s10611_s4 + $0x8] sm:$0xf]  ;;  %v7718_v31 = vld [vmem:[#allocation4 + $0x428] ss:$0 sm:$0xff] }
0x19b7   :  { %v3045_v36 = vsub.f32 %v3037_v28, %v3041_v35  ;;  %v9309_v28 = vpack.c.bf16 %v3370_v27, %v3369_v25 }
0x19b8   :  { %v3049_v37 = vmul.f32 1.442695, %v3046_v34  ;;  %9306 = vmatprep.subr.bf16.mxu1 %v9305_v26 }
0x19b9   :  { %v3047_v38 = vmul.f32 1.442695, %v3045_v36 }
0x19ba   :  { %9686 = vpow2.f32 %v3049_v37 }
0x19bb   :  { %9688 = vpow2.f32 %v3047_v38 }
0x19c4   :  { %v9687_v39 = vpop.eup %9686 }
0x19c5   :  { %v9689_v30 = vpop.eup %9688  ;;  %v3054_v29 = vsel %vm106_vm0, %v9687_v39, 0.0 }
0x19c6   :  { %3055 = vadd.xlane.f32.xlu1 %v3054_v29  ;;  %v3051_v9 = vsel %vm106_vm0, %v9689_v30, 0.0  ;;  %v7705_v29 = vld [vmem:[#allocation4 + $0x590] ss:$0 sm:$0xff] }
0x19c7   :  { %3052 = vadd.xlane.f32.xlu0 %v3051_v9 }
0x1a53   :  { %v3056_v46 = vpop.xlane.xlu1 %3055 }
0x1a54   :  { %9690 = vrcp.f32 %v3056_v46  ;;  %v3053_v49 = vpop.xlane.xlu0 %3052 }
0x1a55   :  { %9692 = vrcp.f32 %v3053_v49  ;;  %v95_v49 = vld [vmem:[%s10609_s2] sm:$0xff] }
0x1a5e   :  { %v9691_v50 = vpop.eup %9690 }
0x1a5f   :  { %v9693_v51 = vpop.eup %9692  ;;  %v3060_v55 = vmul.f32 %v9691_v50, %v9687_v39  ;;  %v96_v50 = vld [vmem:[%s10609_s2 + $0x8] sm:$0xf] }
0x1a60   :  { %v3058_v52 = vmul.f32 %v9693_v51, %v9689_v30  ;;  %v3373_v51 = vld [vmem:[#allocation4 + $0x3d8] sm:$0xff] }
0x1a62   :  { %8592 = vmatprep.mubr.msk.f32.mxu0 %vm106_vm0, %v3058_v52  ;;  %v3374_v52 = vld [vmem:[#allocation4 + $0x3e0] sm:$0xff] }
0x1a63   :  { %8593 = vmatmul.mubr.msk.f32.vlgmr.msra.gmra.mrb[30].mxu0 %vm106_vm0, %v3060_v55  ;;  %v9317_v55 = vpack.c.bf16 %v3374_v52, %v3373_v51 }
0x1b36   :  { %v8594_v56 = vpop.f32.mrb[30].mxu0 }
0x1b37   :  { %v3133_v57 = vpop.f32.mrb[31].mxu0 }
0x1b38   :  { %8603 = vmatprep.mubr.msk.f32.mxu1 %vm201_vm1, %v3133_v57  ;;  %v3594_v57 = vld [vmem:[#allocation4 + $0x410] sm:$0xff] }
0x1b39   :  { %8604 = vmatmul.mubr.msk.f32.vlgmr.msra.gmra.mrb[30].mxu1 %vm201_vm1, %v8594_v56  ;;  %v3593_v56 = vld [vmem:[#allocation4 + $0x408] sm:$0xff] }
0x1b3a   :  { %9308 = vmatpush3.bf16.msra.mxu1 %v9305_v26  ;;  %v9337_v26 = vpack.c.bf16 %v3686_v21, %v3685_v20  ;;  %v4050_v20 = vld [vmem:[#allocation4 + $0x490] sm:$0xff]  ;;  %v4051_v21 = vld [vmem:[#allocation4 + $0x498] sm:$0xff] }
0x1b3b   :  { %9310 = vmatprep.subr.bf16.mxu1 %v9309_v28 }
0x1b3e   :  { %9312 = vmatpush3.bf16.msra.mxu1 %v9309_v28 }
0x1b3f   :  { %9314 = vmatprep.subr.bf16.mxu1 %v9313_v33 }
0x1b42   :  { %9316 = vmatpush3.bf16.msra.mxu1 %v9313_v33 }
0x1b43   :  { %9318 = vmatprep.subr.bf16.mxu1 %v9317_v55 }
0x1b46   :  { %9320 = vmatpush3.bf16.msra.mxu1 %v9317_v55  ;;  %v9790_v55 = vld [vmem:[%s10613_s6 + $0x8] sm:$0xf] }
0x1c0c   :  { %v8605_v59 = vpop.f32.mrb[30].mxu1 }
0x1c0d   :  { %v3229_v60 = vadd.f32 %v8605_v59, %v7702_v58  ;;  %v3223_v61 = vpop.f32.mrb[31].mxu1  ;;  %v3595_v59 = vld [vmem:[#allocation4 + $0x418] sm:$0xff] }
0x1c0e   :  { %v3224_v63 = vadd.f32 %v7702_v58, %v3223_v61  ;;  %v9325_v58 = vpack.c.bf16 %v3594_v57, %v3593_v56  ;;  %v9791_v57 = vld [vmem:[%s10613_s6] sm:$0xff] }
0x1c0f   :  { %v3233_v3 = vadd.f32 %v3229_v60, %v10241_v4  ;;  %v3596_v60 = vld [vmem:[#allocation4 + $0x420] sm:$0xff] }
0x1c10   :  { %v3232_v5 = vadd.f32 %v3224_v63, %v10236_v0  ;;  %v3275_v0 = vld [vmem:[#allocation6 + $0x50] sm:$0xff]  ;;  %v9329_v61 = vpack.c.bf16 %v3596_v60, %v3595_v59  ;;  %v3767_v63 = vld [vmem:[#allocation4 + $0x458] sm:$0xff] }
0x1c11   :  { %v3239_v6 = vsel %vm201_vm1, %v3233_v3, 0.0  ;;  %v9297_v16 = vpack.c.bf16 %v3276_v15, %v3275_v0 }
0x1c12   :  { %3240 = vadd.xlane.f32.xlu1 %v3239_v6  ;;  %v3236_v7 = vsel %vm201_vm1, %v3232_v5, 0.0  ;;  %v3683_v6 = vld [vmem:[#allocation4 + $0x430] sm:$0xff] }
0x1c13   :  { %3237 = vadd.xlane.f32.xlu0 %v3236_v7  ;;  %9298 = vmatprep.subr.bf16.mxu0 %v9297_v16  ;;  %v3684_v7 = vld [vmem:[#allocation4 + $0x438] sm:$0xff] }
0x1c14   :  { %9300 = vmatpush3.bf16.msra.mxu0 %v9297_v16 }
0x1c15   :  { %9302 = vmatprep.subr.bf16.mxu0 %v9301_v19 }
0x1c18   :  { %9304 = vmatpush3.bf16.msra.mxu0 %v9301_v19 }
0x1c19   :  { %9322 = vmatprep.subr.bf16.mxu0 %v9321_v22 }
0x1c9f   :  { %v3241_v10 = vpop.xlane.xlu1 %3240 }
0x1ca0   :  { %v3243_v48 = vmul.f32 0.03125, %v3241_v10  ;;  %v3238_v47 = vpop.xlane.xlu0 %3237  ;;  %v9333_v10 = vpack.c.bf16 %v3684_v7, %v3683_v6 }
0x1ca1   :  { %v3242_v11 = vmul.f32 0.03125, %v3238_v47 }
0x1ca2   :  { %v3245_v12 = vsub.f32 %v3233_v3, %v3243_v48  ;;  %v3768_v3 = vld [vmem:[#allocation4 + $0x460] sm:$0xff] }
0x1ca3   :  { %v3244_v2 = vsub.f32 %v3232_v5, %v3242_v11  ;;  %v9341_v5 = vpack.c.bf16 %v3768_v3, %v3767_v63  ;;  %v7707_v48 = vld [vmem:[#allocation6 + $0x70] ss:$0 sm:$0xff] }
0x1ca4   :  { %v3247_v1 = vmul.f32 %v3245_v12, %v3245_v12 }
0x1ca5   :  { %v3246_v13 = vmul.f32 %v3244_v2, %v3244_v2  ;;  %9342 = vmatprep.subr.bf16.mxu1 %v9341_v5 }
0x1ca6   :  { %v3251_v14 = vsel %vm201_vm1, %v3247_v1, 0.0  ;;  %v7715_v1 = vld [vmem:[#allocation4 + $0x400] ss:$0 sm:$0xff] }
0x1ca7   :  { %3252 = vadd.xlane.f32.xlu1 %v3251_v14  ;;  %v3248_v4 = vsel %vm201_vm1, %v3246_v13, 0.0  ;;  %v3769_v13 = vld [vmem:[#allocation4 + $0x468] sm:$0xff]  ;;  %v3770_v14 = vld [vmem:[#allocation4 + $0x470] sm:$0xff] }
0x1ca8   :  { %3249 = vadd.xlane.f32.xlu0 %v3248_v4  ;;  %v9345_v18 = vpack.c.bf16 %v3770_v14, %v3769_v13 }
0x1d34   :  { %v3253_v34 = vpop.xlane.xlu1 %3252 }
0x1d35   :  { %v3255_v35 = vmul.f32 0.03125, %v3253_v34  ;;  %v3250_v36 = vpop.xlane.xlu0 %3249 }
0x1d36   :  { %v3254_v37 = vmul.f32 0.03125, %v3250_v36 }
0x1d37   :  { %v3257_v38 = vadd.f32 1e-05, %v3255_v35  ;;  %v7724_v35 = vld [vmem:[#allocation4 + $0x478] ss:$0 sm:$0xff] }
0x1d38   :  { %v3256_v39 = vadd.f32 1e-05, %v3254_v37 }
0x1d39   :  { %9694 = vrsqrt.f32 %v3257_v38 }
0x1d3a   :  { %9696 = vrsqrt.f32 %v3256_v39 }
0x1d43   :  { %v9695_v30 = vpop.eup %9694 }
0x1d44   :  { %v9697_v9 = vpop.eup %9696  ;;  %v3261_v40 = vmul.f32 %v9695_v30, %v3245_v12  ;;  %v7721_v30 = vld [vmem:[#allocation4 + $0x450] ss:$0 sm:$0xff] }
0x1d45   :  { %v3260_v42 = vmul.f32 %v9697_v9, %v3244_v2 }
0x1d46   :  { %v3267_v8 = vmul.f32 %v7705_v29, %v3261_v40 }
0x1d47   :  { %v3266_v44 = vmul.f32 %v7705_v29, %v3260_v42 }
0x1d48   :  { %v10283_v46 = vadd.f32 %v7706_v43, %v3267_v8 }
0x1d49   :  { %v10281_v45 = vadd.f32 %v7706_v43, %v3266_v44 }
0x1d4b   :  { %8614 = vmatprep.mubr.msk.f32.mxu0 %vm201_vm1, %v10281_v45 }
0x1d4c   :  { %8615 = vmatmul.mubr.msk.f32.vlgmr.msra.gmra.mrb[32].mxu0 %vm201_vm1, %v10283_v46 }
0x1d4d   :  { %9324 = vmatpush3.bf16.msra.mxu0 %v9321_v22  ;;  %8640 = vmatprep.mubr.msk.f32.mxu0 %vm106_vm0, %v95_v49  ;;  %v9788_v22 = vld [vmem:[%s10611_s4] sm:$0xff] }
0x1d4e   :  { %9326 = vmatprep.subr.bf16.mxu0 %v9325_v58 }
0x1d50   :  { %8641 = vmatmul.mubr.msk.f32.vlgmr.msra.gmra.mrb[34].mxu0 %vm106_vm0, %v96_v50 }
0x1d51   :  { %9328 = vmatpush3.bf16.msra.mxu0 %v9325_v58 }
0x1d52   :  { %9330 = vmatprep.subr.bf16.mxu0 %v9329_v61 }
0x1d55   :  { %9332 = vmatpush3.bf16.msra.mxu0 %v9329_v61 }
0x1d56   :  { %9334 = vmatprep.subr.bf16.mxu0 %v9333_v10 }
0x1e1f   :  { %v8616_v47 = vpop.f32.mrb[32].mxu0 }
0x1e20   :  { %v3362_v11 = vadd.f32 %v8616_v47, %v7707_v48  ;;  %v3356_v12 = vpop.f32.mrb[33].mxu0 }
0x1e21   :  { %v3357_v2 = vadd.f32 %v7707_v48, %v3356_v12 }
0x1e22   :  { %v3366_v15 = vmax.f32 %v3362_v11, 0.0 }
0x1e23   :  { %v3365_v4 = vmax.f32 %v3357_v2, 0.0  ;;  %v8642_v0 = vpop.f32.mrb[34].mxu0 }
0x1e24   :  { %v3588_v16 = vadd.f32 %v8642_v0, %v7715_v1  ;;  %v3582_v17 = vpop.f32.mrb[35].mxu0 }
0x1e25   :  { %v3583_v19 = vadd.f32 %v7715_v1, %v3582_v17  ;;  %8633 = vmatprep.mubr.msk.f32.mxu1 %vm885_vm3, %v3365_v4 }
0x1e26   :  { %8634 = vmatmul.mubr.msk.f32.vlgmr.msra.gmra.mrb[32].mxu1 %vm885_vm3, %v3366_v15  ;;  %v10307_v25 = vadd.f32 %v9789_v24, %v3588_v16  ;;  %v4048_v15 = vld [vmem:[#allocation4 + $0x480] sm:$0xff]  ;;  %v4049_v16 = vld [vmem:[#allocation4 + $0x488] sm:$0xff] }
0x1e27   :  { %v10302_v23 = vadd.f32 %v9788_v22, %v3583_v19  ;;  %9344 = vmatpush3.bf16.msra.mxu1 %v9341_v5  ;;  %v9361_v17 = vpack.c.bf16 %v4049_v16, %v4048_v15  ;;  %v7714_v15 = vld [vmem:[#allocation4 + $0x5a8] ss:$0 sm:$0xff] }
0x1e28   :  { %9346 = vmatprep.subr.bf16.mxu1 %v9345_v18 }
0x1e29   :  { %8651 = vmatprep.mubr.msk.f32.mxu0 %vm201_vm1, %v10302_v23  ;;  %8673 = vmatprep.mubr.msk.f32.mxu1 %vm201_vm1, %v10302_v23 }
0x1e2a   :  { %8652 = vmatmul.mubr.msk.f32.vlgmr.msra.gmra.mrb[36].mxu0 %vm201_vm1, %v10307_v25 }
0x1e2b   :  { %9336 = vmatpush3.bf16.msra.mxu0 %v9333_v10  ;;  %9348 = vmatpush3.bf16.msra.mxu1 %v9345_v18  ;;  %v7710_v10 = vld [vmem:[#allocation4 + $0x3e8] ss:$0 sm:$0xff] }
0x1e2c   :  { %8662 = vmatprep.mubr.msk.f32.mxu0 %vm201_vm1, %v10302_v23  ;;  %9338 = vmatprep.subr.bf16.mxu0 %v9337_v26 }
0x1e2e   :  { %8674 = vmatmul.mubr.msk.f32.vlgmr.msra.gmra.mrb[34].mxu1 %vm201_vm1, %v10307_v25 }
0x1e2f   :  { %9340 = vmatpush3.bf16.msra.mxu0 %v9337_v26  ;;  %v9365_v26 = vpack.c.bf16 %v4051_v21, %v4050_v20  ;;  %v4181_v20 = vld [vmem:[#allocation4 + $0x4b0] sm:$0xff] }
0x1e32   :  { %8663 = vmatmul.mubr.msk.f32.vlgmr.msra.gmra.mrb[38].mxu0 %vm201_vm1, %v10307_v25 }
0x1ef9   :  { %v8635_v27 = vpop.f32.mrb[32].mxu1 }
0x1efa   :  { %v3452_v28 = vpop.f32.mrb[33].mxu1  ;;  %v3458_v48 = vadd.f32 %v8635_v27, %v7710_v10 }
0x1efb   :  { %v3453_v47 = vadd.f32 %v7710_v10, %v3452_v28 }
0x1efc   :  { %v3462_v1 = vadd.f32 %v3458_v48, %v10283_v46 }
0x1efd   :  { %v8653_v32 = vpop.f32.mrb[36].mxu0  ;;  %v3461_v14 = vadd.f32 %v3453_v47, %v10281_v45 }
0x1efe   :  { %v3674_v33 = vpop.f32.mrb[37].mxu0  ;;  %v3680_v44 = vadd.f32 %v8653_v32, %v7718_v31  ;;  %v3468_v4 = vsel %vm201_vm1, %v3462_v1, 0.0 }
0x1eff   :  { %v3675_v34 = vadd.f32 %v7718_v31, %v3674_v33  ;;  %v3465_v0 = vsel %vm201_vm1, %v3461_v14, 0.0 }
0x1f01   :  { %v8675_v36 = vpop.f32.mrb[34].mxu1  ;;  %8680 = vmatprep.mubr.msk.f32.mxu0 %vm201_vm1, %v3675_v34 }
0x1f02   :  { %v3848_v37 = vadd.f32 %v8675_v36, %v7724_v35  ;;  %v3842_v38 = vpop.f32.mrb[35].mxu1 }
0x1f03   :  { %v3843_v39 = vadd.f32 %v7724_v35, %v3842_v38  ;;  %v7734_v35 = vld [vmem:[#allocation4 + $0x4a0] ss:$0 sm:$0xff] }
0x1f05   :  { %v9355_v29 = vpack.c.bf16 %v3848_v37, %v3843_v39  ;;  %v8664_v9 = vpop.f32.mrb[38].mxu0 }
0x1f06   :  { %v3764_v40 = vadd.f32 %v8664_v9, %v7721_v30  ;;  %v3758_v42 = vpop.f32.mrb[39].mxu0 }
0x1f07   :  { %v3759_v43 = vadd.f32 %v7721_v30, %v3758_v42  ;;  %9357 = vmatprep.subr.msk.bf16.mxu1 %vm10140_vm6, %v9355_v29 }
0x1f08   :  { %9360 = vmatpush3.bf16.msk.msra.mxu1 %vm10140_vm6, %v9355_v29 }
0x1f09   :  { %v9349_v8 = vpack.c.bf16 %v3764_v40, %v3759_v43  ;;  %9362 = vmatprep.subr.bf16.mxu1 %v9361_v17 }
0x1f0b   :  { %9351 = vmatprep.subr.msk.bf16.mxu0 %vm10069_vm2, %v9349_v8 }
0x1f0c   :  { %9354 = vmatpush3.bf16.xpose.msk.msra.mxu0 %vm10069_vm2, %v9349_v8 }
0x1f13   :  { %8681 = vmatmul.mubr.msk.f32.vlgmr.msra.gmra.mrb[40].mxu0 %vm201_vm1, %v3680_v44 }
0x1fe6   :  { %v8682_v49 = vpop.f32.mrb[40].mxu0 }
0x1fe7   :  { %v3939_v50 = vmul.f32 0.17677669, %v8682_v49  ;;  %v3929_v51 = vpop.f32.mrb[41].mxu0 }
0x1fe8   :  { %v3938_v52 = vmul.f32 0.17677669, %v3929_v51  ;;  %v4270_v51 = vld [vmem:[#allocation4 + $0x4d0] sm:$0xff] }
0x1fe9   :  { %v3941_v56 = vadd.f32 %v9790_v55, %v3939_v50 }
0x1fea   :  { %v3940_v58 = vadd.f32 %v9791_v57, %v3938_v52  ;;  %v4271_v52 = vld [vmem:[#allocation4 + $0x4d8] sm:$0xff] }
0x1feb   :  { %v3945_v59 = vsel %vm1456_vm7, %v3941_v56, -inf  ;;  %v9377_v55 = vpack.c.bf16 %v4271_v52, %v4270_v51  ;;  %v7742_v51 = vld [vmem:[#allocation4 + $0x4f0] ss:$0 sm:$0xff] }
0x1fec   :  { %3946 = vmax.xlane.f32.xlu1 %v3945_v59  ;;  %v3942_v60 = vsel %vm1452_vm8, %v3940_v58, -inf }
0x1fed   :  { %3943 = vmax.xlane.f32.xlu0 %v3942_v60 }
0x2079   :  { %v3947_v61 = vpop.xlane.xlu1 %3946 }
0x207a   :  { %v3949_v63 = vsub.f32 %v3941_v56, %v3947_v61  ;;  %v3944_v3 = vpop.xlane.xlu0 %3943 }
0x207b   :  { %v3948_v5 = vsub.f32 %v3940_v58, %v3944_v3 }
0x207c   :  { %v3952_v6 = vmul.f32 1.442695, %v3949_v63 }
0x207d   :  { %v3950_v7 = vmul.f32 1.442695, %v3948_v5 }
0x207e   :  { %9698 = vpow2.f32 %v3952_v6 }
0x207f   :  { %9700 = vpow2.f32 %v3950_v7 }
0x2088   :  { %v9699_v11 = vpop.eup %9698 }
0x2089   :  { %v9701_v12 = vpop.eup %9700  ;;  %v3957_v2 = vsel %vm1456_vm7, %v9699_v11, 0.0 }
0x208a   :  { %3958 = vadd.xlane.f32.xlu1 %v3957_v2  ;;  %v3954_v13 = vsel %vm1452_vm8, %v9701_v12, 0.0 }
0x208b   :  { %3955 = vadd.xlane.f32.xlu0 %v3954_v13  ;;  %v7713_v13 = vld [vmem:[#allocation4 + $0x5a0] ss:$0 sm:$0xff] }
0x208e   :  { %3469 = vadd.xlane.f32.xlu1 %v3468_v4 }
0x208f   :  { %3466 = vadd.xlane.f32.xlu0 %v3465_v0 }
0x2117   :  { %v3959_v18 = vpop.xlane.xlu1 %3958 }
0x2118   :  { %9702 = vrcp.f32 %v3959_v18  ;;  %v3956_v19 = vpop.xlane.xlu0 %3955 }
0x2119   :  { %9704 = vrcp.f32 %v3956_v19 }
0x211b   :  { %v3470_v31 = vpop.xlane.xlu1 %3469 }
0x211c   :  { %v3467_v32 = vpop.xlane.xlu0 %3466  ;;  %v3472_v33 = vmul.f32 0.03125, %v3470_v31 }
0x211d   :  { %v3471_v34 = vmul.f32 0.03125, %v3467_v32 }
0x211e   :  { %v3474_v37 = vsub.f32 %v3462_v1, %v3472_v33 }
0x211f   :  { %v3473_v30 = vsub.f32 %v3461_v14, %v3471_v34 }
0x2120   :  { %v3476_v43 = vmul.f32 %v3474_v37, %v3474_v37 }
0x2121   :  { %v3475_v44 = vmul.f32 %v3473_v30, %v3473_v30 }
0x2122   :  { %v9703_v46 = vpop.eup %9702  ;;  %v3480_v49 = vsel %vm201_vm1, %v3476_v43, 0.0  ;;  %v4362_v43 = vld [vmem:[#allocation4 + $0x508] sm:$0xff] }
0x2123   :  { %v9705_v22 = vpop.eup %9704  ;;  %v3963_v24 = vmul.f32 %v9703_v46, %v9699_v11  ;;  %v3477_v50 = vsel %vm201_vm1, %v3475_v44, 0.0  ;;  %v4180_v46 = vld [vmem:[#allocation4 + $0x4a8] sm:$0xff] }
0x2124   :  { %v3961_v45 = vmul.f32 %v9705_v22, %v9701_v12  ;;  %v9369_v21 = vpack.c.bf16 %v4181_v20, %v4180_v46  ;;  %v4182_v22 = vld [vmem:[#allocation4 + $0x4b8] sm:$0xff] }
0x2126   :  { %8687 = vmatprep.mubr.msk.f32.mxu1 %vm1452_vm8, %v3961_v45  ;;  %9370 = vmatprep.subr.bf16.mxu0 %v9369_v21  ;;  %v4183_v45 = vld [vmem:[#allocation4 + $0x4c0] sm:$0xff] }
0x2127   :  { %8688 = vmatmul.mubr.msk.f32.vlgmr.msra.gmra.mrb[36].mxu1 %vm1452_vm8, %v3963_v24  ;;  %9372 = vmatpush3.bf16.msra.mxu0 %v9369_v21  ;;  %v9373_v24 = vpack.c.bf16 %v4183_v45, %v4182_v22 }
0x2128   :  { %9364 = vmatpush3.bf16.msra.mxu1 %v9361_v17 }
0x2129   :  { %9366 = vmatprep.subr.bf16.mxu1 %v9365_v26  ;;  %9374 = vmatprep.subr.bf16.mxu0 %v9373_v24 }
0x212b   :  { %9376 = vmatpush3.bf16.msra.mxu0 %v9373_v24  ;;  %v4638_v24 = vld [vmem:[#allocation4 + $0x520] sm:$0xff] }
0x212c   :  { %9368 = vmatpush3.bf16.msra.mxu1 %v9365_v26  ;;  %v4360_v26 = vld [vmem:[#allocation4 + $0x4f8] sm:$0xff] }
0x212d   :  { %9378 = vmatprep.subr.bf16.mxu1 %v9377_v55 }
0x21fa   :  { %v8689_v27 = vpop.f32.mrb[36].mxu1 }
0x21fb   :  { %v4039_v28 = vpop.f32.mrb[37].mxu1 }
0x21fc   :  { %8698 = vmatprep.mubr.msk.f32.mxu1 %vm201_vm1, %v4039_v28 }
0x21fd   :  { %8699 = vmatmul.mubr.msk.f32.vlgmr.msra.gmra.mrb[38].mxu1 %vm201_vm1, %v8689_v27  ;;  %v4361_v27 = vld [vmem:[#allocation4 + $0x500] sm:$0xff] }
0x21fe   :  { %9380 = vmatpush3.bf16.msra.mxu1 %v9377_v55  ;;  %v9385_v28 = vpack.c.bf16 %v4361_v27, %v4360_v26  ;;  %v4639_v26 = vld [vmem:[#allocation4 + $0x528] sm:$0xff] }
0x21ff   :  { %v9403_v27 = vpack.c.bf16 %v4639_v26, %v4638_v24 }
0x2200   :  { %9386 = vmatprep.subr.bf16.mxu0 %v9385_v28 }
0x22d0   :  { %v8700_v36 = vpop.f32.mrb[38].mxu1 }
0x22d1   :  { %v4135_v38 = vadd.f32 %v8700_v36, %v7734_v35  ;;  %v4129_v39 = vpop.f32.mrb[39].mxu1 }
0x22d2   :  { %v4130_v29 = vadd.f32 %v7734_v35, %v4129_v39 }
0x22d3   :  { %v4139_v9 = vadd.f32 %v4135_v38, %v10307_v25  ;;  %v4272_v25 = vld [vmem:[#allocation4 + $0x4e0] sm:$0xff]  ;;  %v7737_v38 = vld [vmem:[#allocation4 + $0x5b0] ss:$0 sm:$0xff] }
0x22d4   :  { %v4138_v40 = vadd.f32 %v4130_v29, %v10302_v23  ;;  %v4273_v23 = vld [vmem:[#allocation4 + $0x4e8] sm:$0xff] }
0x22d5   :  { %v4145_v42 = vsel %vm1658_vm9, %v4139_v9, 0.0  ;;  %v9381_v56 = vpack.c.bf16 %v4273_v23, %v4272_v25 }
0x22d6   :  { %4146 = vadd.xlane.f32.xlu1 %v4145_v42  ;;  %v4142_v8 = vsel %vm201_vm1, %v4138_v40, 0.0 }
0x22d7   :  { %4143 = vadd.xlane.f32.xlu0 %v4142_v8  ;;  %9382 = vmatprep.subr.bf16.mxu1 %v9381_v56  ;;  %v4363_v8 = vld [vmem:[#allocation4 + $0x510] sm:$0xff] }
0x22d8   :  { %9384 = vmatpush3.bf16.msra.mxu1 %v9381_v56 }
0x22da   :  { %3481 = vadd.xlane.f32.xlu1 %v3480_v49 }
0x22db   :  { %3478 = vadd.xlane.f32.xlu0 %v3477_v50  ;;  %v9389_v50 = vpack.c.bf16 %v4363_v8, %v4362_v43 }
0x2363   :  { %v4147_v57 = vpop.xlane.xlu1 %4146 }
0x2364   :  { %v4149_v58 = vmul.f32 0.03125, %v4147_v57  ;;  %v4144_v59 = vpop.xlane.xlu0 %4143  ;;  %v7739_v57 = vld [vmem:[#allocation4 + $0x4c8] ss:$0 sm:$0xff] }
0x2365   :  { %v4148_v60 = vmul.f32 0.03125, %v4144_v59 }
0x2366   :  { %v4151_v61 = vsub.f32 %v4139_v9, %v4149_v58  ;;  %v7738_v9 = vld [vmem:[#allocation4 + $0x5b8] ss:$0 sm:$0xff] }
0x2367   :  { %v4150_v63 = vsub.f32 %v4138_v40, %v4148_v60  ;;  %v3482_v3 = vpop.xlane.xlu1 %3481 }
0x2368   :  { %v3484_v5 = vmul.f32 0.03125, %v3482_v3  ;;  %v3479_v6 = vpop.xlane.xlu0 %3478  ;;  %v4153_v7 = vmul.f32 %v4151_v61, %v4151_v61 }
0x2369   :  { %v3483_v10 = vmul.f32 0.03125, %v3479_v6  ;;  %v4152_v48 = vmul.f32 %v4150_v63, %v4150_v63 }
0x236a   :  { %v3486_v47 = vadd.f32 1e-05, %v3484_v5  ;;  %v4157_v11 = vsel %vm1658_vm9, %v4153_v7, 0.0 }
0x236b   :  { %v3485_v12 = vadd.f32 1e-05, %v3483_v10  ;;  %4158 = vadd.xlane.f32.xlu1 %v4157_v11  ;;  %v4154_v2 = vsel %vm201_vm1, %v4152_v48, 0.0 }
0x236c   :  { %9706 = vrsqrt.f32 %v3486_v47  ;;  %4155 = vadd.xlane.f32.xlu0 %v4154_v2  ;;  %v9792_v2 = vld [vmem:[%s10614_s7 + $0x8] sm:$0xf] }
0x236d   :  { %9708 = vrsqrt.f32 %v3485_v12 }
0x2376   :  { %v9707_v1 = vpop.eup %9706 }
0x2377   :  { %v9709_v14 = vpop.eup %9708  ;;  %v3490_v4 = vmul.f32 %v9707_v1, %v3474_v37 }
0x2378   :  { %v3489_v0 = vmul.f32 %v9709_v14, %v3473_v30 }
0x2379   :  { %v3496_v16 = vmul.f32 %v7713_v13, %v3490_v4 }
0x237a   :  { %v3495_v17 = vmul.f32 %v7713_v13, %v3489_v0  ;;  %v9793_v13 = vld [vmem:[%s10614_s7] sm:$0xff] }
0x237b   :  { %v3502_v19 = vadd.f32 %v7714_v15, %v3496_v16 }
0x237c   :  { %v3501_v18 = vadd.f32 %v7714_v15, %v3495_v17 }
0x237e   :  { %8720 = vmatprep.mubr.msk.f32.mxu1 %vm201_vm1, %v3501_v18 }
0x237f   :  { %8721 = vmatmul.mubr.msk.f32.vlgmr.msra.gmra.mrb[40].mxu1 %vm201_vm1, %v3502_v19 }
0x23f8   :  { %v4159_v31 = vpop.xlane.xlu1 %4158 }
0x23f9   :  { %v4161_v32 = vmul.f32 0.03125, %v4159_v31  ;;  %v4156_v33 = vpop.xlane.xlu0 %4155 }
0x23fa   :  { %v4160_v34 = vmul.f32 0.03125, %v4156_v33  ;;  %v4640_v33 = vld [vmem:[#allocation4 + $0x530] sm:$0xff] }
0x23fb   :  { %v4163_v35 = vadd.f32 1e-05, %v4161_v32 }
0x23fc   :  { %v4162_v36 = vadd.f32 1e-05, %v4160_v34  ;;  %v4641_v34 = vld [vmem:[#allocation4 + $0x538] sm:$0xff] }
0x23fd   :  { %9710 = vrsqrt.f32 %v4163_v35 }
0x23fe   :  { %9712 = vrsqrt.f32 %v4162_v36 }
0x2407   :  { %v9711_v37 = vpop.eup %9710 }
0x2408   :  { %v9713_v39 = vpop.eup %9712  ;;  %v4167_v30 = vmul.f32 %v9711_v37, %v4151_v61 }
0x2409   :  { %v4166_v29 = vmul.f32 %v9713_v39, %v4150_v63  ;;  %v7745_v63 = vld [vmem:[#allocation4 + $0x518] ss:$0 sm:$0xff] }
0x240a   :  { %v4173_v40 = vmul.f32 %v7737_v38, %v4167_v30 }
0x240b   :  { %v4172_v42 = vmul.f32 %v7737_v38, %v4166_v29  ;;  %v9407_v38 = vpack.c.bf16 %v4641_v34, %v4640_v33  ;;  %v7754_v29 = vld [vmem:[#allocation4 + $0x540] ss:$0 sm:$0xff]  ;;  %v7759_v34 = vld [vmem:[#allocation6 + $0x98] ss:$0 sm:$0xff] }
0x240c   :  { %v10361_v49 = vadd.f32 %v7738_v9, %v4173_v40 }
0x240d   :  { %v10359_v44 = vadd.f32 %v7738_v9, %v4172_v42 }
0x240f   :  { %8709 = vmatprep.mubr.msk.f32.mxu0 %vm201_vm1, %v10359_v44 }
0x2410   :  { %8710 = vmatmul.mubr.msk.f32.vlgmr.msra.gmra.mrb[42].mxu0 %vm201_vm1, %v10361_v49 }
0x2411   :  { %9388 = vmatpush3.bf16.msra.mxu0 %v9385_v28  ;;  %8731 = vmatprep.mubr.msk.f32.mxu0 %vm201_vm1, %v3501_v18 }
0x2412   :  { %9390 = vmatprep.subr.bf16.mxu0 %v9389_v50 }
0x2415   :  { %9392 = vmatpush3.bf16.msra.mxu0 %v9389_v50 }
0x2418   :  { %8732 = vmatmul.mubr.msk.f32.vlgmr.msra.gmra.mrb[44].mxu0 %vm201_vm1, %v3502_v19 }
0x2452   :  { %v8722_v52 = vpop.f32.mrb[40].mxu1 }
0x2453   :  { %v4357_v55 = vadd.f32 %v8722_v52, %v7742_v51  ;;  %v4351_v25 = vpop.f32.mrb[41].mxu1 }
0x2454   :  { %v4352_v23 = vadd.f32 %v7742_v51, %v4351_v25 }
0x2456   :  { %v9393_v56 = vpack.c.bf16 %v4357_v55, %v4352_v23 }
0x2458   :  { %9395 = vmatprep.subr.msk.bf16.mxu1 %vm10069_vm2, %v9393_v56 }
0x2459   :  { %9398 = vmatpush3.bf16.xpose.msk.msra.mxu1 %vm10069_vm2, %v9393_v56 }
0x24e3   :  { %v8711_v58 = vpop.f32.mrb[42].mxu0 }
0x24e4   :  { %v4261_v59 = vpop.f32.mrb[43].mxu0  ;;  %v4267_v61 = vadd.f32 %v8711_v58, %v7739_v57 }
0x24e5   :  { %v4262_v60 = vadd.f32 %v7739_v57, %v4261_v59 }
0x24e7   :  { %8738 = vmatprep.mubr.msk.f32.mxu1 %vm201_vm1, %v4262_v60 }
0x24e8   :  { %8739 = vmatmul.mubr.msk.f32.vlgmr.msra.gmra.mrb[42].mxu1 %vm201_vm1, %v4267_v61 }
0x24eb   :  { %v8733_v3 = vpop.f32.mrb[44].mxu0 }
0x24ec   :  { %v4441_v5 = vadd.f32 %v8733_v3, %v7745_v63  ;;  %v4435_v6 = vpop.f32.mrb[45].mxu0 }
0x24ed   :  { %v4436_v7 = vadd.f32 %v7745_v63, %v4435_v6  ;;  %v4771_v63 = vld [vmem:[#allocation6 + $0x80] sm:$0xff]  ;;  %v4773_v6 = vld [vmem:[#allocation6 + $0x90] sm:$0xff] }
0x24ef   :  { %v9399_v10 = vpack.c.bf16 %v4441_v5, %v4436_v7  ;;  %v4772_v5 = vld [vmem:[#allocation6 + $0x88] sm:$0xff] }
0x24f0   :  { %v9415_v7 = vpack.c.bf16 %v4773_v6, %v4772_v5  ;;  %v5001_v5 = vld [vmem:[#allocation7 + $0x38] sm:$0xff]  ;;  %v5002_v6 = vld [vmem:[#allocation7 + $0x40] sm:$0xff] }
0x24f1   :  { %9400 = vmatprep.subr.bf16.mxu0 %v9399_v10 }
0x24f2   :  { %9402 = vmatpush3.bf16.msra.mxu0 %v9399_v10  ;;  %v4862_v10 = vld [vmem:[#allocation4 + $0x548] sm:$0xff] }
0x24f3   :  { %9404 = vmatprep.subr.bf16.mxu0 %v9403_v27 }
0x25bb   :  { %v8740_v48 = vpop.f32.mrb[42].mxu1 }
0x25bc   :  { %v4532_v47 = vmul.f32 0.17677669, %v8740_v48  ;;  %v4522_v11 = vpop.f32.mrb[43].mxu1  ;;  %v4863_v48 = vld [vmem:[#allocation4 + $0x550] sm:$0xff] }
0x25bd   :  { %v4531_v12 = vmul.f32 0.17677669, %v4522_v11  ;;  %v9419_v11 = vpack.c.bf16 %v4863_v48, %v4862_v10  ;;  %v5090_v10 = vld [vmem:[#allocation4 + $0x5e0] sm:$0xff]  ;;  %v5091_v48 = vld [vmem:[#allocation4 + $0x5e8] sm:$0xff] }
0x25be   :  { %v4534_v1 = vadd.f32 %v9792_v2, %v4532_v47  ;;  %v4864_v47 = vld [vmem:[#allocation4 + $0x558] sm:$0xff] }
0x25bf   :  { %v4533_v14 = vadd.f32 %v9793_v13, %v4531_v12  ;;  %v4865_v12 = vld [vmem:[#allocation4 + $0x560] sm:$0xff]  ;;  %v4867_v13 = vld [vmem:[#allocation4 + $0x570] sm:$0xff] }
0x25c0   :  { %v4538_v4 = vsel %vm2054_vm10, %v4534_v1, -inf  ;;  %v9423_v2 = vpack.c.bf16 %v4865_v12, %v4864_v47  ;;  %v9443_v47 = vpack.c.bf16 %v5091_v48, %v5090_v10  ;;  %v5350_v48 = vld [vmem:[#allocation4 + $0x658] sm:$0xff] }
0x25c1   :  { %4539 = vmax.xlane.f32.xlu1 %v4538_v4  ;;  %v4535_v0 = vsel %vm106_vm0, %v4533_v14, -inf }
0x25c2   :  { %4536 = vmax.xlane.f32.xlu0 %v4535_v0 }
0x264e   :  { %v4540_v15 = vpop.xlane.xlu1 %4539 }
0x264f   :  { %v4542_v16 = vsub.f32 %v4534_v1, %v4540_v15  ;;  %v4537_v17 = vpop.xlane.xlu0 %4536  ;;  %v4866_v1 = vld [vmem:[#allocation4 + $0x568] sm:$0xff] }
0x2650   :  { %v4541_v18 = vsub.f32 %v4533_v14, %v4537_v17  ;;  %v9427_v14 = vpack.c.bf16 %v4867_v13, %v4866_v1 }
0x2651   :  { %v4545_v19 = vmul.f32 1.442695, %v4542_v16 }
0x2652   :  { %v4543_v46 = vmul.f32 1.442695, %v4541_v18 }
0x2653   :  { %9714 = vpow2.f32 %v4545_v19 }
0x2654   :  { %9716 = vpow2.f32 %v4543_v46  ;;  %v7757_v46 = vld [vmem:[#allocation4 + $0x5c0] ss:$0 sm:$0xff] }
0x265d   :  { %v9715_v20 = vpop.eup %9714 }
0x265e   :  { %v9717_v21 = vpop.eup %9716  ;;  %v4550_v22 = vsel %vm2054_vm10, %v9715_v20, 0.0 }
0x265f   :  { %4551 = vadd.xlane.f32.xlu1 %v4550_v22  ;;  %v4547_v45 = vsel %vm106_vm0, %v9717_v21, 0.0 }
0x2660   :  { %4548 = vadd.xlane.f32.xlu0 %v4547_v45  ;;  %v7758_v45 = vld [vmem:[#allocation4 + $0x5c8] ss:$0 sm:$0xff] }
0x26ec   :  { %v4552_v28 = vpop.xlane.xlu1 %4551 }
0x26ed   :  { %9718 = vrcp.f32 %v4552_v28  ;;  %v4549_v31 = vpop.xlane.xlu0 %4548 }
0x26ee   :  { %9720 = vrcp.f32 %v4549_v31  ;;  %v4868_v31 = vld [vmem:[#allocation4 + $0x578] sm:$0xff] }
0x26f7   :  { %v9719_v32 = vpop.eup %9718 }
0x26f8   :  { %v9721_v35 = vpop.eup %9720  ;;  %v4556_v37 = vmul.f32 %v9719_v32, %v9715_v20  ;;  %v4869_v32 = vld [vmem:[#allocation4 + $0x580] sm:$0xff] }
0x26f9   :  { %v4554_v36 = vmul.f32 %v9721_v35, %v9717_v21  ;;  %v9431_v33 = vpack.c.bf16 %v4869_v32, %v4868_v31  ;;  %v5265_v31 = vld [vmem:[#allocation4 + $0x628] sm:$0xff] }
0x26fb   :  { %8745 = vmatprep.mubr.msk.f32.mxu0 %vm106_vm0, %v4554_v36 }
0x26fc   :  { %8746 = vmatmul.mubr.msk.f32.vlgmr.msra.gmra.mrb[46].mxu0 %vm106_vm0, %v4556_v37 }
0x26fd   :  { %9406 = vmatpush3.bf16.msra.mxu0 %v9403_v27 }
0x26fe   :  { %9408 = vmatprep.subr.bf16.mxu0 %v9407_v38 }
0x2701   :  { %9410 = vmatpush3.bf16.msra.mxu0 %v9407_v38 }
0x2702   :  { %9420 = vmatprep.subr.bf16.mxu0 %v9419_v11 }
0x27cf   :  { %v8747_v39 = vpop.f32.mrb[46].mxu0 }
0x27d0   :  { %v4629_v30 = vpop.f32.mrb[47].mxu0 }
0x27d1   :  { %8756 = vmatprep.mubr.msk.f32.mxu0 %vm201_vm1, %v4629_v30 }
0x27d2   :  { %8757 = vmatmul.mubr.msk.f32.vlgmr.msra.gmra.mrb[48].mxu0 %vm201_vm1, %v8747_v39 }
0x27d3   :  { %9422 = vmatpush3.bf16.msra.mxu0 %v9419_v11 }
0x27d4   :  { %9424 = vmatprep.subr.bf16.mxu0 %v9423_v2 }
0x27d7   :  { %9426 = vmatpush3.bf16.msra.mxu0 %v9423_v2 }
0x27d8   :  { %9428 = vmatprep.subr.bf16.mxu0 %v9427_v14 }
0x27db   :  { %9430 = vmatpush3.bf16.msra.mxu0 %v9427_v14 }
0x27dc   :  { %9432 = vmatprep.subr.bf16.mxu0 %v9431_v33 }
0x27df   :  { %9434 = vmatpush3.bf16.msra.mxu0 %v9431_v33  ;;  %v5176_v33 = vld [vmem:[#allocation4 + $0x608] sm:$0xff] }
0x28a5   :  { %v8758_v9 = vpop.f32.mrb[48].mxu0 }
0x28a6   :  { %v4725_v40 = vadd.f32 %v8758_v9, %v7754_v29  ;;  %v4719_v42 = vpop.f32.mrb[49].mxu0 }
0x28a7   :  { %v4720_v43 = vadd.f32 %v7754_v29, %v4719_v42  ;;  %v7762_v29 = vld [vmem:[#allocation4 + $0x588] ss:$0 sm:$0xff] }
0x28a8   :  { %v4729_v8 = vadd.f32 %v4725_v40, %v10361_v49 }
0x28a9   :  { %v4728_v50 = vadd.f32 %v4720_v43, %v10359_v44  ;;  %v4770_v44 = vld [vmem:[#allocation6 + $0x78] sm:$0xff] }
0x28aa   :  { %v4735_v51 = vsel %vm1658_vm9, %v4729_v8, 0.0  ;;  %v9411_v3 = vpack.c.bf16 %v4771_v63, %v4770_v44  ;;  %v4999_v44 = vld [vmem:[#allocation7 + $0x28] sm:$0xff]  ;;  %v5000_v63 = vld [vmem:[#allocation7 + $0x30] sm:$0xff] }
0x28ab   :  { %4736 = vadd.xlane.f32.xlu1 %v4735_v51  ;;  %v4732_v52 = vsel %vm201_vm1, %v4728_v50, 0.0 }
0x28ac   :  { %4733 = vadd.xlane.f32.xlu0 %v4732_v52  ;;  %9412 = vmatprep.subr.bf16.mxu1 %v9411_v3 }
0x28ad   :  { %9414 = vmatpush3.bf16.msra.mxu1 %v9411_v3  ;;  %v9435_v3 = vpack.c.bf16 %v5000_v63, %v4999_v44  ;;  %v7770_v44 = vld [vmem:[#allocation4 + $0x5f0] ss:$0 sm:$0xff] }
0x28ae   :  { %9416 = vmatprep.subr.bf16.mxu1 %v9415_v7 }
0x28b1   :  { %9418 = vmatpush3.bf16.msra.mxu1 %v9415_v7  ;;  %v9439_v7 = vpack.c.bf16 %v5002_v6, %v5001_v5 }
0x28b2   :  { %9436 = vmatprep.subr.bf16.mxu1 %v9435_v3 }
0x2938   :  { %v4737_v55 = vpop.xlane.xlu1 %4736 }
0x2939   :  { %v4739_v25 = vmul.f32 0.03125, %v4737_v55  ;;  %v4734_v23 = vpop.xlane.xlu0 %4733 }
0x293a   :  { %v4738_v56 = vmul.f32 0.03125, %v4734_v23 }
0x293b   :  { %v4741_v57 = vsub.f32 %v4729_v8, %v4739_v25 }
0x293c   :  { %v4740_v58 = vsub.f32 %v4728_v50, %v4738_v56 }
0x293d   :  { %v4743_v59 = vmul.f32 %v4741_v57, %v4741_v57 }
0x293e   :  { %v4742_v60 = vmul.f32 %v4740_v58, %v4740_v58 }
0x293f   :  { %v4747_v61 = vsel %vm1658_vm9, %v4743_v59, 0.0 }
0x2940   :  { %4748 = vadd.xlane.f32.xlu1 %v4747_v61  ;;  %v4744_v49 = vsel %vm201_vm1, %v4742_v60, 0.0 }
0x2941   :  { %4745 = vadd.xlane.f32.xlu0 %v4744_v49 }
0x29cd   :  { %v4749_v4 = vpop.xlane.xlu1 %4748 }
0x29ce   :  { %v4751_v0 = vmul.f32 0.03125, %v4749_v4  ;;  %v4746_v15 = vpop.xlane.xlu0 %4745 }
0x29cf   :  { %v4750_v16 = vmul.f32 0.03125, %v4746_v15 }
0x29d0   :  { %v4753_v17 = vadd.f32 1e-05, %v4751_v0  ;;  %v7765_v0 = vld [vmem:[#allocation4 + $0x5d0] ss:$0 sm:$0xff] }
0x29d1   :  { %v4752_v18 = vadd.f32 1e-05, %v4750_v16 }
0x29d2   :  { %9722 = vrsqrt.f32 %v4753_v17 }
0x29d3   :  { %9724 = vrsqrt.f32 %v4752_v18  ;;  %v7766_v18 = vld [vmem:[#allocation4 + $0x5d8] ss:$0 sm:$0xff] }
0x29dc   :  { %v9723_v19 = vpop.eup %9722 }
0x29dd   :  { %v9725_v20 = vpop.eup %9724  ;;  %v4757_v21 = vmul.f32 %v9723_v19, %v4741_v57 }
0x29de   :  { %v4756_v22 = vmul.f32 %v9725_v20, %v4740_v58 }
0x29df   :  { %v4763_v24 = vmul.f32 %v7757_v46, %v4757_v21 }
0x29e0   :  { %v4762_v26 = vmul.f32 %v7757_v46, %v4756_v22  ;;  %v9794_v22 = vld [vmem:[#allocation2] sm:$0xff] }
0x29e1   :  { %v4769_v28 = vadd.f32 %v7758_v45, %v4763_v24  ;;  %v5174_v24 = vld [vmem:[#allocation4 + $0x5f8] sm:$0xff] }
0x29e2   :  { %v4768_v27 = vadd.f32 %v7758_v45, %v4762_v26  ;;  %v9795_v45 = vld [vmem:[#allocation2 + $0x8] sm:$0xff]  ;;  %v5175_v26 = vld [vmem:[#allocation4 + $0x600] sm:$0xff] }
0x29e4   :  { %8767 = vmatprep.mubr.msk.f32.mxu1 %vm201_vm1, %v4768_v27 }
0x29e5   :  { %8768 = vmatmul.mubr.msk.f32.vlgmr.msra.gmra.mrb[44].mxu1 %vm201_vm1, %v4769_v28 }
0x29e6   :  { %9438 = vmatpush3.bf16.msra.mxu1 %v9435_v3 }
0x29e7   :  { %9440 = vmatprep.subr.bf16.mxu1 %v9439_v7 }
0x29ea   :  { %9442 = vmatpush3.bf16.msra.mxu1 %v9439_v7 }
0x29eb   :  { %9444 = vmatprep.subr.bf16.mxu1 %v9443_v47 }
0x2ab8   :  { %v8769_v35 = vpop.f32.mrb[44].mxu1 }
0x2ab9   :  { %v4857_v36 = vadd.f32 %v8769_v35, %v7759_v34  ;;  %v4851_v37 = vpop.f32.mrb[45].mxu1 }
0x2aba   :  { %v4852_v38 = vadd.f32 %v7759_v34, %v4851_v37  ;;  %v5177_v34 = vld [vmem:[#allocation4 + $0x610] sm:$0xff]  ;;  %v5267_v37 = vld [vmem:[#allocation4 + $0x638] sm:$0xff] }
0x2abb   :  { %v4861_v30 = vmax.f32 %v4857_v36, 0.0  ;;  %v9451_v35 = vpack.c.bf16 %v5177_v34, %v5176_v33  ;;  %v5266_v36 = vld [vmem:[#allocation4 + $0x630] sm:$0xff] }
0x2abc   :  { %v4860_v39 = vmax.f32 %v4852_v38, 0.0  ;;  %v9459_v38 = vpack.c.bf16 %v5267_v37, %v5266_v36  ;;  %v9799_v37 = vld [vmem:[%s10612_s5] sm:$0xff] }
0x2abe   :  { %8786 = vmatprep.mubr.msk.f32.mxu0 %vm885_vm3, %v4860_v39  ;;  %v5348_v39 = vld [vmem:[#allocation4 + $0x648] sm:$0xff] }
0x2abf   :  { %8787 = vmatmul.mubr.msk.f32.vlgmr.msra.gmra.mrb[50].mxu0 %vm885_vm3, %v4861_v30  ;;  %v5349_v30 = vld [vmem:[#allocation4 + $0x650] sm:$0xff] }
0x2b92   :  { %v8788_v9 = vpop.f32.mrb[50].mxu0 }
0x2b93   :  { %v4953_v40 = vadd.f32 %v8788_v9, %v7762_v29  ;;  %v4947_v42 = vpop.f32.mrb[51].mxu0  ;;  %v7681_v9 = vld [vmem:[#allocation7 + $0x20] ss:$0 sm:$0xff] }
0x2b94   :  { %v4948_v43 = vadd.f32 %v7762_v29, %v4947_v42  ;;  %v9463_v29 = vpack.c.bf16 %v5349_v30, %v5348_v39  ;;  %v2597_v42 = vadd.f32 %v7681_v9, %v10231_v54 }
0x2b95   :  { %v4957_v8 = vadd.f32 %v4953_v40, %v4769_v28  ;;  %v5264_v28 = vld [vmem:[#allocation4 + $0x620] sm:$0xff]  ;;  %v2602_v40 = vadd.f32 %v10229_v53, %v7681_v9 }
0x2b96   :  { %v4956_v50 = vadd.f32 %v4948_v43, %v4768_v27  ;;  %v9447_v27 = vpack.c.bf16 %v5175_v26, %v5174_v24  ;;  %v9455_v32 = vpack.c.bf16 %v5265_v31, %v5264_v28 }
0x2b97   :  { %v4963_v51 = vsel %vm1658_vm9, %v4957_v8, 0.0  ;;  %v7568_v43 = vsub.f32 0.0, %v2602_v40 }
0x2b98   :  { %4964 = vadd.xlane.f32.xlu1 %v4963_v51  ;;  %v4960_v52 = vsel %vm201_vm1, %v4956_v50, 0.0  ;;  %9456 = vmatprep.subr.bf16.mxu0 %v9455_v32 }
0x2b99   :  { %4961 = vadd.xlane.f32.xlu0 %v4960_v52  ;;  %9458 = vmatpush3.bf16.msra.mxu0 %v9455_v32 }
0x2b9a   :  { %9460 = vmatprep.subr.bf16.mxu0 %v9459_v38 }
0x2b9d   :  { %9462 = vmatpush3.bf16.msra.mxu0 %v9459_v38 }
0x2c25   :  { %v4965_v55 = vpop.xlane.xlu1 %4964 }
0x2c26   :  { %v4967_v25 = vmul.f32 0.03125, %v4965_v55  ;;  %v4962_v23 = vpop.xlane.xlu0 %4961 }
0x2c27   :  { %v4966_v56 = vmul.f32 0.03125, %v4962_v23 }
0x2c28   :  { %v4969_v57 = vsub.f32 %v4957_v8, %v4967_v25  ;;  %v7567_v8 = vsub.f32 0.0, %v2597_v42 }
0x2c29   :  { %v4968_v58 = vsub.f32 %v4956_v50, %v4966_v56  ;;  %v7571_v50 = vmul.f32 1.442695, %v7568_v43 }
0x2c2a   :  { %v4971_v59 = vmul.f32 %v4969_v57, %v4969_v57  ;;  %v7569_v51 = vmul.f32 1.442695, %v7567_v8 }
0x2c2b   :  { %v4970_v60 = vmul.f32 %v4968_v58, %v4968_v58 }
0x2c2c   :  { %v4975_v61 = vsel %vm1658_vm9, %v4971_v59, 0.0 }
0x2c2d   :  { %4976 = vadd.xlane.f32.xlu1 %v4975_v61  ;;  %v4972_v49 = vsel %vm201_vm1, %v4970_v60, 0.0 }
0x2c2e   :  { %4973 = vadd.xlane.f32.xlu0 %v4972_v49 }
0x2cba   :  { %v4977_v11 = vpop.xlane.xlu1 %4976 }
0x2cbb   :  { %v4979_v12 = vmul.f32 0.03125, %v4977_v11  ;;  %v4974_v2 = vpop.xlane.xlu0 %4973  ;;  %v9796_v11 = vld [vmem:[%s10610_s3] sm:$0xff] }
0x2cbc   :  { %v4978_v1 = vmul.f32 0.03125, %v4974_v2  ;;  %v9797_v2 = vld [vmem:[%s10610_s3 + $0x8] sm:$0xff] }
0x2cbd   :  { %v4981_v13 = vadd.f32 1e-05, %v4979_v12 }
0x2cbe   :  { %v4980_v14 = vadd.f32 1e-05, %v4978_v1 }
0x2cbf   :  { %9726 = vrsqrt.f32 %v4981_v13 }
0x2cc0   :  { %9728 = vrsqrt.f32 %v4980_v14  ;;  %v7776_v14 = vld [vmem:[#allocation4 + $0x640] ss:$0 sm:$0xff] }
0x2cc1   :  { %9730 = vpow2.f32 %v7571_v50 }
0x2cc2   :  { %9732 = vpow2.f32 %v7569_v51 }
0x2cc9   :  { %v9727_v4 = vpop.eup %9726 }
0x2cca   :  { %v9729_v15 = vpop.eup %9728  ;;  %v4985_v16 = vmul.f32 %v9727_v4, %v4969_v57  ;;  %v7767_v57 = vld [vmem:[#allocation7 + $0x48] ss:$0 sm:$0xff]  ;;  %v7773_v4 = vld [vmem:[#allocation4 + $0x618] ss:$0 sm:$0xff] }
0x2ccb   :  { %v4984_v17 = vmul.f32 %v9729_v15, %v4968_v58  ;;  %v9731_v52 = vpop.eup %9730 }
0x2ccc   :  { %v4991_v19 = vmul.f32 %v7765_v0, %v4985_v16  ;;  %v9733_v55 = vpop.eup %9732  ;;  %v7574_v25 = vadd.f32 1.0, %v9731_v52 }
0x2ccd   :  { %v4990_v46 = vmul.f32 %v7765_v0, %v4984_v17  ;;  %v7573_v23 = vadd.f32 1.0, %v9733_v55 }
0x2cce   :  { %v4997_v21 = vadd.f32 %v7766_v18, %v4991_v19  ;;  %9734 = vrcp.f32 %v7574_v25  ;;  %v5626_v25 = vld [vmem:[#allocation4 + $0x670] sm:$0xff] }
0x2ccf   :  { %v4996_v20 = vadd.f32 %v7766_v18, %v4990_v46  ;;  %9736 = vrcp.f32 %v7573_v23  ;;  %v5627_v23 = vld [vmem:[#allocation4 + $0x678] sm:$0xff] }
0x2cd1   :  { %8797 = vmatprep.mubr.msk.f32.mxu1 %vm201_vm1, %v4996_v20 }
0x2cd2   :  { %8798 = vmatmul.mubr.msk.f32.vlgmr.msra.gmra.mrb[46].mxu1 %vm201_vm1, %v4997_v21  ;;  %v7779_v21 = vld [vmem:[#allocation4 + $0x668] ss:$0 sm:$0xff] }
0x2cd3   :  { %9446 = vmatpush3.bf16.msra.mxu1 %v9443_v47  ;;  %8804 = vmatprep.mubr.msk.f32.mxu1 %vm106_vm0, %v9794_v22  ;;  %v5351_v47 = vld [vmem:[#allocation4 + $0x660] sm:$0xff] }
0x2cd4   :  { %9448 = vmatprep.subr.bf16.mxu1 %v9447_v27  ;;  %v9467_v13 = vpack.c.bf16 %v5351_v47, %v5350_v48 }
0x2cd6   :  { %8805 = vmatmul.mubr.msk.f32.vlgmr.msra.gmra.mrb[48].mxu1 %vm106_vm0, %v9795_v45 }
0x2cd7   :  { %9450 = vmatpush3.bf16.msra.mxu1 %v9447_v27 }
0x2cd8   :  { %9452 = vmatprep.subr.bf16.mxu1 %v9451_v35  ;;  %v10409_v56 = vpop.eup %9734 }
0x2cd9   :  { %v10411_v58 = vpop.eup %9736  ;;  %v7580_v54 = vsub.f32 1.0, %v10409_v56 }
0x2cda   :  { %v7579_v49 = vsub.f32 1.0, %v10411_v58 }
0x2cdb   :  { %9454 = vmatpush3.bf16.msra.mxu1 %v9451_v35  ;;  %v9798_v35 = vld [vmem:[%s10612_s5 + $0x8] sm:$0xff] }
0x2cdc   :  { %9464 = vmatprep.subr.bf16.mxu1 %v9463_v29 }
0x2da5   :  { %v8799_v53 = vpop.f32.mrb[46].mxu1 }
0x2da6   :  { %v5086_v59 = vadd.f32 %v8799_v53, %v7767_v57  ;;  %v5080_v60 = vpop.f32.mrb[47].mxu1  ;;  %v9481_v53 = vpack.c.bf16 %v5627_v23, %v5626_v25 }
0x2da7   :  { %v5081_v61 = vadd.f32 %v7767_v57, %v5080_v60  ;;  %v5628_v57 = vld [vmem:[#allocation4 + $0x680] sm:$0xff] }
0x2da8   :  { %v10417_v63 = vmul.f32 %v7580_v54, %v5086_v59  ;;  %v5629_v59 = vld [vmem:[#allocation4 + $0x688] sm:$0xff] }
0x2da9   :  { %v10421_v3 = vmul.f32 %v7579_v49, %v5081_v61  ;;  %v8806_v5 = vpop.f32.mrb[48].mxu1  ;;  %v9485_v60 = vpack.c.bf16 %v5629_v59, %v5628_v57  ;;  %v7791_v57 = vld [vmem:[#allocation4 + $0x880] ss:$0 sm:$0xff] }
0x2daa   :  { %v5169_v6 = vadd.f32 %v8806_v5, %v7770_v44  ;;  %v5163_v7 = vpop.f32.mrb[49].mxu1 }
0x2dab   :  { %v5164_v10 = vadd.f32 %v7770_v44, %v5163_v7 }
0x2dac   :  { %v10431_v1 = vadd.f32 %v9797_v2, %v5169_v6 }
0x2dad   :  { %v10426_v12 = vadd.f32 %v9796_v11, %v5164_v10  ;;  %v7788_v11 = vld [vmem:[#allocation4 + $0x690] ss:$0 sm:$0xff] }
0x2daf   :  { %8815 = vmatprep.mubr.msk.f32.mxu1 %vm201_vm1, %v10426_v12  ;;  %8826 = vmatprep.mubr.msk.f32.mxu0 %vm201_vm1, %v10426_v12 }
0x2db0   :  { %8816 = vmatmul.mubr.msk.f32.vlgmr.msra.gmra.mrb[50].mxu1 %vm201_vm1, %v10431_v1  ;;  %8827 = vmatmul.mubr.msk.f32.vlgmr.msra.gmra.mrb[52].mxu0 %vm201_vm1, %v10431_v1 }
0x2db1   :  { %9466 = vmatpush3.bf16.msra.mxu1 %v9463_v29  ;;  %8837 = vmatprep.mubr.msk.f32.mxu1 %vm201_vm1, %v10426_v12 }
0x2db2   :  { %9468 = vmatprep.subr.bf16.mxu1 %v9467_v13 }
0x2db5   :  { %9470 = vmatpush3.bf16.msra.mxu1 %v9467_v13 }
0x2db8   :  { %8838 = vmatmul.mubr.msk.f32.vlgmr.msra.gmra.mrb[52].mxu1 %vm201_vm1, %v10431_v1 }
0x2e83   :  { %v8817_v0 = vpop.f32.mrb[50].mxu1  ;;  %v8828_v15 = vpop.f32.mrb[52].mxu0 }
0x2e84   :  { %v5345_v16 = vadd.f32 %v8828_v15, %v7776_v14  ;;  %v5255_v17 = vpop.f32.mrb[51].mxu1  ;;  %v5339_v18 = vpop.f32.mrb[53].mxu0  ;;  %v5261_v27 = vadd.f32 %v8817_v0, %v7773_v4 }
0x2e85   :  { %v5256_v19 = vadd.f32 %v7773_v4, %v5255_v17  ;;  %v5340_v46 = vadd.f32 %v7776_v14, %v5339_v18 }
0x2e87   :  { %v9471_v20 = vpack.c.bf16 %v5345_v16, %v5340_v46  ;;  %8844 = vmatprep.mubr.msk.f32.mxu0 %vm201_vm1, %v5256_v19 }
0x2e89   :  { %9473 = vmatprep.subr.msk.bf16.mxu0 %vm10069_vm2, %v9471_v20 }
0x2e8a   :  { %9476 = vmatpush3.bf16.xpose.msk.msra.mxu0 %vm10069_vm2, %v9471_v20 }
0x2e8b   :  { %v8839_v22 = vpop.f32.mrb[52].mxu1  ;;  %9482 = vmatprep.subr.bf16.mxu0 %v9481_v53 }
0x2e8c   :  { %v5429_v45 = vadd.f32 %v8839_v22, %v7779_v21  ;;  %v5423_v24 = vpop.f32.mrb[53].mxu1 }
0x2e8d   :  { %v5424_v26 = vadd.f32 %v7779_v21, %v5423_v24 }
0x2e8f   :  { %v9477_v28 = vpack.c.bf16 %v5429_v45, %v5424_v26 }
0x2e91   :  { %9478 = vmatprep.subr.bf16.mxu1 %v9477_v28  ;;  %8845 = vmatmul.mubr.msk.f32.vlgmr.msra.gmra.mrb[54].mxu0 %vm201_vm1, %v5261_v27  ;;  %v5760_v27 = vld [vmem:[#allocation6 + $0xa8] sm:$0xff] }
0x2e92   :  { %9480 = vmatpush3.bf16.msra.mxu1 %v9477_v28  ;;  %9484 = vmatpush3.bf16.msra.mxu0 %v9481_v53 }
0x2e93   :  { %9486 = vmatprep.subr.bf16.mxu0 %v9485_v60 }
0x2e96   :  { %9488 = vmatpush3.bf16.msra.mxu0 %v9485_v60 }
0x2f64   :  { %v8846_v31 = vpop.f32.mrb[54].mxu0 }
0x2f65   :  { %v5520_v32 = vmul.f32 0.17677669, %v8846_v31  ;;  %v5510_v33 = vpop.f32.mrb[55].mxu0  ;;  %v5761_v31 = vld [vmem:[#allocation6 + $0xb0] sm:$0xff] }
0x2f66   :  { %v5519_v34 = vmul.f32 0.17677669, %v5510_v33 }
0x2f67   :  { %v5522_v36 = vadd.f32 %v9798_v35, %v5520_v32  ;;  %v5762_v32 = vld [vmem:[#allocation6 + $0xb8] sm:$0xff] }
0x2f68   :  { %v5521_v38 = vadd.f32 %v9799_v37, %v5519_v34  ;;  %v9493_v33 = vpack.c.bf16 %v5762_v32, %v5761_v31  ;;  %v5987_v34 = vld [vmem:[#allocation4 + $0x6e0] sm:$0xff]  ;;  %v5988_v35 = vld [vmem:[#allocation4 + $0x6e8] sm:$0xff]  ;;  %v5851_v37 = vld [vmem:[#allocation4 + $0x698] sm:$0xff] }
0x2f69   :  { %v5526_v39 = vsel %vm106_vm0, %v5522_v36, -inf }
0x2f6a   :  { %5527 = vmax.xlane.f32.xlu1 %v5526_v39  ;;  %v5523_v30 = vsel %vm106_vm0, %v5521_v38, -inf  ;;  %v5853_v39 = vld [vmem:[#allocation4 + $0x6a8] sm:$0xff] }
0x2f6b   :  { %5524 = vmax.xlane.f32.xlu0 %v5523_v30 }
0x2ff7   :  { %v5528_v29 = vpop.xlane.xlu1 %5527 }
0x2ff8   :  { %v5530_v9 = vsub.f32 %v5522_v36, %v5528_v29  ;;  %v5525_v40 = vpop.xlane.xlu0 %5524  ;;  %v9513_v36 = vpack.c.bf16 %v5988_v35, %v5987_v34  ;;  %v5854_v29 = vld [vmem:[#allocation4 + $0x6b0] sm:$0xff] }
0x2ff9   :  { %v5529_v42 = vsub.f32 %v5521_v38, %v5525_v40  ;;  %v5852_v38 = vld [vmem:[#allocation4 + $0x6a0] sm:$0xff]  ;;  %v5855_v40 = vld [vmem:[#allocation4 + $0x6b8] sm:$0xff] }
0x2ffa   :  { %v5533_v43 = vmul.f32 1.442695, %v5530_v9  ;;  %v9497_v30 = vpack.c.bf16 %v5852_v38, %v5851_v37  ;;  %v9501_v9 = vpack.c.bf16 %v5854_v29, %v5853_v39  ;;  %v6163_v38 = vld [vmem:[#allocation4 + $0x730] sm:$0xff]  ;;  %v6164_v39 = vld [vmem:[#allocation4 + $0x738] sm:$0xff] }
0x2ffb   :  { %v5531_v8 = vmul.f32 1.442695, %v5529_v42  ;;  %v5856_v42 = vld [vmem:[#allocation4 + $0x6c0] sm:$0xff] }
0x2ffc   :  { %9738 = vpow2.f32 %v5533_v43  ;;  %9498 = vmatprep.subr.bf16.mxu0 %v9497_v30  ;;  %v9505_v43 = vpack.c.bf16 %v5856_v42, %v5855_v40  ;;  %v9529_v42 = vpack.c.bf16 %v6164_v39, %v6163_v38 }
0x2ffd   :  { %9740 = vpow2.f32 %v5531_v8 }
0x3006   :  { %v9739_v50 = vpop.eup %9738 }
0x3007   :  { %v9741_v51 = vpop.eup %9740  ;;  %v5538_v52 = vsel %vm106_vm0, %v9739_v50, 0.0 }
0x3008   :  { %5539 = vadd.xlane.f32.xlu1 %v5538_v52  ;;  %v5535_v55 = vsel %vm106_vm0, %v9741_v51, 0.0 }
0x3009   :  { %5536 = vadd.xlane.f32.xlu0 %v5535_v55 }
0x3095   :  { %v5540_v61 = vpop.xlane.xlu1 %5539 }
0x3096   :  { %9742 = vrcp.f32 %v5540_v61  ;;  %v5537_v44 = vpop.xlane.xlu0 %5536  ;;  %v7792_v61 = vld [vmem:[#allocation4 + $0x888] ss:$0 sm:$0xff] }
0x3097   :  { %9744 = vrcp.f32 %v5537_v44 }
0x30a0   :  { %v9743_v5 = vpop.eup %9742 }
0x30a1   :  { %v9745_v6 = vpop.eup %9744  ;;  %v5544_v10 = vmul.f32 %v9743_v5, %v9739_v50 }
0x30a2   :  { %v5542_v7 = vmul.f32 %v9745_v6, %v9741_v51 }
0x30a4   :  { %8851 = vmatprep.mubr.msk.f32.mxu1 %vm106_vm0, %v5542_v7 }
0x30a5   :  { %8852 = vmatmul.mubr.msk.f32.vlgmr.msra.gmra.mrb[54].mxu1 %vm106_vm0, %v5544_v10  ;;  %v9800_v10 = vld [vmem:[%s10609_s2] sm:$0xff] }
0x3178   :  { %v8853_v48 = vpop.f32.mrb[54].mxu1 }
0x3179   :  { %v5617_v47 = vpop.f32.mrb[55].mxu1 }
0x317a   :  { %8862 = vmatprep.mubr.msk.f32.mxu0 %vm201_vm1, %v5617_v47  ;;  %v5857_v47 = vld [vmem:[#allocation4 + $0x6c8] sm:$0xff] }
0x317b   :  { %8863 = vmatmul.mubr.msk.f32.vlgmr.msra.gmra.mrb[56].mxu0 %vm201_vm1, %v8853_v48  ;;  %v9801_v48 = vld [vmem:[%s10609_s2 + $0x8] sm:$0xf] }
0x317c   :  { %9500 = vmatpush3.bf16.msra.mxu0 %v9497_v30  ;;  %v9802_v30 = vld [vmem:[%s10611_s4] sm:$0xff] }
0x317d   :  { %9502 = vmatprep.subr.bf16.mxu0 %v9501_v9 }
0x3180   :  { %9504 = vmatpush3.bf16.msra.mxu0 %v9501_v9  ;;  %v9803_v9 = vld [vmem:[%s10611_s4 + $0x8] sm:$0xf] }
0x3181   :  { %9506 = vmatprep.subr.bf16.mxu0 %v9505_v43 }
0x3184   :  { %9508 = vmatpush3.bf16.msra.mxu0 %v9505_v43 }
0x324e   :  { %v8864_v2 = vpop.f32.mrb[56].mxu0 }
0x324f   :  { %v5713_v13 = vadd.f32 %v8864_v2, %v7788_v11  ;;  %v5707_v14 = vpop.f32.mrb[57].mxu0 }
0x3250   :  { %v5708_v4 = vadd.f32 %v7788_v11, %v5707_v14  ;;  %v5858_v11 = vld [vmem:[#allocation4 + $0x6d0] sm:$0xff]  ;;  %v6072_v14 = vld [vmem:[#allocation4 + $0x700] sm:$0xff] }
0x3251   :  { %v5717_v0 = vadd.f32 %v5713_v13, %v10431_v1  ;;  %v9509_v2 = vpack.c.bf16 %v5858_v11, %v5857_v47  ;;  %v6071_v13 = vld [vmem:[#allocation4 + $0x6f8] sm:$0xff] }
0x3252   :  { %v5716_v15 = vadd.f32 %v5708_v4, %v10426_v12  ;;  %v5759_v12 = vld [vmem:[#allocation6 + $0xa0] sm:$0xff]  ;;  %v9517_v4 = vpack.c.bf16 %v6072_v14, %v6071_v13 }
0x3253   :  { %v5723_v16 = vsel %vm201_vm1, %v5717_v0, 0.0  ;;  %v9489_v28 = vpack.c.bf16 %v5760_v27, %v5759_v12  ;;  %9510 = vmatprep.subr.bf16.mxu0 %v9509_v2  ;;  %v7801_v12 = vld [vmem:[#allocation4 + $0x6f0] ss:$0 sm:$0xff]  ;;  %v6247_v27 = vld [vmem:[#allocation4 + $0x758] sm:$0xff] }
0x3254   :  { %5724 = vadd.xlane.f32.xlu1 %v5723_v16  ;;  %v5720_v17 = vsel %vm201_vm1, %v5716_v15, 0.0  ;;  %9512 = vmatpush3.bf16.msra.mxu0 %v9509_v2 }
0x3255   :  { %5721 = vadd.xlane.f32.xlu0 %v5720_v17  ;;  %9490 = vmatprep.subr.bf16.mxu1 %v9489_v28  ;;  %v6245_v17 = vld [vmem:[#allocation4 + $0x748] sm:$0xff] }
0x3256   :  { %9492 = vmatpush3.bf16.msra.mxu1 %v9489_v28  ;;  %v6248_v28 = vld [vmem:[#allocation4 + $0x760] sm:$0xff] }
0x3257   :  { %9494 = vmatprep.subr.bf16.mxu1 %v9493_v33 }
0x325a   :  { %9496 = vmatpush3.bf16.msra.mxu1 %v9493_v33 }
0x325b   :  { %9514 = vmatprep.subr.bf16.mxu1 %v9513_v36 }
0x32e1   :  { %v5725_v18 = vpop.xlane.xlu1 %5724 }
0x32e2   :  { %v5727_v19 = vmul.f32 0.03125, %v5725_v18  ;;  %v5722_v46 = vpop.xlane.xlu0 %5721  ;;  %v6246_v18 = vld [vmem:[#allocation4 + $0x750] sm:$0xff] }
0x32e3   :  { %v5726_v20 = vmul.f32 0.03125, %v5722_v46  ;;  %v6161_v46 = vld [vmem:[#allocation4 + $0x720] sm:$0xff] }
0x32e4   :  { %v5729_v21 = vsub.f32 %v5717_v0, %v5727_v19  ;;  %v6073_v0 = vld [vmem:[#allocation4 + $0x708] sm:$0xff]  ;;  %v9533_v19 = vpack.c.bf16 %v6246_v18, %v6245_v17 }
0x32e5   :  { %v5728_v22 = vsub.f32 %v5716_v15, %v5726_v20  ;;  %v6074_v15 = vld [vmem:[#allocation4 + $0x710] sm:$0xff]  ;;  %v6162_v20 = vld [vmem:[#allocation4 + $0x728] sm:$0xff] }
0x32e6   :  { %v5731_v45 = vmul.f32 %v5729_v21, %v5729_v21  ;;  %v9521_v16 = vpack.c.bf16 %v6074_v15, %v6073_v0  ;;  %9534 = vmatprep.subr.bf16.mxu0 %v9533_v19  ;;  %v9804_v0 = vld [vmem:[%s10613_s6 + $0x8] sm:$0xf]  ;;  %v9805_v15 = vld [vmem:[%s10613_s6] sm:$0xff] }
0x32e7   :  { %v5730_v24 = vmul.f32 %v5728_v22, %v5728_v22 }
0x32e8   :  { %v5735_v26 = vsel %vm201_vm1, %v5731_v45, 0.0 }
0x32e9   :  { %5736 = vadd.xlane.f32.xlu1 %v5735_v26  ;;  %v5732_v1 = vsel %vm201_vm1, %v5730_v24, 0.0 }
0x32ea   :  { %5733 = vadd.xlane.f32.xlu0 %v5732_v1 }
0x3376   :  { %v5737_v8 = vpop.xlane.xlu1 %5736 }
0x3377   :  { %v5739_v50 = vmul.f32 0.03125, %v5737_v8  ;;  %v5734_v51 = vpop.xlane.xlu0 %5733 }
0x3378   :  { %v5738_v52 = vmul.f32 0.03125, %v5734_v51 }
0x3379   :  { %v5741_v55 = vadd.f32 1e-05, %v5739_v50  ;;  %v7804_v50 = vld [vmem:[#allocation4 + $0x718] ss:$0 sm:$0xff] }
0x337a   :  { %v5740_v25 = vadd.f32 1e-05, %v5738_v52 }
0x337b   :  { %9746 = vrsqrt.f32 %v5741_v55 }
0x337c   :  { %9748 = vrsqrt.f32 %v5740_v25  ;;  %v7810_v25 = vld [vmem:[#allocation4 + $0x768] ss:$0 sm:$0xff] }
0x3385   :  { %v9747_v23 = vpop.eup %9746 }
0x3386   :  { %v9749_v53 = vpop.eup %9748  ;;  %v5745_v59 = vmul.f32 %v9747_v23, %v5729_v21  ;;  %v9525_v21 = vpack.c.bf16 %v6162_v20, %v6161_v46 }
0x3387   :  { %v5744_v60 = vmul.f32 %v9749_v53, %v5728_v22  ;;  %v7793_v22 = vld [vmem:[#allocation6 + $0xc0] ss:$0 sm:$0xff] }
0x3388   :  { %v5751_v44 = vmul.f32 %v7791_v57, %v5745_v59 }
0x3389   :  { %v5750_v5 = vmul.f32 %v7791_v57, %v5744_v60  ;;  %v7807_v60 = vld [vmem:[#allocation4 + $0x740] ss:$0 sm:$0xff] }
0x338a   :  { %v10473_v7 = vadd.f32 %v7792_v61, %v5751_v44 }
0x338b   :  { %v10471_v6 = vadd.f32 %v7792_v61, %v5750_v5 }
0x338d   :  { %8873 = vmatprep.mubr.msk.f32.mxu1 %vm201_vm1, %v10471_v6 }
0x338e   :  { %8874 = vmatmul.mubr.msk.f32.vlgmr.msra.gmra.mrb[56].mxu1 %vm201_vm1, %v10473_v7 }
0x338f   :  { %9516 = vmatpush3.bf16.msra.mxu1 %v9513_v36  ;;  %8899 = vmatprep.mubr.msk.f32.mxu1 %vm106_vm0, %v9800_v10  ;;  %v9537_v36 = vpack.c.bf16 %v6248_v28, %v6247_v27 }
0x3390   :  { %9518 = vmatprep.subr.bf16.mxu1 %v9517_v4 }
0x3392   :  { %8900 = vmatmul.mubr.msk.f32.vlgmr.msra.gmra.mrb[58].mxu1 %vm106_vm0, %v9801_v48 }
0x3393   :  { %9520 = vmatpush3.bf16.msra.mxu1 %v9517_v4 }
0x3394   :  { %9522 = vmatprep.subr.bf16.mxu1 %v9521_v16 }
0x3397   :  { %9524 = vmatpush3.bf16.msra.mxu1 %v9521_v16 }
0x3398   :  { %9526 = vmatprep.subr.bf16.mxu1 %v9525_v21 }
0x3461   :  { %v8875_v45 = vpop.f32.mrb[56].mxu1 }
0x3462   :  { %v5846_v24 = vadd.f32 %v8875_v45, %v7793_v22  ;;  %v5840_v26 = vpop.f32.mrb[57].mxu1 }
0x3463   :  { %v5841_v1 = vadd.f32 %v7793_v22, %v5840_v26 }
0x3464   :  { %v5850_v33 = vmax.f32 %v5846_v24, 0.0  ;;  %v7796_v24 = vld [vmem:[#allocation4 + $0x6d8] ss:$0 sm:$0xff] }
0x3465   :  { %v5849_v31 = vmax.f32 %v5841_v1, 0.0  ;;  %v8901_v32 = vpop.f32.mrb[58].mxu1 }
0x3466   :  { %v6066_v34 = vadd.f32 %v8901_v32, %v7801_v12  ;;  %v6060_v35 = vpop.f32.mrb[59].mxu1 }
0x3467   :  { %v6061_v37 = vadd.f32 %v7801_v12, %v6060_v35  ;;  %8892 = vmatprep.mubr.msk.f32.mxu0 %vm885_vm3, %v5849_v31 }
0x3468   :  { %8893 = vmatmul.mubr.msk.f32.vlgmr.msra.gmra.mrb[58].mxu0 %vm885_vm3, %v5850_v33  ;;  %v10497_v40 = vadd.f32 %v9803_v9, %v6066_v34  ;;  %v6528_v9 = vld [vmem:[#allocation4 + $0x780] sm:$0xff] }
0x3469   :  { %v10492_v29 = vadd.f32 %v9802_v30, %v6061_v37  ;;  %9536 = vmatpush3.bf16.msra.mxu0 %v9533_v19  ;;  %v6527_v37 = vld [vmem:[#allocation4 + $0x778] sm:$0xff] }
0x346a   :  { %9538 = vmatprep.subr.bf16.mxu0 %v9537_v36 }
0x346b   :  { %8910 = vmatprep.mubr.msk.f32.mxu1 %vm201_vm1, %v10492_v29  ;;  %8932 = vmatprep.mubr.msk.f32.mxu0 %vm201_vm1, %v10492_v29 }
0x346c   :  { %8911 = vmatmul.mubr.msk.f32.vlgmr.msra.gmra.mrb[60].mxu1 %vm201_vm1, %v10497_v40 }
0x346d   :  { %9528 = vmatpush3.bf16.msra.mxu1 %v9525_v21  ;;  %9540 = vmatpush3.bf16.msra.mxu0 %v9537_v36  ;;  %v6526_v36 = vld [vmem:[#allocation4 + $0x770] sm:$0xff] }
0x346e   :  { %8921 = vmatprep.mubr.msk.f32.mxu1 %vm201_vm1, %v10492_v29  ;;  %9530 = vmatprep.subr.bf16.mxu1 %v9529_v42  ;;  %v9553_v38 = vpack.c.bf16 %v6527_v37, %v6526_v36 }
0x3470   :  { %8933 = vmatmul.mubr.msk.f32.vlgmr.msra.gmra.mrb[60].mxu0 %vm201_vm1, %v10497_v40 }
0x3471   :  { %9532 = vmatpush3.bf16.msra.mxu1 %v9529_v42  ;;  %v6529_v42 = vld [vmem:[#allocation4 + $0x788] sm:$0xff] }
0x3474   :  { %8922 = vmatmul.mubr.msk.f32.vlgmr.msra.gmra.mrb[62].mxu1 %vm201_vm1, %v10497_v40 }
0x353b   :  { %v8894_v43 = vpop.f32.mrb[58].mxu0 }
0x353c   :  { %v5936_v8 = vpop.f32.mrb[59].mxu0  ;;  %v5942_v26 = vadd.f32 %v8894_v43, %v7796_v24 }
0x353d   :  { %v5937_v1 = vadd.f32 %v7796_v24, %v5936_v8 }
0x353e   :  { %v5946_v31 = vadd.f32 %v5942_v26, %v10473_v7 }
0x353f   :  { %v8912_v51 = vpop.f32.mrb[60].mxu1  ;;  %v5945_v33 = vadd.f32 %v5937_v1, %v10471_v6 }
0x3540   :  { %v6152_v52 = vpop.f32.mrb[61].mxu1  ;;  %v6158_v11 = vadd.f32 %v8912_v51, %v7804_v50  ;;  %v5952_v34 = vsel %vm201_vm1, %v5946_v31, 0.0 }
0x3541   :  { %v6153_v55 = vadd.f32 %v7804_v50, %v6152_v52  ;;  %v5949_v35 = vsel %vm201_vm1, %v5945_v33, 0.0  ;;  %v9557_v50 = vpack.c.bf16 %v6529_v42, %v6528_v9 }
0x3543   :  { %v8934_v23 = vpop.f32.mrb[60].mxu0  ;;  %8939 = vmatprep.mubr.msk.f32.mxu1 %vm201_vm1, %v6153_v55 }
0x3544   :  { %v6326_v57 = vadd.f32 %v8934_v23, %v7810_v25  ;;  %v6320_v53 = vpop.f32.mrb[61].mxu0 }
0x3545   :  { %v6321_v59 = vadd.f32 %v7810_v25, %v6320_v53  ;;  %v7820_v53 = vld [vmem:[#allocation4 + $0x790] ss:$0 sm:$0xff] }
0x3547   :  { %v9547_v61 = vpack.c.bf16 %v6326_v57, %v6321_v59  ;;  %v8923_v44 = vpop.f32.mrb[62].mxu1 }
0x3548   :  { %v6242_v5 = vadd.f32 %v8923_v44, %v7807_v60  ;;  %v6236_v10 = vpop.f32.mrb[63].mxu1 }
0x3549   :  { %v6237_v48 = vadd.f32 %v7807_v60, %v6236_v10  ;;  %9549 = vmatprep.subr.msk.bf16.mxu0 %vm10140_vm6, %v9547_v61 }
0x354a   :  { %9552 = vmatpush3.bf16.msk.msra.mxu0 %vm10140_vm6, %v9547_v61 }
0x354b   :  { %v9541_v47 = vpack.c.bf16 %v6242_v5, %v6237_v48  ;;  %9554 = vmatprep.subr.bf16.mxu0 %v9553_v38 }
0x354d   :  { %9543 = vmatprep.subr.msk.bf16.mxu1 %vm10069_vm2, %v9541_v47 }
0x354e   :  { %9546 = vmatpush3.bf16.xpose.msk.msra.mxu1 %vm10069_vm2, %v9541_v47 }
0x3555   :  { %8940 = vmatmul.mubr.msk.f32.vlgmr.msra.gmra.mrb[64].mxu1 %vm201_vm1, %v6158_v11 }
0x3628   :  { %v8941_v2 = vpop.f32.mrb[64].mxu1 }
0x3629   :  { %v6417_v13 = vmul.f32 0.17677669, %v8941_v2  ;;  %v6407_v14 = vpop.f32.mrb[65].mxu1 }
0x362a   :  { %v6416_v4 = vmul.f32 0.17677669, %v6407_v14 }
0x362b   :  { %v6419_v62 = vadd.f32 %v9804_v0, %v6417_v13 }
0x362c   :  { %v6418_v16 = vadd.f32 %v9805_v15, %v6416_v4  ;;  %v6749_v15 = vld [vmem:[#allocation4 + $0x7c8] sm:$0xff] }
0x362d   :  { %v6423_v17 = vsel %vm1456_vm7, %v6419_v62, -inf }
0x362e   :  { %6424 = vmax.xlane.f32.xlu1 %v6423_v17  ;;  %v6420_v18 = vsel %vm1452_vm8, %v6418_v16, -inf }
0x362f   :  { %6421 = vmax.xlane.f32.xlu0 %v6420_v18 }
0x36bb   :  { %v6425_v19 = vpop.xlane.xlu1 %6424 }
0x36bc   :  { %v6427_v46 = vsub.f32 %v6419_v62, %v6425_v19  ;;  %v6422_v20 = vpop.xlane.xlu0 %6421  ;;  %v6748_v62 = vld [vmem:[#allocation4 + $0x7c0] sm:$0xff] }
0x36bd   :  { %v6426_v21 = vsub.f32 %v6418_v16, %v6422_v20  ;;  %v9569_v16 = vpack.c.bf16 %v6749_v15, %v6748_v62 }
0x36be   :  { %v6430_v22 = vmul.f32 1.442695, %v6427_v46 }
0x36bf   :  { %v6428_v45 = vmul.f32 1.442695, %v6426_v21 }
0x36c0   :  { %9750 = vpow2.f32 %v6430_v22 }
0x36c1   :  { %9752 = vpow2.f32 %v6428_v45 }
0x36ca   :  { %v9751_v12 = vpop.eup %9750 }
0x36cb   :  { %v9753_v27 = vpop.eup %9752  ;;  %v6435_v28 = vsel %vm1456_vm7, %v9751_v12, 0.0 }
0x36cc   :  { %6436 = vadd.xlane.f32.xlu1 %v6435_v28  ;;  %v6432_v32 = vsel %vm1452_vm8, %v9753_v27, 0.0 }
0x36cd   :  { %6433 = vadd.xlane.f32.xlu0 %v6432_v32 }
0x36d0   :  { %5953 = vadd.xlane.f32.xlu1 %v5952_v34 }
0x36d1   :  { %5950 = vadd.xlane.f32.xlu0 %v5949_v35  ;;  %v7799_v35 = vld [vmem:[#allocation4 + $0x890] ss:$0 sm:$0xff] }
0x3759   :  { %v6437_v39 = vpop.xlane.xlu1 %6436 }
0x375a   :  { %9754 = vrcp.f32 %v6437_v39  ;;  %v6434_v30 = vpop.xlane.xlu0 %6433  ;;  %v7800_v39 = vld [vmem:[#allocation4 + $0x898] ss:$0 sm:$0xff] }
0x375b   :  { %9756 = vrcp.f32 %v6434_v30 }
0x375d   :  { %v5954_v55 = vpop.xlane.xlu1 %5953 }
0x375e   :  { %v5951_v25 = vpop.xlane.xlu0 %5950  ;;  %v5956_v23 = vmul.f32 0.03125, %v5954_v55  ;;  %v6838_v55 = vld [vmem:[#allocation4 + $0x7e8] sm:$0xff] }
0x375f   :  { %v5955_v57 = vmul.f32 0.03125, %v5951_v25  ;;  %v6839_v25 = vld [vmem:[#allocation4 + $0x7f0] sm:$0xff] }
0x3760   :  { %v5958_v60 = vsub.f32 %v5946_v31, %v5956_v23  ;;  %v9577_v23 = vpack.c.bf16 %v6839_v25, %v6838_v55  ;;  %v7116_v25 = vld [vmem:[#allocation4 + $0x810] sm:$0xff] }
0x3761   :  { %v5957_v5 = vsub.f32 %v5945_v33, %v5955_v57 }
0x3762   :  { %v5960_v2 = vmul.f32 %v5958_v60, %v5958_v60 }
0x3763   :  { %v5959_v14 = vmul.f32 %v5957_v5, %v5957_v5 }
0x3764   :  { %v9755_v7 = vpop.eup %9754  ;;  %v5964_v4 = vsel %vm201_vm1, %v5960_v2, 0.0  ;;  %v7824_v2 = vld [vmem:[#allocation4 + $0x8a8] ss:$0 sm:$0xff] }
0x3765   :  { %v9757_v43 = vpop.eup %9756  ;;  %v6441_v8 = vmul.f32 %v9755_v7, %v9751_v12  ;;  %v5961_v0 = vsel %vm201_vm1, %v5959_v14, 0.0 }
0x3766   :  { %v6439_v6 = vmul.f32 %v9757_v43, %v9753_v27  ;;  %v6658_v43 = vld [vmem:[#allocation4 + $0x798] sm:$0xff] }
0x3768   :  { %8946 = vmatprep.mubr.msk.f32.mxu0 %vm1452_vm8, %v6439_v6  ;;  %v6659_v6 = vld [vmem:[#allocation4 + $0x7a0] sm:$0xff] }
0x3769   :  { %8947 = vmatmul.mubr.msk.f32.vlgmr.msra.gmra.mrb[62].mxu0 %vm1452_vm8, %v6441_v8  ;;  %v9561_v8 = vpack.c.bf16 %v6659_v6, %v6658_v43 }
0x376a   :  { %9556 = vmatpush3.bf16.msra.mxu0 %v9553_v38 }
0x376b   :  { %9558 = vmatprep.subr.bf16.mxu0 %v9557_v50  ;;  %9562 = vmatprep.subr.bf16.mxu1 %v9561_v8 }
0x376c   :  { %9564 = vmatpush3.bf16.msra.mxu1 %v9561_v8 }
0x376e   :  { %9560 = vmatpush3.bf16.msra.mxu0 %v9557_v50  ;;  %v6660_v50 = vld [vmem:[#allocation4 + $0x7a8] sm:$0xff] }
0x376f   :  { %9570 = vmatprep.subr.bf16.mxu0 %v9569_v16 }
0x383c   :  { %v8948_v51 = vpop.f32.mrb[62].mxu0 }
0x383d   :  { %v6517_v52 = vpop.f32.mrb[63].mxu0 }
0x383e   :  { %8957 = vmatprep.mubr.msk.f32.mxu0 %vm201_vm1, %v6517_v52 }
0x383f   :  { %8958 = vmatmul.mubr.msk.f32.vlgmr.msra.gmra.mrb[64].mxu0 %vm201_vm1, %v8948_v51  ;;  %v6661_v51 = vld [vmem:[#allocation4 + $0x7b0] sm:$0xff] }
0x3840   :  { %9572 = vmatpush3.bf16.msra.mxu0 %v9569_v16  ;;  %v9565_v52 = vpack.c.bf16 %v6661_v51, %v6660_v50 }
0x3842   :  { %9566 = vmatprep.subr.bf16.mxu1 %v9565_v52 }
0x3843   :  { %9568 = vmatpush3.bf16.msra.mxu1 %v9565_v52 }
0x3844   :  { %9578 = vmatprep.subr.bf16.mxu1 %v9577_v23 }
0x3912   :  { %v8959_v59 = vpop.f32.mrb[64].mxu0 }
0x3913   :  { %v6613_v61 = vadd.f32 %v8959_v59, %v7820_v53  ;;  %v6607_v44 = vpop.f32.mrb[65].mxu0 }
0x3914   :  { %v6608_v10 = vadd.f32 %v7820_v53, %v6607_v44 }
0x3915   :  { %v6617_v48 = vadd.f32 %v6613_v61, %v10497_v40  ;;  %v6750_v40 = vld [vmem:[#allocation4 + $0x7d0] sm:$0xff] }
0x3916   :  { %v6616_v47 = vadd.f32 %v6608_v10, %v10492_v29  ;;  %v6751_v29 = vld [vmem:[#allocation4 + $0x7d8] sm:$0xff]  ;;  %v7823_v10 = vld [vmem:[#allocation4 + $0x8a0] ss:$0 sm:$0xff] }
0x3917   :  { %v6623_v11 = vsel %vm1658_vm9, %v6617_v48, 0.0  ;;  %v9573_v17 = vpack.c.bf16 %v6751_v29, %v6750_v40  ;;  %v7828_v40 = vld [vmem:[#allocation4 + $0x7e0] ss:$0 sm:$0xff] }
0x3918   :  { %6624 = vadd.xlane.f32.xlu1 %v6623_v11  ;;  %v6620_v13 = vsel %vm201_vm1, %v6616_v47, 0.0 }
0x3919   :  { %6621 = vadd.xlane.f32.xlu0 %v6620_v13  ;;  %9574 = vmatprep.subr.bf16.mxu0 %v9573_v17 }
0x391a   :  { %9576 = vmatpush3.bf16.msra.mxu0 %v9573_v17 }
0x391c   :  { %5965 = vadd.xlane.f32.xlu1 %v5964_v4  ;;  %v6840_v4 = vld [vmem:[#allocation4 + $0x7f8] sm:$0xff] }
0x391d   :  { %5962 = vadd.xlane.f32.xlu0 %v5961_v0  ;;  %v6841_v0 = vld [vmem:[#allocation4 + $0x800] sm:$0xff] }
0x391e   :  { %v9581_v16 = vpack.c.bf16 %v6841_v0, %v6840_v4 }
0x39a5   :  { %v6625_v18 = vpop.xlane.xlu1 %6624 }
0x39a6   :  { %v6627_v19 = vmul.f32 0.03125, %v6625_v18  ;;  %v6622_v46 = vpop.xlane.xlu0 %6621 }
0x39a7   :  { %v6626_v20 = vmul.f32 0.03125, %v6622_v46 }
0x39a8   :  { %v6629_v21 = vsub.f32 %v6617_v48, %v6627_v19 }
0x39a9   :  { %v6628_v22 = vsub.f32 %v6616_v47, %v6626_v20  ;;  %v5966_v45 = vpop.xlane.xlu1 %5965  ;;  %v7825_v20 = vld [vmem:[#allocation4 + $0x7b8] ss:$0 sm:$0xff] }
0x39aa   :  { %v5968_v24 = vmul.f32 0.03125, %v5966_v45  ;;  %v5963_v26 = vpop.xlane.xlu0 %5962  ;;  %v6631_v1 = vmul.f32 %v6629_v21, %v6629_v21 }
0x39ab   :  { %v5967_v12 = vmul.f32 0.03125, %v5963_v26  ;;  %v6630_v27 = vmul.f32 %v6628_v22, %v6628_v22  ;;  %v7831_v26 = vld [vmem:[#allocation4 + $0x808] ss:$0 sm:$0xff] }
0x39ac   :  { %v5970_v28 = vadd.f32 1e-05, %v5968_v24  ;;  %v6635_v31 = vsel %vm1658_vm9, %v6631_v1, 0.0 }
0x39ad   :  { %v5969_v32 = vadd.f32 1e-05, %v5967_v12  ;;  %6636 = vadd.xlane.f32.xlu1 %v6635_v31  ;;  %v6632_v33 = vsel %vm201_vm1, %v6630_v27, 0.0 }
0x39ae   :  { %9758 = vrsqrt.f32 %v5970_v28  ;;  %6633 = vadd.xlane.f32.xlu0 %v6632_v33 }
0x39af   :  { %9760 = vrsqrt.f32 %v5969_v32 }
0x39b8   :  { %v9759_v34 = vpop.eup %9758 }
0x39b9   :  { %v9761_v36 = vpop.eup %9760  ;;  %v5974_v37 = vmul.f32 %v9759_v34, %v5958_v60 }
0x39ba   :  { %v5973_v38 = vmul.f32 %v9761_v36, %v5957_v5 }
0x39bb   :  { %v5980_v30 = vmul.f32 %v7799_v35, %v5974_v37  ;;  %v9807_v37 = vld [vmem:[%s10614_s7] sm:$0xff] }
0x39bc   :  { %v5979_v7 = vmul.f32 %v7799_v35, %v5973_v38  ;;  %v9806_v35 = vld [vmem:[%s10614_s7 + $0x8] sm:$0xf] }
0x39bd   :  { %v5986_v42 = vadd.f32 %v7800_v39, %v5980_v30 }
0x39be   :  { %v5985_v9 = vadd.f32 %v7800_v39, %v5979_v7 }
0x39c0   :  { %8979 = vmatprep.mubr.msk.f32.mxu0 %vm201_vm1, %v5985_v9 }
0x39c1   :  { %8980 = vmatmul.mubr.msk.f32.vlgmr.msra.gmra.mrb[66].mxu0 %vm201_vm1, %v5986_v42 }
0x3a3a   :  { %v6637_v57 = vpop.xlane.xlu1 %6636 }
0x3a3b   :  { %v6639_v53 = vmul.f32 0.03125, %v6637_v57  ;;  %v6634_v59 = vpop.xlane.xlu0 %6633 }
0x3a3c   :  { %v6638_v60 = vmul.f32 0.03125, %v6634_v59 }
0x3a3d   :  { %v6641_v61 = vadd.f32 1e-05, %v6639_v53 }
0x3a3e   :  { %v6640_v44 = vadd.f32 1e-05, %v6638_v60 }
0x3a3f   :  { %9762 = vrsqrt.f32 %v6641_v61  ;;  %v7118_v61 = vld [vmem:[#allocation4 + $0x820] sm:$0xff] }
0x3a40   :  { %9764 = vrsqrt.f32 %v6640_v44  ;;  %v7119_v44 = vld [vmem:[#allocation4 + $0x828] sm:$0xff] }
0x3a49   :  { %v9763_v5 = vpop.eup %9762 }
0x3a4a   :  { %v9765_v48 = vpop.eup %9764  ;;  %v6645_v47 = vmul.f32 %v9763_v5, %v6629_v21 }
0x3a4b   :  { %v6644_v11 = vmul.f32 %v9765_v48, %v6628_v22 }
0x3a4c   :  { %v6651_v13 = vmul.f32 %v7823_v10, %v6645_v47  ;;  %v9599_v47 = vpack.c.bf16 %v7119_v44, %v7118_v61  ;;  %v7346_v61 = vld [vmem:[#allocation4 + $0x868] sm:$0xff]  ;;  %v7347_v44 = vld [vmem:[#allocation4 + $0x870] sm:$0xff] }
0x3a4d   :  { %v6650_v14 = vmul.f32 %v7823_v10, %v6644_v11 }
0x3a4e   :  { %v10551_v15 = vadd.f32 %v7824_v2, %v6651_v13  ;;  %v7840_v13 = vld [vmem:[#allocation4 + $0x830] ss:$0 sm:$0xff] }
0x3a4f   :  { %v10549_v62 = vadd.f32 %v7824_v2, %v6650_v14 }
0x3a51   :  { %8968 = vmatprep.mubr.msk.f32.mxu1 %vm201_vm1, %v10549_v62 }
0x3a52   :  { %8969 = vmatmul.mubr.msk.f32.vlgmr.msra.gmra.mrb[66].mxu1 %vm201_vm1, %v10551_v15 }
0x3a53   :  { %9580 = vmatpush3.bf16.msra.mxu1 %v9577_v23  ;;  %8990 = vmatprep.mubr.msk.f32.mxu1 %vm201_vm1, %v5985_v9  ;;  %v7117_v23 = vld [vmem:[#allocation4 + $0x818] sm:$0xff] }
0x3a54   :  { %9582 = vmatprep.subr.bf16.mxu1 %v9581_v16  ;;  %v9595_v57 = vpack.c.bf16 %v7117_v23, %v7116_v25  ;;  %v7844_v23 = vld [vmem:[#allocation4 + $0x8b8] ss:$0 sm:$0xff] }
0x3a57   :  { %9584 = vmatpush3.bf16.msra.mxu1 %v9581_v16 }
0x3a5a   :  { %8991 = vmatmul.mubr.msk.f32.vlgmr.msra.gmra.mrb[68].mxu1 %vm201_vm1, %v5986_v42 }
0x3a94   :  { %v8981_v29 = vpop.f32.mrb[66].mxu0 }
0x3a95   :  { %v6835_v17 = vadd.f32 %v8981_v29, %v7828_v40  ;;  %v6829_v18 = vpop.f32.mrb[67].mxu0 }
0x3a96   :  { %v6830_v19 = vadd.f32 %v7828_v40, %v6829_v18 }
0x3a98   :  { %v9585_v46 = vpack.c.bf16 %v6835_v17, %v6830_v19 }
0x3a9a   :  { %9587 = vmatprep.subr.msk.bf16.mxu0 %vm10069_vm2, %v9585_v46 }
0x3a9b   :  { %9590 = vmatpush3.bf16.xpose.msk.msra.mxu0 %vm10069_vm2, %v9585_v46 }
0x3b25   :  { %v8970_v21 = vpop.f32.mrb[66].mxu1 }
0x3b26   :  { %v6739_v22 = vpop.f32.mrb[67].mxu1  ;;  %v6745_v24 = vadd.f32 %v8970_v21, %v7825_v20 }
0x3b27   :  { %v6740_v45 = vadd.f32 %v7825_v20, %v6739_v22 }
0x3b29   :  { %8997 = vmatprep.mubr.msk.f32.mxu0 %vm201_vm1, %v6740_v45 }
0x3b2a   :  { %8998 = vmatmul.mubr.msk.f32.vlgmr.msra.gmra.mrb[68].mxu0 %vm201_vm1, %v6745_v24 }
0x3b2d   :  { %v8992_v1 = vpop.f32.mrb[68].mxu1 }
0x3b2e   :  { %v6919_v12 = vadd.f32 %v8992_v1, %v7831_v26  ;;  %v6913_v27 = vpop.f32.mrb[69].mxu1 }
0x3b2f   :  { %v6914_v28 = vadd.f32 %v7831_v26, %v6913_v27 }
0x3b31   :  { %v9591_v31 = vpack.c.bf16 %v6919_v12, %v6914_v28  ;;  %v7249_v12 = vld [vmem:[#allocation6 + $0xd0] sm:$0xff]  ;;  %v7250_v28 = vld [vmem:[#allocation6 + $0xd8] sm:$0xff] }
0x3b33   :  { %9592 = vmatprep.subr.bf16.mxu1 %v9591_v31 }
0x3b34   :  { %9594 = vmatpush3.bf16.msra.mxu1 %v9591_v31  ;;  %v7251_v31 = vld [vmem:[#allocation6 + $0xe0] sm:$0xff] }
0x3b35   :  { %9596 = vmatprep.subr.bf16.mxu1 %v9595_v57 }
0x3bfd   :  { %v8999_v32 = vpop.f32.mrb[68].mxu0 }
0x3bfe   :  { %v7010_v41 = vmul.f32 0.17677669, %v8999_v32  ;;  %v7000_v33 = vpop.f32.mrb[69].mxu0  ;;  %v9607_v32 = vpack.c.bf16 %v7251_v31, %v7250_v28  ;;  %v7478_v28 = vld [vmem:[#allocation7 + $0x58] sm:$0xff] }
0x3bff   :  { %v7009_v34 = vmul.f32 0.17677669, %v7000_v33  ;;  %v7341_v33 = vld [vmem:[#allocation4 + $0x840] sm:$0xff] }
0x3c00   :  { %v7012_v36 = vadd.f32 %v9806_v35, %v7010_v41  ;;  %v7340_v41 = vld [vmem:[#allocation4 + $0x838] sm:$0xff] }
0x3c01   :  { %v7011_v38 = vadd.f32 %v9807_v37, %v7009_v34  ;;  %v7342_v34 = vld [vmem:[#allocation4 + $0x848] sm:$0xff]  ;;  %v9611_v35 = vpack.c.bf16 %v7341_v33, %v7340_v41 }
0x3c02   :  { %v7016_v39 = vsel %vm2054_vm10, %v7012_v36, -inf  ;;  %v7480_v41 = vld [vmem:[#allocation7 + $0x68] sm:$0xff] }
0x3c03   :  { %7017 = vmax.xlane.f32.xlu1 %v7016_v39  ;;  %v7013_v30 = vsel %vm106_vm0, %v7011_v38, -inf  ;;  %v7345_v39 = vld [vmem:[#allocation4 + $0x860] sm:$0xff] }
0x3c04   :  { %7014 = vmax.xlane.f32.xlu0 %v7013_v30 }
0x3c90   :  { %v7018_v7 = vpop.xlane.xlu1 %7017 }
0x3c91   :  { %v7020_v9 = vsub.f32 %v7012_v36, %v7018_v7  ;;  %v7015_v42 = vpop.xlane.xlu0 %7014  ;;  %v7343_v36 = vld [vmem:[#allocation4 + $0x850] sm:$0xff] }
0x3c92   :  { %v7019_v43 = vsub.f32 %v7011_v38, %v7015_v42  ;;  %v9615_v37 = vpack.c.bf16 %v7343_v36, %v7342_v34  ;;  %v7344_v38 = vld [vmem:[#allocation4 + $0x858] sm:$0xff] }
0x3c93   :  { %v7023_v6 = vmul.f32 1.442695, %v7020_v9  ;;  %v9619_v30 = vpack.c.bf16 %v7345_v39, %v7344_v38 }
0x3c94   :  { %v7021_v8 = vmul.f32 1.442695, %v7019_v43 }
0x3c95   :  { %9766 = vpow2.f32 %v7023_v6 }
0x3c96   :  { %9768 = vpow2.f32 %v7021_v8 }
0x3c9f   :  { %v9767_v50 = vpop.eup %9766 }
0x3ca0   :  { %v9769_v51 = vpop.eup %9768  ;;  %v7028_v52 = vsel %vm2054_vm10, %v9767_v50, 0.0 }
0x3ca1   :  { %7029 = vadd.xlane.f32.xlu1 %v7028_v52  ;;  %v7025_v55 = vsel %vm106_vm0, %v9769_v51, 0.0 }
0x3ca2   :  { %7026 = vadd.xlane.f32.xlu0 %v7025_v55 }
0x3d2e   :  { %v7030_v53 = vpop.xlane.xlu1 %7029 }
0x3d2f   :  { %9770 = vrcp.f32 %v7030_v53  ;;  %v7027_v59 = vpop.xlane.xlu0 %7026 }
0x3d30   :  { %9772 = vrcp.f32 %v7027_v59 }
0x3d39   :  { %v9771_v60 = vpop.eup %9770 }
0x3d3a   :  { %v9773_v5 = vpop.eup %9772  ;;  %v7034_v48 = vmul.f32 %v9771_v60, %v9767_v50 }
0x3d3b   :  { %v7032_v10 = vmul.f32 %v9773_v5, %v9769_v51  ;;  %v7843_v51 = vld [vmem:[#allocation4 + $0x8b0] ss:$0 sm:$0xff]  ;;  %v9623_v5 = vpack.c.bf16 %v7347_v44, %v7346_v61 }
0x3d3d   :  { %9004 = vmatprep.mubr.msk.f32.mxu1 %vm106_vm0, %v7032_v10  ;;  %v7845_v10 = vld [vmem:[#allocation6 + $0xe8] ss:$0 sm:$0xff] }
0x3d3e   :  { %9005 = vmatmul.mubr.msk.f32.vlgmr.msra.gmra.mrb[70].mxu1 %vm106_vm0, %v7034_v48 }
0x3d3f   :  { %9598 = vmatpush3.bf16.msra.mxu1 %v9595_v57 }
0x3d40   :  { %9600 = vmatprep.subr.bf16.mxu1 %v9599_v47 }
0x3d43   :  { %9602 = vmatpush3.bf16.msra.mxu1 %v9599_v47 }
0x3d44   :  { %9612 = vmatprep.subr.bf16.mxu1 %v9611_v35 }
0x3e11   :  { %v9006_v11 = vpop.f32.mrb[70].mxu1 }
0x3e12   :  { %v7107_v2 = vpop.f32.mrb[71].mxu1 }
0x3e13   :  { %9015 = vmatprep.mubr.msk.f32.mxu1 %vm201_vm1, %v7107_v2 }
0x3e14   :  { %9016 = vmatmul.mubr.msk.f32.vlgmr.msra.gmra.mrb[72].mxu1 %vm201_vm1, %v9006_v11 }
0x3e15   :  { %9614 = vmatpush3.bf16.msra.mxu1 %v9611_v35 }
0x3e16   :  { %9616 = vmatprep.subr.bf16.mxu1 %v9615_v37 }
0x3e19   :  { %9618 = vmatpush3.bf16.msra.mxu1 %v9615_v37 }
0x3e1a   :  { %9620 = vmatprep.subr.bf16.mxu1 %v9619_v30 }
0x3e1d   :  { %9622 = vmatpush3.bf16.msra.mxu1 %v9619_v30 }
0x3e1e   :  { %9624 = vmatprep.subr.bf16.mxu1 %v9623_v5 }
0x3e21   :  { %9626 = vmatpush3.bf16.msra.mxu1 %v9623_v5 }
0x3ee7   :  { %v9017_v14 = vpop.f32.mrb[72].mxu1 }
0x3ee8   :  { %v7203_v4 = vadd.f32 %v9017_v14, %v7840_v13  ;;  %v7197_v0 = vpop.f32.mrb[73].mxu1 }
0x3ee9   :  { %v7198_v16 = vadd.f32 %v7840_v13, %v7197_v0 }
0x3eea   :  { %v7207_v40 = vadd.f32 %v7203_v4, %v10551_v15  ;;  %v7848_v4 = vld [vmem:[#allocation4 + $0x878] ss:$0 sm:$0xff] }
0x3eeb   :  { %v7206_v29 = vadd.f32 %v7198_v16, %v10549_v62  ;;  %v7248_v62 = vld [vmem:[#allocation6 + $0xc8] sm:$0xff] }
0x3eec   :  { %v7213_v17 = vsel %vm1658_vm9, %v7207_v40, 0.0  ;;  %v9603_v27 = vpack.c.bf16 %v7249_v12, %v7248_v62 }
0x3eed   :  { %7214 = vadd.xlane.f32.xlu1 %v7213_v17  ;;  %v7210_v18 = vsel %vm201_vm1, %v7206_v29, 0.0 }
0x3eee   :  { %7211 = vadd.xlane.f32.xlu0 %v7210_v18  ;;  %9604 = vmatprep.subr.bf16.mxu0 %v9603_v27 }
0x3eef   :  { %9606 = vmatpush3.bf16.msra.mxu0 %v9603_v27  ;;  %v7477_v27 = vld [vmem:[#allocation7 + $0x50] sm:$0xff] }
0x3ef0   :  { %9608 = vmatprep.subr.bf16.mxu0 %v9607_v32  ;;  %v9627_v31 = vpack.c.bf16 %v7478_v28, %v7477_v27 }
0x3ef3   :  { %9610 = vmatpush3.bf16.msra.mxu0 %v9607_v32  ;;  %v7479_v32 = vld [vmem:[#allocation7 + $0x60] sm:$0xff] }
0x3ef4   :  { %9628 = vmatprep.subr.bf16.mxu0 %v9627_v31  ;;  %v9631_v33 = vpack.c.bf16 %v7480_v41, %v7479_v32 }
0x3f7a   :  { %v7215_v19 = vpop.xlane.xlu1 %7214 }
0x3f7b   :  { %v7217_v46 = vmul.f32 0.03125, %v7215_v19  ;;  %v7212_v20 = vpop.xlane.xlu0 %7211 }
0x3f7c   :  { %v7216_v21 = vmul.f32 0.03125, %v7212_v20 }
0x3f7d   :  { %v7219_v22 = vsub.f32 %v7207_v40, %v7217_v46 }
0x3f7e   :  { %v7218_v45 = vsub.f32 %v7206_v29, %v7216_v21 }
0x3f7f   :  { %v7221_v24 = vmul.f32 %v7219_v22, %v7219_v22 }
0x3f80   :  { %v7220_v26 = vmul.f32 %v7218_v45, %v7218_v45 }
0x3f81   :  { %v7225_v1 = vsel %vm1658_vm9, %v7221_v24, 0.0 }
0x3f82   :  { %7226 = vadd.xlane.f32.xlu1 %v7225_v1  ;;  %v7222_v15 = vsel %vm201_vm1, %v7220_v26, 0.0 }
0x3f83   :  { %7223 = vadd.xlane.f32.xlu0 %v7222_v15 }
0x400f   :  { %v7227_v7 = vpop.xlane.xlu1 %7226 }
0x4010   :  { %v7229_v9 = vmul.f32 0.03125, %v7227_v7  ;;  %v7224_v42 = vpop.xlane.xlu0 %7223  ;;  %v7851_v7 = vld [vmem:[#allocation4 + $0x8c0] ss:$0 sm:$0xff] }
0x4011   :  { %v7228_v43 = vmul.f32 0.03125, %v7224_v42 }
0x4012   :  { %v7231_v6 = vadd.f32 1e-05, %v7229_v9 }
0x4013   :  { %v7230_v8 = vadd.f32 1e-05, %v7228_v43 }
0x4014   :  { %9774 = vrsqrt.f32 %v7231_v6  ;;  %v7852_v6 = vld [vmem:[#allocation4 + $0x8c8] ss:$0 sm:$0xff] }
0x4015   :  { %9776 = vrsqrt.f32 %v7230_v8 }
0x401e   :  { %v9775_v50 = vpop.eup %9774 }
0x401f   :  { %v9777_v52 = vpop.eup %9776  ;;  %v7235_v55 = vmul.f32 %v9775_v50, %v7219_v22 }
0x4020   :  { %v7234_v25 = vmul.f32 %v9777_v52, %v7218_v45 }
0x4021   :  { %v7241_v57 = vmul.f32 %v7843_v51, %v7235_v55  ;;  %v7853_v55 = vld [vmem:[#allocation7 + $0x70] ss:$0 sm:$0xff] }
0x4022   :  { %v7240_v53 = vmul.f32 %v7843_v51, %v7234_v25 }
0x4023   :  { %v7247_v60 = vadd.f32 %v7844_v23, %v7241_v57  ;;  %v7584_v57 = vsub.f32 1.0, %v7580_v54 }
0x4024   :  { %v7246_v59 = vadd.f32 %v7844_v23, %v7240_v53 }
0x4026   :  { %9026 = vmatprep.mubr.msk.f32.mxu0 %vm201_vm1, %v7246_v59 }
0x4027   :  { %9027 = vmatmul.mubr.msk.f32.vlgmr.msra.gmra.mrb[70].mxu0 %vm201_vm1, %v7247_v60 }
0x4028   :  { %9630 = vmatpush3.bf16.msra.mxu0 %v9627_v31 }
0x4029   :  { %9632 = vmatprep.subr.bf16.mxu0 %v9631_v33 }
0x402c   :  { %9634 = vmatpush3.bf16.msra.mxu0 %v9631_v33 }
0x40fa   :  { %v9028_v48 = vpop.f32.mrb[70].mxu0 }
0x40fb   :  { %v7335_v47 = vadd.f32 %v9028_v48, %v7845_v10  ;;  %v7329_v11 = vpop.f32.mrb[71].mxu0 }
0x40fc   :  { %v7330_v2 = vadd.f32 %v7845_v10, %v7329_v11 }
0x40fd   :  { %v7339_v14 = vmax.f32 %v7335_v47, 0.0 }
0x40fe   :  { %v7338_v13 = vmax.f32 %v7330_v2, 0.0 }
0x4100   :  { %9045 = vmatprep.mubr.msk.f32.mxu1 %vm885_vm3, %v7338_v13 }
0x4101   :  { %9046 = vmatmul.mubr.msk.f32.vlgmr.msra.gmra.mrb[74].mxu1 %vm885_vm3, %v7339_v14 }
0x41d4   :  { %v9047_v0 = vpop.f32.mrb[74].mxu1 }
0x41d5   :  { %v7431_v16 = vadd.f32 %v9047_v0, %v7848_v4  ;;  %v7425_v40 = vpop.f32.mrb[75].mxu1 }
0x41d6   :  { %v7426_v29 = vadd.f32 %v7848_v4, %v7425_v40 }
0x41d7   :  { %v7435_v17 = vadd.f32 %v7431_v16, %v7247_v60  ;;  %v7583_v60 = vsub.f32 1.0, %v7579_v49 }
0x41d8   :  { %v7434_v18 = vadd.f32 %v7426_v29, %v7246_v59 }
0x41d9   :  { %v7441_v19 = vsel %vm1658_vm9, %v7435_v17, 0.0 }
0x41da   :  { %7442 = vadd.xlane.f32.xlu1 %v7441_v19  ;;  %v7438_v46 = vsel %vm201_vm1, %v7434_v18, 0.0 }
0x41db   :  { %7439 = vadd.xlane.f32.xlu0 %v7438_v46 }
0x4267   :  { %v7443_v20 = vpop.xlane.xlu1 %7442 }
0x4268   :  { %v7445_v21 = vmul.f32 0.03125, %v7443_v20  ;;  %v7440_v22 = vpop.xlane.xlu0 %7439 }
0x4269   :  { %v7444_v45 = vmul.f32 0.03125, %v7440_v22 }
0x426a   :  { %v7447_v24 = vsub.f32 %v7435_v17, %v7445_v21 }
0x426b   :  { %v7446_v26 = vsub.f32 %v7434_v18, %v7444_v45 }
0x426c   :  { %v7449_v1 = vmul.f32 %v7447_v24, %v7447_v24 }
0x426d   :  { %v7448_v15 = vmul.f32 %v7446_v26, %v7446_v26 }
0x426e   :  { %v7453_v62 = vsel %vm1658_vm9, %v7449_v1, 0.0 }
0x426f   :  { %7454 = vadd.xlane.f32.xlu1 %v7453_v62  ;;  %v7450_v12 = vsel %vm201_vm1, %v7448_v15, 0.0 }
0x4270   :  { %7451 = vadd.xlane.f32.xlu0 %v7450_v12 }
0x42fc   :  { %v7455_v34 = vpop.xlane.xlu1 %7454 }
0x42fd   :  { %v7457_v35 = vmul.f32 0.03125, %v7455_v34  ;;  %v7452_v36 = vpop.xlane.xlu0 %7451 }
0x42fe   :  { %v7456_v37 = vmul.f32 0.03125, %v7452_v36 }
0x42ff   :  { %v7459_v38 = vadd.f32 1e-05, %v7457_v35 }
0x4300   :  { %v7458_v39 = vadd.f32 1e-05, %v7456_v37 }
0x4301   :  { %9778 = vrsqrt.f32 %v7459_v38 }
0x4302   :  { %9780 = vrsqrt.f32 %v7458_v39 }
0x430b   :  { %v9779_v30 = vpop.eup %9778 }
0x430c   :  { %v9781_v9 = vpop.eup %9780  ;;  %v7463_v42 = vmul.f32 %v9779_v30, %v7447_v24 }
0x430d   :  { %v7462_v43 = vmul.f32 %v9781_v9, %v7446_v26 }
0x430e   :  { %v7469_v8 = vmul.f32 %v7851_v7, %v7463_v42 }
0x430f   :  { %v7468_v50 = vmul.f32 %v7851_v7, %v7462_v43 }
0x4310   :  { %v7475_v52 = vadd.f32 %v7852_v6, %v7469_v8 }
0x4311   :  { %v7474_v51 = vadd.f32 %v7852_v6, %v7468_v50 }
0x4313   :  { %9056 = vmatprep.mubr.msk.f32.mxu0 %vm201_vm1, %v7474_v51 }
0x4314   :  { %9057 = vmatmul.mubr.msk.f32.vlgmr.msra.gmra.mrb[72].mxu0 %vm201_vm1, %v7475_v52 }
0x43e7   :  { %v9058_v25 = vpop.f32.mrb[72].mxu0 }
0x43e8   :  { %v7564_v23 = vadd.f32 %v9058_v25, %v7853_v55  ;;  %v7558_v53 = vpop.f32.mrb[73].mxu0 }
0x43e9   :  { %v7559_v59 = vadd.f32 %v7853_v55, %v7558_v53 }
0x43ea   :  { %v7586_v61 = vmul.f32 %v7584_v57, %v7564_v23 }
0x43eb   :  { %v7585_v44 = vmul.f32 %v7583_v60, %v7559_v59 }
0x43ec   :  { %v7588_v5 = vadd.f32 %v7586_v61, %v10417_v63 }
0x43ed   :  { %v7587_v10 = vadd.f32 %v7585_v44, %v10421_v3 }
0x43ee   :  { %7590 = vst [vmem:[%s10618_s11 + $0x8] sm:$0xf] %v7588_v5 }
0x43ef   :  { %7589 = vst [vmem:[%s10618_s11] sm:$0xff] %v7587_v10 }
0x43f0   :  { %7595 = vsyncpa [#allocation3], 1 }
0x43f1   :  { %7596 = vsyncpa [#allocation5], 1 }
0x43f2   :  { %7597 = vsyncpa [#allocation8], 1 }

</bundles_post_ra>
